<compile_context>
chip_gen: v5e
topology: v5e:2x2
jax: 0.10.0
libtpu: 0.0.40
codegen_flags: <defaults>
</compile_context>

<pallas_src>
import jax
import jax.numpy as jnp
from jax import lax
from jax.experimental import pallas as pl
from jax.experimental.pallas import tpu as pltpu


def _round_up(v, m):
    return ((v + m - 1) // m) * m


# ----------------------------------------------------------------------------
# Pallas kernel: pre_fc + ReLU, layer-wavefront LSTM recurrence, final fc
# ----------------------------------------------------------------------------
def _lstm_predictor_kernel(x_ref, h0_ref, c0_ref,
                           wpre_ref, bpre_ref,
                           wcat_ref, blstm_ref,
                           wfc_ref, bfc_ref,
                           out_ref, hN_ref, cN_ref,
                           gx_ref):
    # x_ref   : (T, B, Din)  bf16 time-major input      (B = padded batch)
    # h0/c0   : (L, B, H)    f32                        (H = padded hidden)
    # wpre    : (Din, H) bf16, bpre: (1, H) f32
    # wcat    : (L, 2H, 4H) bf16  = [W_ih ; W_hh], gate order [i|f|o|g]
    # blstm   : (L, 1, 4H) f32
    # wfc     : (H, O) bf16, bfc: (1, O) f32
    # out_ref : (B, O) f32, hN/cN: (L, B, H) f32
    # gx_ref  : VMEM scratch (T, B, 4H) bf16  hoisted layer-0 x@W_ih (+bias)
    T, Bp, Din = x_ref.shape
    L, _, Hp = h0_ref.shape
    G = 4 * Hp
    f32 = jnp.float32
    bf16 = jnp.bfloat16

    # ---- pre_fc + ReLU over the whole sequence (bf16 operands, f32 acc) ----
    x_flat = x_ref[...].reshape(T * Bp, Din)
    pre = jnp.dot(x_flat, wpre_ref[...], preferred_element_type=f32)
    pre = jnp.maximum(pre + bpre_ref[...], 0.0)              # (T*Bp, Hp) f32
    # Padded batch rows hold relu(b_pre) != 0 -- harmless, sliced off by wrapper.

    # ---- layer-0 input projection hoisted out of the recurrence ----
    wcat0 = wcat_ref[0]                                      # (2Hp, 4Hp) bf16
    wih0 = wcat0[:Hp, :]
    whh0 = wcat0[Hp:, :]
    gx0 = jnp.dot(pre.astype(bf16), wih0,
                  preferred_element_type=f32) + blstm_ref[0]
    gx_ref[...] = gx0.reshape(T, Bp, G).astype(gx_ref.dtype)

    # Loop-invariant fused weights/biases for layers >= 1 (K = 2*Hp per step).
    wcat_vals = [None] + [wcat_ref[l] for l in range(1, L)]
    b_vals = [None] + [blstm_ref[l] for l in range(1, L)]

    def sigmoid(v):
        # single EUP tanh instead of exp+reciprocal
        return 0.5 * jnp.tanh(0.5 * v) + 0.5

    def lstm_cell(gates, c):
        # gate order [i | f | o | g]: one contiguous sigmoid block, one tanh.
        sig = sigmoid(gates[:, :3 * Hp])
        i = sig[:, 0 * Hp:1 * Hp]
        f = sig[:, 1 * Hp:2 * Hp]
        o = sig[:, 2 * Hp:3 * Hp]
        g = jnp.tanh(gates[:, 3 * Hp:4 * Hp])
        c_new = f * c + i * g
        h_new = o * jnp.tanh(c_new)
        return h_new, c_new

    def wave_step(s, hs, cs, layers):
        """One wavefront step: layer l advances to time t = s - l.

        All reads use pre-step values, so the per-layer matmuls within a step
        are mutually independent (the scheduler can overlap them)."""
        new = {}
        for l in layers:
            if l == 0:
                gates = (gx_ref[s].astype(f32)
                         + jnp.dot(hs[0].astype(bf16), whh0,
                                   preferred_element_type=f32))
            else:
                lhs = jnp.concatenate([hs[l - 1], hs[l]], axis=-1).astype(bf16)
                gates = (jnp.dot(lhs, wcat_vals[l],
                                 preferred_element_type=f32) + b_vals[l])
            new[l] = lstm_cell(gates, cs[l])
        hs = list(hs)
        cs = list(cs)
        for l in layers:
            hs[l], cs[l] = new[l]
        return hs, cs

    hs = [h0_ref[l] for l in range(L)]
    cs = [c0_ref[l] for l in range(L)]

    # ---- ramp-up (static, < L-1 steps): only the leading layers are active ----
    for s in range(L - 1):
        layers = [l for l in range(L) if 0 <= s - l < T]
        if layers:
            hs, cs = wave_step(s, hs, cs, layers)

    # ---- steady state: all L layers active; capped unroll (not full) ----
    if T >= L:
        def body(s, carry):
            h_t, c_t = carry
            h_n, c_n = wave_step(s, list(h_t), list(c_t), list(range(L)))
            return (tuple(h_n), tuple(c_n))

        unroll = min(8, T - L + 1)
        h_t, c_t = lax.fori_loop(L - 1, T, body, (tuple(hs), tuple(cs)),
                                 unroll=unroll)
        hs, cs = list(h_t), list(c_t)

    # ---- ramp-down (static, < L-1 steps): drain the tail of the wavefront ----
    for s in range(max(L - 1, T), T + L - 1):
        layers = [l for l in range(L) if 0 <= s - l < T]
        if layers:
            hs, cs = wave_step(s, hs, cs, layers)

    for l in range(L):
        hN_ref[l] = hs[l]
        cN_ref[l] = cs[l]

    # ---- final fc on the last timestep of the top layer ----
    out_ref[...] = (jnp.dot(hs[L - 1].astype(bf16), wfc_ref[...],
                            preferred_element_type=f32) + bfc_ref[...])


# ----------------------------------------------------------------------------
# Wrapper: gate repack, lane/sublane padding, bf16 casts, pallas_call, unpad
# ----------------------------------------------------------------------------
def _repack_gate_axis(w, H, Hp):
    """Last axis: PyTorch gate order [i|f|g|o] (each H wide) ->
    padded [i|f|o|g] (each Hp wide, zero-padded)."""
    i = w[..., 0 * H:1 * H]
    f = w[..., 1 * H:2 * H]
    g = w[..., 2 * H:3 * H]
    o = w[..., 3 * H:4 * H]

    def pad_last(b):
        pad = [(0, 0)] * (b.ndim - 1) + [(0, Hp - H)]
        return jnp.pad(b, pad)

    return jnp.concatenate(
        [pad_last(i), pad_last(f), pad_last(o), pad_last(g)], axis=-1)


def lstm_predictor_forward(x, hidden, params):
    """x: (B, T, Din) f32, hidden: ((L,B,H), (L,B,H)). Returns (out, (hN, cN))."""
    h0, c0 = hidden
    B, T, Din = x.shape
    L, _, H = h0.shape
    O = params["w_fc"].shape[1]

    Hp = _round_up(H, 128)
    Bp = _round_up(B, 8)
    Op = _round_up(O, 128)
    bf16 = jnp.bfloat16

    # ---- repack / pad parameters (bf16 matmul operands, f32 biases) ----
    w_pre = jnp.pad(params["w_pre"], ((0, 0), (0, Hp - H))).astype(bf16)
    b_pre = jnp.pad(params["b_pre"], ((0, 0), (0, Hp - H)))
    w_ih = jnp.pad(_repack_gate_axis(params["w_ih"], H, Hp),
                   ((0, 0), (0, Hp - H), (0, 0)))
    w_hh = jnp.pad(_repack_gate_axis(params["w_hh"], H, Hp),
                   ((0, 0), (0, Hp - H), (0, 0)))
    w_cat = jnp.concatenate([w_ih, w_hh], axis=1).astype(bf16)   # (L, 2Hp, 4Hp)
    b_lstm = _repack_gate_axis(params["b_lstm"], H, Hp)          # (L, 1, 4Hp) f32
    w_fc = jnp.pad(params["w_fc"], ((0, Hp - H), (0, Op - O))).astype(bf16)
    b_fc = jnp.pad(params["b_fc"], ((0, 0), (0, Op - O)))

    # ---- pad activations / states; time-major input ----
    # TODO(synk): for very large T*B, do pre_fc in plain XLA and feed the (T,B,H)
    # sequence directly (K=Din is tiny and its lane padding wastes VMEM).
    x_tm = jnp.pad(jnp.transpose(x, (1, 0, 2)),
                   ((0, 0), (0, Bp - B), (0, 0))).astype(bf16)
    h0_p = jnp.pad(h0, ((0, 0), (0, Bp - B), (0, Hp - H)))   # fresh copies: safe
    c0_p = jnp.pad(c0, ((0, 0), (0, Bp - B), (0, Hp - H)))   # to donate/alias

    # ---- cost estimate + VMEM budget ----
    flops = (2 * T * Bp * Din * Hp                      # pre_fc
             + 2 * T * Bp * Hp * 4 * Hp                 # hoisted layer-0 x@W_ih
             + 2 * T * Bp * Hp * 4 * Hp                 # layer-0 recurrence
             + (L - 1) * 2 * T * Bp * (2 * Hp) * 4 * Hp  # fused layers >= 1
             + 2 * Bp * Hp * Op)                        # fc
    transcendentals = L * T * Bp * 5 * Hp
    in_arrays = (x_tm, h0_p, c0_p, w_pre, b_pre, w_cat, b_lstm, w_fc, b_fc)
    in_bytes = sum(int(a.size) * a.dtype.itemsize for a in in_arrays)
    out_bytes = 4 * (Bp * Op + 2 * L * Bp * Hp)
    scratch_bytes = T * Bp * 4 * Hp * 2                 # gx scratch, bf16
    bytes_accessed = in_bytes + out_bytes
    vmem_limit = int(min(100 * 1024 * 1024,
                         max(16 * 1024 * 1024,
                             2 * (in_bytes + out_bytes + scratch_bytes)
                             + (4 << 20))))

    vmem = pl.BlockSpec(memory_space=pltpu.MemorySpace.VMEM)
    out_p, hN_p, cN_p = pl.pallas_call(
        _lstm_predictor_kernel,
        out_shape=(
            jax.ShapeDtypeStruct((Bp, Op), jnp.float32),
            jax.ShapeDtypeStruct((L, Bp, Hp), jnp.float32),
            jax.ShapeDtypeStruct((L, Bp, Hp), jnp.float32),
        ),
        in_specs=[vmem] * 9,
        out_specs=(vmem, vmem, vmem),
        scratch_shapes=[
            pltpu.VMEM((T, Bp, 4 * Hp), jnp.bfloat16),   # hoisted x@W_ih (+bias)
        ],
        input_output_aliases={1: 1, 2: 2},               # h0 -> hN, c0 -> cN
        compiler_params=pltpu.CompilerParams(vmem_limit_bytes=vmem_limit),
        cost_estimate=pl.CostEstimate(flops=flops,
                                      transcendentals=transcendentals,
                                      bytes_accessed=bytes_accessed),
    )(x_tm, h0_p, c0_p, w_pre, b_pre, w_cat, b_lstm, w_fc, b_fc)

    out = out_p[:B, :O]
    hN = hN_p[:, :B, :H]
    cN = cN_p[:, :B, :H]
    return out, (hN, cN)


# ----------------------------------------------------------------------------
# Pure-JAX f32 reference (same math, PyTorch gate order) for correctness check
# ----------------------------------------------------------------------------
def reference_forward(x, hidden, params):
    h0, c0 = hidden
    L, _, H = h0.shape
    pre = jax.nn.relu(x @ params["w_pre"] + params["b_pre"][0])   # (B, T, H)
    seq = jnp.transpose(pre, (1, 0, 2))                           # (T, B, H)
    hs, cs = [], []
    for layer in range(L):
        w_ih = params["w_ih"][layer]
        w_hh = params["w_hh"][layer]
        b = params["b_lstm"][layer, 0]

        def step(carry, x_t, w_ih=w_ih, w_hh=w_hh, b=b):
            h, c = carry
            g = x_t @ w_ih + h @ w_hh + b
            i = jax.nn.sigmoid(g[:, 0 * H:1 * H])
            f = jax.nn.sigmoid(g[:, 1 * H:2 * H])
            gg = jnp.tanh(g[:, 2 * H:3 * H])
            o = jax.nn.sigmoid(g[:, 3 * H:4 * H])
            c = f * c + i * gg
            h = o * jnp.tanh(c)
            return (h, c), h

        (h_l, c_l), seq = lax.scan(step, (h0[layer], c0[layer]), seq)
        hs.append(h_l)
        cs.append(c_l)
    out = hs[-1] @ params["w_fc"] + params["b_fc"][0]
    return out, (jnp.stack(hs), jnp.stack(cs))


# ----------------------------------------------------------------------------
# Deterministic parameter init (PyTorch-style U(-1/sqrt(H), 1/sqrt(H)))
# ----------------------------------------------------------------------------
def init_params(key, input_dim, hidden_dim, output_dim, n_layers):
    H = hidden_dim
    k = 1.0 / jnp.sqrt(jnp.float32(H))
    keys = jax.random.split(key, 8)

    def u(kk, shape, bound):
        return jax.random.uniform(kk, shape, jnp.float32, -bound, bound)

    k_pre = 1.0 / jnp.sqrt(jnp.float32(input_dim))
    params = {
        "w_pre": u(keys[0], (input_dim, H), k_pre),
        "b_pre": u(keys[1], (1, H), k_pre),
        # gate order [i | f | g | o] (PyTorch); repacked inside the wrapper
        "w_ih": u(keys[2], (n_layers, H, 4 * H), k),
        "w_hh": u(keys[3], (n_layers, H, 4 * H), k),
        # combined b_ih + b_hh
        "b_lstm": (u(keys[4], (n_layers, 1, 4 * H), k)
                   + u(keys[5], (n_layers, 1, 4 * H), k)),
        "w_fc": u(keys[6], (H, output_dim), k),
        "b_fc": u(keys[7], (1, output_dim), k),
    }
    return params


if __name__ == "__main__":
    B, T = 2, 8
    input_dim, hidden_dim, output_dim, n_layers = 4, 32, 2, 2

    root = jax.random.PRNGKey(0)
    k_x, k_p = jax.random.split(root)

    x = jax.random.normal(k_x, (B, T, input_dim), jnp.float32)
    h0 = jnp.zeros((n_layers, B, hidden_dim), jnp.float32)   # init_hidden()
    c0 = jnp.zeros((n_layers, B, hidden_dim), jnp.float32)
    params = init_params(k_p, input_dim, hidden_dim, output_dim, n_layers)

    forward = jax.jit(lstm_predictor_forward)
    out, (hN, cN) = forward(x, (h0, c0), params)
    jax.block_until_ready((out, hN, cN))

    ref_out, (ref_h, ref_c) = reference_forward(x, (h0, c0), params)
    # Tolerances relaxed vs. the f32 reference because matmul operands are bf16.
    assert jnp.allclose(out, ref_out, atol=5e-2, rtol=5e-2)
    assert jnp.allclose(hN, ref_h, atol=5e-2, rtol=5e-2)
    assert jnp.allclose(cN, ref_c, atol=5e-2, rtol=5e-2)

    print("KERNEL_OK")
</pallas_src>

<mosaic_0001>
module attributes {stable_mosaic.version = 11 : i64} {
  func.func @_lstm_predictor_kernel(%arg0: memref<8x8x4xbf16, #tpu.memory_space<vmem>>, %arg1: memref<2x8x128xf32, #tpu.memory_space<vmem>>, %arg2: memref<2x8x128xf32, #tpu.memory_space<vmem>>, %arg3: memref<4x128xbf16, #tpu.memory_space<vmem>>, %arg4: memref<1x128xf32, #tpu.memory_space<vmem>>, %arg5: memref<2x256x512xbf16, #tpu.memory_space<vmem>>, %arg6: memref<2x1x512xf32, #tpu.memory_space<vmem>>, %arg7: memref<128x128xbf16, #tpu.memory_space<vmem>>, %arg8: memref<1x128xf32, #tpu.memory_space<vmem>>, %arg9: memref<8x128xf32, #tpu.memory_space<vmem>>, %arg10: memref<2x8x128xf32, #tpu.memory_space<vmem>>, %arg11: memref<2x8x128xf32, #tpu.memory_space<vmem>>, %arg12: memref<8x8x512xbf16, #tpu.memory_space<vmem>>) attributes {dimension_semantics = [], scalar_prefetch = 0 : i64, scratch_operands = 1 : i64, tpu.core_type = #tpu.core_type<tc>} {
    %c0 = arith.constant 0 : index
    %c0_0 = arith.constant 0 : index
    %c0_1 = arith.constant 0 : index
    %0 = vector.load %arg0[%c0, %c0_0, %c0_1] : memref<8x8x4xbf16, #tpu.memory_space<vmem>>, vector<8x8x4xbf16>
    %1 = vector.shape_cast %0 : vector<8x8x4xbf16> to vector<64x4xbf16>
    %c0_2 = arith.constant 0 : index
    %c0_3 = arith.constant 0 : index
    %2 = vector.load %arg3[%c0_2, %c0_3] : memref<4x128xbf16, #tpu.memory_space<vmem>>, vector<4x128xbf16>
    %cst = arith.constant dense<0.000000e+00> : vector<64x128xf32>
    %3 = tpu.matmul %1, %2, %cst {dimension_numbers = #tpu.dot_dimension_numbers<[1], [0], [0], [1], [0, 0, 1, 1], [], []>} : vector<64x4xbf16>, vector<4x128xbf16>, vector<64x128xf32> -> vector<64x128xf32>
    %c0_4 = arith.constant 0 : index
    %c0_5 = arith.constant 0 : index
    %4 = vector.load %arg4[%c0_4, %c0_5] : memref<1x128xf32, #tpu.memory_space<vmem>>, vector<1x128xf32>
    %5 = vector.broadcast %4 : vector<1x128xf32> to vector<64x128xf32>
    %6 = arith.addf %3, %5 : vector<64x128xf32>
    %cst_6 = arith.constant 0.000000e+00 : f32
    %7 = vector.broadcast %cst_6 : f32 to vector<64x128xf32>
    %8 = arith.maximumf %6, %7 : vector<64x128xf32>
    %c0_7 = arith.constant 0 : index
    %c0_8 = arith.constant 0 : index
    %c0_9 = arith.constant 0 : index
    %9 = vector.load %arg5[%c0_7, %c0_8, %c0_9] : memref<2x256x512xbf16, #tpu.memory_space<vmem>>, vector<1x256x512xbf16>
    %10 = vector.shape_cast %9 : vector<1x256x512xbf16> to vector<256x512xbf16>
    %11 = vector.extract_strided_slice %10 {offsets = [0, 0], sizes = [128, 512], strides = [1, 1]} : vector<256x512xbf16> to vector<128x512xbf16>
    %12 = vector.extract_strided_slice %10 {offsets = [128, 0], sizes = [128, 512], strides = [1, 1]} : vector<256x512xbf16> to vector<128x512xbf16>
    %13 = arith.truncf %8 : vector<64x128xf32> to vector<64x128xbf16>
    %cst_10 = arith.constant dense<0.000000e+00> : vector<64x512xf32>
    %14 = tpu.matmul %13, %11, %cst_10 {dimension_numbers = #tpu.dot_dimension_numbers<[1], [0], [0], [1], [0, 0, 1, 1], [], []>} : vector<64x128xbf16>, vector<128x512xbf16>, vector<64x512xf32> -> vector<64x512xf32>
    %c0_11 = arith.constant 0 : index
    %c0_12 = arith.constant 0 : index
    %c0_13 = arith.constant 0 : index
    %15 = vector.load %arg6[%c0_11, %c0_12, %c0_13] : memref<2x1x512xf32, #tpu.memory_space<vmem>>, vector<1x1x512xf32>
    %16 = vector.shape_cast %15 : vector<1x1x512xf32> to vector<1x512xf32>
    %17 = vector.broadcast %16 : vector<1x512xf32> to vector<64x512xf32>
    %18 = arith.addf %14, %17 : vector<64x512xf32>
    %19 = vector.shape_cast %18 : vector<64x512xf32> to vector<8x8x512xf32>
    %20 = arith.truncf %19 : vector<8x8x512xf32> to vector<8x8x512xbf16>
    %c0_14 = arith.constant 0 : index
    %c0_15 = arith.constant 0 : index
    %c0_16 = arith.constant 0 : index
    %21 = vector.load %arg12[%c0_14, %c0_15, %c0_16] : memref<8x8x512xbf16, #tpu.memory_space<vmem>>, vector<8x8x512xbf16>
    tpu.vector_store %arg12[%c0_14, %c0_15, %c0_16], %20 {strides = array<i32>} : memref<8x8x512xbf16, #tpu.memory_space<vmem>>, vector<8x8x512xbf16>,
    %c1 = arith.constant 1 : index
    %c0_17 = arith.constant 0 : index
    %c0_18 = arith.constant 0 : index
    %22 = vector.load %arg5[%c1, %c0_17, %c0_18] : memref<2x256x512xbf16, #tpu.memory_space<vmem>>, vector<1x256x512xbf16>
    %23 = vector.shape_cast %22 : vector<1x256x512xbf16> to vector<256x512xbf16>
    %c1_19 = arith.constant 1 : index
    %c0_20 = arith.constant 0 : index
    %c0_21 = arith.constant 0 : index
    %24 = vector.load %arg6[%c1_19, %c0_20, %c0_21] : memref<2x1x512xf32, #tpu.memory_space<vmem>>, vector<1x1x512xf32>
    %25 = vector.shape_cast %24 : vector<1x1x512xf32> to vector<1x512xf32>
    %c0_22 = arith.constant 0 : index
    %c0_23 = arith.constant 0 : index
    %c0_24 = arith.constant 0 : index
    %26 = vector.load %arg1[%c0_22, %c0_23, %c0_24] : memref<2x8x128xf32, #tpu.memory_space<vmem>>, vector<1x8x128xf32>
    %27 = vector.shape_cast %26 : vector<1x8x128xf32> to vector<8x128xf32>
    %c1_25 = arith.constant 1 : index
    %c0_26 = arith.constant 0 : index
    %c0_27 = arith.constant 0 : index
    %28 = vector.load %arg1[%c1_25, %c0_26, %c0_27] : memref<2x8x128xf32, #tpu.memory_space<vmem>>, vector<1x8x128xf32>
    %29 = vector.shape_cast %28 : vector<1x8x128xf32> to vector<8x128xf32>
    %c0_28 = arith.constant 0 : index
    %c0_29 = arith.constant 0 : index
    %c0_30 = arith.constant 0 : index
    %30 = vector.load %arg2[%c0_28, %c0_29, %c0_30] : memref<2x8x128xf32, #tpu.memory_space<vmem>>, vector<1x8x128xf32>
    %31 = vector.shape_cast %30 : vector<1x8x128xf32> to vector<8x128xf32>
    %c1_31 = arith.constant 1 : index
    %c0_32 = arith.constant 0 : index
    %c0_33 = arith.constant 0 : index
    %32 = vector.load %arg2[%c1_31, %c0_32, %c0_33] : memref<2x8x128xf32, #tpu.memory_space<vmem>>, vector<1x8x128xf32>
    %33 = vector.shape_cast %32 : vector<1x8x128xf32> to vector<8x128xf32>
    %c0_34 = arith.constant 0 : index
    %c0_35 = arith.constant 0 : index
    %c0_36 = arith.constant 0 : index
    %34 = vector.load %arg12[%c0_34, %c0_35, %c0_36] : memref<8x8x512xbf16, #tpu.memory_space<vmem>>, vector<1x8x512xbf16>
    %35 = vector.shape_cast %34 : vector<1x8x512xbf16> to vector<8x512xbf16>
    %36 = arith.extf %35 : vector<8x512xbf16> to vector<8x512xf32>
    %37 = arith.truncf %27 : vector<8x128xf32> to vector<8x128xbf16>
    %cst_37 = arith.constant dense<0.000000e+00> : vector<8x512xf32>
    %38 = tpu.matmul %37, %12, %cst_37 {dimension_numbers = #tpu.dot_dimension_numbers<[1], [0], [0], [1], [0, 0, 1, 1], [], []>} : vector<8x128xbf16>, vector<128x512xbf16>, vector<8x512xf32> -> vector<8x512xf32>
    %39 = arith.addf %36, %38 : vector<8x512xf32>
    %40 = vector.extract_strided_slice %39 {offsets = [0, 0], sizes = [8, 384], strides = [1, 1]} : vector<8x512xf32> to vector<8x384xf32>
    %cst_38 = arith.constant 5.000000e-01 : f32
    %41 = vector.broadcast %cst_38 : f32 to vector<8x384xf32>
    %42 = arith.mulf %41, %40 : vector<8x384xf32>
    %43 = math.tanh %42 : vector<8x384xf32>
    %cst_39 = arith.constant 5.000000e-01 : f32
    %44 = vector.broadcast %cst_39 : f32 to vector<8x384xf32>
    %45 = arith.mulf %44, %43 : vector<8x384xf32>
    %cst_40 = arith.constant 5.000000e-01 : f32
    %46 = vector.broadcast %cst_40 : f32 to vector<8x384xf32>
    %47 = arith.addf %45, %46 : vector<8x384xf32>
    %48 = vector.extract_strided_slice %47 {offsets = [0, 0], sizes = [8, 128], strides = [1, 1]} : vector<8x384xf32> to vector<8x128xf32>
    %49 = vector.extract_strided_slice %47 {offsets = [0, 128], sizes = [8, 128], strides = [1, 1]} : vector<8x384xf32> to vector<8x128xf32>
    %50 = vector.extract_strided_slice %47 {offsets = [0, 256], sizes = [8, 128], strides = [1, 1]} : vector<8x384xf32> to vector<8x128xf32>
    %51 = vector.extract_strided_slice %39 {offsets = [0, 384], sizes = [8, 128], strides = [1, 1]} : vector<8x512xf32> to vector<8x128xf32>
    %52 = math.tanh %51 : vector<8x128xf32>
    %53 = arith.mulf %49, %31 : vector<8x128xf32>
    %54 = arith.mulf %48, %52 : vector<8x128xf32>
    %55 = arith.addf %53, %54 : vector<8x128xf32>
    %56 = math.tanh %55 : vector<8x128xf32>
    %57 = arith.mulf %50, %56 : vector<8x128xf32>
    %c1_i32 = arith.constant 1 : i32
    %58 = arith.index_cast %c1_i32 : i32 to index
    %c0_41 = arith.constant 0 : index
    %c0_42 = arith.constant 0 : index
    %59 = vector.load %arg12[%58, %c0_41, %c0_42] : memref<8x8x512xbf16, #tpu.memory_space<vmem>>, vector<1x8x512xbf16>
    %60 = vector.shape_cast %59 : vector<1x8x512xbf16> to vector<8x512xbf16>
    %61 = arith.extf %60 : vector<8x512xbf16> to vector<8x512xf32>
    %62 = arith.truncf %57 : vector<8x128xf32> to vector<8x128xbf16>
    %cst_43 = arith.constant dense<0.000000e+00> : vector<8x512xf32>
    %63 = tpu.matmul %62, %12, %cst_43 {dimension_numbers = #tpu.dot_dimension_numbers<[1], [0], [0], [1], [0, 0, 1, 1], [], []>} : vector<8x128xbf16>, vector<128x512xbf16>, vector<8x512xf32> -> vector<8x512xf32>
    %64 = arith.addf %61, %63 : vector<8x512xf32>
    %65 = vector.extract_strided_slice %64 {offsets = [0, 0], sizes = [8, 384], strides = [1, 1]} : vector<8x512xf32> to vector<8x384xf32>
    %cst_44 = arith.constant 5.000000e-01 : f32
    %66 = vector.broadcast %cst_44 : f32 to vector<8x384xf32>
    %67 = arith.mulf %66, %65 : vector<8x384xf32>
    %68 = math.tanh %67 : vector<8x384xf32>
    %cst_45 = arith.constant 5.000000e-01 : f32
    %69 = vector.broadcast %cst_45 : f32 to vector<8x384xf32>
    %70 = arith.mulf %69, %68 : vector<8x384xf32>
    %cst_46 = arith.constant 5.000000e-01 : f32
    %71 = vector.broadcast %cst_46 : f32 to vector<8x384xf32>
    %72 = arith.addf %70, %71 : vector<8x384xf32>
    %73 = vector.extract_strided_slice %72 {offsets = [0, 0], sizes = [8, 128], strides = [1, 1]} : vector<8x384xf32> to vector<8x128xf32>
    %74 = vector.extract_strided_slice %72 {offsets = [0, 128], sizes = [8, 128], strides = [1, 1]} : vector<8x384xf32> to vector<8x128xf32>
    %75 = vector.extract_strided_slice %72 {offsets = [0, 256], sizes = [8, 128], strides = [1, 1]} : vector<8x384xf32> to vector<8x128xf32>
    %76 = vector.extract_strided_slice %64 {offsets = [0, 384], sizes = [8, 128], strides = [1, 1]} : vector<8x512xf32> to vector<8x128xf32>
    %77 = math.tanh %76 : vector<8x128xf32>
    %78 = arith.mulf %74, %55 : vector<8x128xf32>
    %79 = arith.mulf %73, %77 : vector<8x128xf32>
    %80 = arith.addf %78, %79 : vector<8x128xf32>
    %81 = math.tanh %80 : vector<8x128xf32>
    %82 = arith.mulf %75, %81 : vector<8x128xf32>
    %83 = tpu.concatenate %57, %29 in 1 : vector<8x128xf32>, vector<8x128xf32> -> vector<8x256xf32>
    %84 = arith.truncf %83 : vector<8x256xf32> to vector<8x256xbf16>
    %cst_47 = arith.constant dense<0.000000e+00> : vector<8x512xf32>
    %85 = tpu.matmul %84, %23, %cst_47 {dimension_numbers = #tpu.dot_dimension_numbers<[1], [0], [0], [1], [0, 0, 1, 1], [], []>} : vector<8x256xbf16>, vector<256x512xbf16>, vector<8x512xf32> -> vector<8x512xf32>
    %86 = vector.broadcast %25 : vector<1x512xf32> to vector<8x512xf32>
    %87 = arith.addf %85, %86 : vector<8x512xf32>
    %88 = vector.extract_strided_slice %87 {offsets = [0, 0], sizes = [8, 384], strides = [1, 1]} : vector<8x512xf32> to vector<8x384xf32>
    %cst_48 = arith.constant 5.000000e-01 : f32
    %89 = vector.broadcast %cst_48 : f32 to vector<8x384xf32>
    %90 = arith.mulf %89, %88 : vector<8x384xf32>
    %91 = math.tanh %90 : vector<8x384xf32>
    %cst_49 = arith.constant 5.000000e-01 : f32
    %92 = vector.broadcast %cst_49 : f32 to vector<8x384xf32>
    %93 = arith.mulf %92, %91 : vector<8x384xf32>
    %cst_50 = arith.constant 5.000000e-01 : f32
    %94 = vector.broadcast %cst_50 : f32 to vector<8x384xf32>
    %95 = arith.addf %93, %94 : vector<8x384xf32>
    %96 = vector.extract_strided_slice %95 {offsets = [0, 0], sizes = [8, 128], strides = [1, 1]} : vector<8x384xf32> to vector<8x128xf32>
    %97 = vector.extract_strided_slice %95 {offsets = [0, 128], sizes = [8, 128], strides = [1, 1]} : vector<8x384xf32> to vector<8x128xf32>
    %98 = vector.extract_strided_slice %95 {offsets = [0, 256], sizes = [8, 128], strides = [1, 1]} : vector<8x384xf32> to vector<8x128xf32>
    %99 = vector.extract_strided_slice %87 {offsets = [0, 384], sizes = [8, 128], strides = [1, 1]} : vector<8x512xf32> to vector<8x128xf32>
    %100 = math.tanh %99 : vector<8x128xf32>
    %101 = arith.mulf %97, %33 : vector<8x128xf32>
    %102 = arith.mulf %96, %100 : vector<8x128xf32>
    %103 = arith.addf %101, %102 : vector<8x128xf32>
    %104 = math.tanh %103 : vector<8x128xf32>
    %105 = arith.mulf %98, %104 : vector<8x128xf32>
    %c2_i32 = arith.constant 2 : i32
    %106 = arith.index_cast %c2_i32 : i32 to index
    %c0_51 = arith.constant 0 : index
    %c0_52 = arith.constant 0 : index
    %107 = vector.load %arg12[%106, %c0_51, %c0_52] : memref<8x8x512xbf16, #tpu.memory_space<vmem>>, vector<1x8x512xbf16>
    %108 = vector.shape_cast %107 : vector<1x8x512xbf16> to vector<8x512xbf16>
    %109 = arith.extf %108 : vector<8x512xbf16> to vector<8x512xf32>
    %110 = arith.truncf %82 : vector<8x128xf32> to vector<8x128xbf16>
    %cst_53 = arith.constant dense<0.000000e+00> : vector<8x512xf32>
    %111 = tpu.matmul %110, %12, %cst_53 {dimension_numbers = #tpu.dot_dimension_numbers<[1], [0], [0], [1], [0, 0, 1, 1], [], []>} : vector<8x128xbf16>, vector<128x512xbf16>, vector<8x512xf32> -> vector<8x512xf32>
    %112 = arith.addf %109, %111 : vector<8x512xf32>
    %113 = vector.extract_strided_slice %112 {offsets = [0, 0], sizes = [8, 384], strides = [1, 1]} : vector<8x512xf32> to vector<8x384xf32>
    %cst_54 = arith.constant 5.000000e-01 : f32
    %114 = vector.broadcast %cst_54 : f32 to vector<8x384xf32>
    %115 = arith.mulf %114, %113 : vector<8x384xf32>
    %116 = math.tanh %115 : vector<8x384xf32>
    %cst_55 = arith.constant 5.000000e-01 : f32
    %117 = vector.broadcast %cst_55 : f32 to vector<8x384xf32>
    %118 = arith.mulf %117, %116 : vector<8x384xf32>
    %cst_56 = arith.constant 5.000000e-01 : f32
    %119 = vector.broadcast %cst_56 : f32 to vector<8x384xf32>
    %120 = arith.addf %118, %119 : vector<8x384xf32>
    %121 = vector.extract_strided_slice %120 {offsets = [0, 0], sizes = [8, 128], strides = [1, 1]} : vector<8x384xf32> to vector<8x128xf32>
    %122 = vector.extract_strided_slice %120 {offsets = [0, 128], sizes = [8, 128], strides = [1, 1]} : vector<8x384xf32> to vector<8x128xf32>
    %123 = vector.extract_strided_slice %120 {offsets = [0, 256], sizes = [8, 128], strides = [1, 1]} : vector<8x384xf32> to vector<8x128xf32>
    %124 = vector.extract_strided_slice %112 {offsets = [0, 384], sizes = [8, 128], strides = [1, 1]} : vector<8x512xf32> to vector<8x128xf32>
    %125 = math.tanh %124 : vector<8x128xf32>
    %126 = arith.mulf %122, %80 : vector<8x128xf32>
    %127 = arith.mulf %121, %125 : vector<8x128xf32>
    %128 = arith.addf %126, %127 : vector<8x128xf32>
    %129 = math.tanh %128 : vector<8x128xf32>
    %130 = arith.mulf %123, %129 : vector<8x128xf32>
    %131 = tpu.concatenate %82, %105 in 1 : vector<8x128xf32>, vector<8x128xf32> -> vector<8x256xf32>
    %132 = arith.truncf %131 : vector<8x256xf32> to vector<8x256xbf16>
    %cst_57 = arith.constant dense<0.000000e+00> : vector<8x512xf32>
    %133 = tpu.matmul %132, %23, %cst_57 {dimension_numbers = #tpu.dot_dimension_numbers<[1], [0], [0], [1], [0, 0, 1, 1], [], []>} : vector<8x256xbf16>, vector<256x512xbf16>, vector<8x512xf32> -> vector<8x512xf32>
    %134 = vector.broadcast %25 : vector<1x512xf32> to vector<8x512xf32>
    %135 = arith.addf %133, %134 : vector<8x512xf32>
    %136 = vector.extract_strided_slice %135 {offsets = [0, 0], sizes = [8, 384], strides = [1, 1]} : vector<8x512xf32> to vector<8x384xf32>
    %cst_58 = arith.constant 5.000000e-01 : f32
    %137 = vector.broadcast %cst_58 : f32 to vector<8x384xf32>
    %138 = arith.mulf %137, %136 : vector<8x384xf32>
    %139 = math.tanh %138 : vector<8x384xf32>
    %cst_59 = arith.constant 5.000000e-01 : f32
    %140 = vector.broadcast %cst_59 : f32 to vector<8x384xf32>
    %141 = arith.mulf %140, %139 : vector<8x384xf32>
    %cst_60 = arith.constant 5.000000e-01 : f32
    %142 = vector.broadcast %cst_60 : f32 to vector<8x384xf32>
    %143 = arith.addf %141, %142 : vector<8x384xf32>
    %144 = vector.extract_strided_slice %143 {offsets = [0, 0], sizes = [8, 128], strides = [1, 1]} : vector<8x384xf32> to vector<8x128xf32>
    %145 = vector.extract_strided_slice %143 {offsets = [0, 128], sizes = [8, 128], strides = [1, 1]} : vector<8x384xf32> to vector<8x128xf32>
    %146 = vector.extract_strided_slice %143 {offsets = [0, 256], sizes = [8, 128], strides = [1, 1]} : vector<8x384xf32> to vector<8x128xf32>
    %147 = vector.extract_strided_slice %135 {offsets = [0, 384], sizes = [8, 128], strides = [1, 1]} : vector<8x512xf32> to vector<8x128xf32>
    %148 = math.tanh %147 : vector<8x128xf32>
    %149 = arith.mulf %145, %103 : vector<8x128xf32>
    %150 = arith.mulf %144, %148 : vector<8x128xf32>
    %151 = arith.addf %149, %150 : vector<8x128xf32>
    %152 = math.tanh %151 : vector<8x128xf32>
    %153 = arith.mulf %146, %152 : vector<8x128xf32>
    %c3_i32 = arith.constant 3 : i32
    %154 = arith.index_cast %c3_i32 : i32 to index
    %c0_61 = arith.constant 0 : index
    %c0_62 = arith.constant 0 : index
    %155 = vector.load %arg12[%154, %c0_61, %c0_62] : memref<8x8x512xbf16, #tpu.memory_space<vmem>>, vector<1x8x512xbf16>
    %156 = vector.shape_cast %155 : vector<1x8x512xbf16> to vector<8x512xbf16>
    %157 = arith.extf %156 : vector<8x512xbf16> to vector<8x512xf32>
    %158 = arith.truncf %130 : vector<8x128xf32> to vector<8x128xbf16>
    %cst_63 = arith.constant dense<0.000000e+00> : vector<8x512xf32>
    %159 = tpu.matmul %158, %12, %cst_63 {dimension_numbers = #tpu.dot_dimension_numbers<[1], [0], [0], [1], [0, 0, 1, 1], [], []>} : vector<8x128xbf16>, vector<128x512xbf16>, vector<8x512xf32> -> vector<8x512xf32>
    %160 = arith.addf %157, %159 : vector<8x512xf32>
    %161 = vector.extract_strided_slice %160 {offsets = [0, 0], sizes = [8, 384], strides = [1, 1]} : vector<8x512xf32> to vector<8x384xf32>
    %cst_64 = arith.constant 5.000000e-01 : f32
    %162 = vector.broadcast %cst_64 : f32 to vector<8x384xf32>
    %163 = arith.mulf %162, %161 : vector<8x384xf32>
    %164 = math.tanh %163 : vector<8x384xf32>
    %cst_65 = arith.constant 5.000000e-01 : f32
    %165 = vector.broadcast %cst_65 : f32 to vector<8x384xf32>
    %166 = arith.mulf %165, %164 : vector<8x384xf32>
    %cst_66 = arith.constant 5.000000e-01 : f32
    %167 = vector.broadcast %cst_66 : f32 to vector<8x384xf32>
    %168 = arith.addf %166, %167 : vector<8x384xf32>
    %169 = vector.extract_strided_slice %168 {offsets = [0, 0], sizes = [8, 128], strides = [1, 1]} : vector<8x384xf32> to vector<8x128xf32>
    %170 = vector.extract_strided_slice %168 {offsets = [0, 128], sizes = [8, 128], strides = [1, 1]} : vector<8x384xf32> to vector<8x128xf32>
    %171 = vector.extract_strided_slice %168 {offsets = [0, 256], sizes = [8, 128], strides = [1, 1]} : vector<8x384xf32> to vector<8x128xf32>
    %172 = vector.extract_strided_slice %160 {offsets = [0, 384], sizes = [8, 128], strides = [1, 1]} : vector<8x512xf32> to vector<8x128xf32>
    %173 = math.tanh %172 : vector<8x128xf32>
    %174 = arith.mulf %170, %128 : vector<8x128xf32>
    %175 = arith.mulf %169, %173 : vector<8x128xf32>
    %176 = arith.addf %174, %175 : vector<8x128xf32>
    %177 = math.tanh %176 : vector<8x128xf32>
    %178 = arith.mulf %171, %177 : vector<8x128xf32>
    %179 = tpu.concatenate %130, %153 in 1 : vector<8x128xf32>, vector<8x128xf32> -> vector<8x256xf32>
    %180 = arith.truncf %179 : vector<8x256xf32> to vector<8x256xbf16>
    %cst_67 = arith.constant dense<0.000000e+00> : vector<8x512xf32>
    %181 = tpu.matmul %180, %23, %cst_67 {dimension_numbers = #tpu.dot_dimension_numbers<[1], [0], [0], [1], [0, 0, 1, 1], [], []>} : vector<8x256xbf16>, vector<256x512xbf16>, vector<8x512xf32> -> vector<8x512xf32>
    %182 = vector.broadcast %25 : vector<1x512xf32> to vector<8x512xf32>
    %183 = arith.addf %181, %182 : vector<8x512xf32>
    %184 = vector.extract_strided_slice %183 {offsets = [0, 0], sizes = [8, 384], strides = [1, 1]} : vector<8x512xf32> to vector<8x384xf32>
    %cst_68 = arith.constant 5.000000e-01 : f32
    %185 = vector.broadcast %cst_68 : f32 to vector<8x384xf32>
    %186 = arith.mulf %185, %184 : vector<8x384xf32>
    %187 = math.tanh %186 : vector<8x384xf32>
    %cst_69 = arith.constant 5.000000e-01 : f32
    %188 = vector.broadcast %cst_69 : f32 to vector<8x384xf32>
    %189 = arith.mulf %188, %187 : vector<8x384xf32>
    %cst_70 = arith.constant 5.000000e-01 : f32
    %190 = vector.broadcast %cst_70 : f32 to vector<8x384xf32>
    %191 = arith.addf %189, %190 : vector<8x384xf32>
    %192 = vector.extract_strided_slice %191 {offsets = [0, 0], sizes = [8, 128], strides = [1, 1]} : vector<8x384xf32> to vector<8x128xf32>
    %193 = vector.extract_strided_slice %191 {offsets = [0, 128], sizes = [8, 128], strides = [1, 1]} : vector<8x384xf32> to vector<8x128xf32>
    %194 = vector.extract_strided_slice %191 {offsets = [0, 256], sizes = [8, 128], strides = [1, 1]} : vector<8x384xf32> to vector<8x128xf32>
    %195 = vector.extract_strided_slice %183 {offsets = [0, 384], sizes = [8, 128], strides = [1, 1]} : vector<8x512xf32> to vector<8x128xf32>
    %196 = math.tanh %195 : vector<8x128xf32>
    %197 = arith.mulf %193, %151 : vector<8x128xf32>
    %198 = arith.mulf %192, %196 : vector<8x128xf32>
    %199 = arith.addf %197, %198 : vector<8x128xf32>
    %200 = math.tanh %199 : vector<8x128xf32>
    %201 = arith.mulf %194, %200 : vector<8x128xf32>
    %c4_i32 = arith.constant 4 : i32
    %202 = arith.index_cast %c4_i32 : i32 to index
    %c0_71 = arith.constant 0 : index
    %c0_72 = arith.constant 0 : index
    %203 = vector.load %arg12[%202, %c0_71, %c0_72] : memref<8x8x512xbf16, #tpu.memory_space<vmem>>, vector<1x8x512xbf16>
    %204 = vector.shape_cast %203 : vector<1x8x512xbf16> to vector<8x512xbf16>
    %205 = arith.extf %204 : vector<8x512xbf16> to vector<8x512xf32>
    %206 = arith.truncf %178 : vector<8x128xf32> to vector<8x128xbf16>
    %cst_73 = arith.constant dense<0.000000e+00> : vector<8x512xf32>
    %207 = tpu.matmul %206, %12, %cst_73 {dimension_numbers = #tpu.dot_dimension_numbers<[1], [0], [0], [1], [0, 0, 1, 1], [], []>} : vector<8x128xbf16>, vector<128x512xbf16>, vector<8x512xf32> -> vector<8x512xf32>
    %208 = arith.addf %205, %207 : vector<8x512xf32>
    %209 = vector.extract_strided_slice %208 {offsets = [0, 0], sizes = [8, 384], strides = [1, 1]} : vector<8x512xf32> to vector<8x384xf32>
    %cst_74 = arith.constant 5.000000e-01 : f32
    %210 = vector.broadcast %cst_74 : f32 to vector<8x384xf32>
    %211 = arith.mulf %210, %209 : vector<8x384xf32>
    %212 = math.tanh %211 : vector<8x384xf32>
    %cst_75 = arith.constant 5.000000e-01 : f32
    %213 = vector.broadcast %cst_75 : f32 to vector<8x384xf32>
    %214 = arith.mulf %213, %212 : vector<8x384xf32>
    %cst_76 = arith.constant 5.000000e-01 : f32
    %215 = vector.broadcast %cst_76 : f32 to vector<8x384xf32>
    %216 = arith.addf %214, %215 : vector<8x384xf32>
    %217 = vector.extract_strided_slice %216 {offsets = [0, 0], sizes = [8, 128], strides = [1, 1]} : vector<8x384xf32> to vector<8x128xf32>
    %218 = vector.extract_strided_slice %216 {offsets = [0, 128], sizes = [8, 128], strides = [1, 1]} : vector<8x384xf32> to vector<8x128xf32>
    %219 = vector.extract_strided_slice %216 {offsets = [0, 256], sizes = [8, 128], strides = [1, 1]} : vector<8x384xf32> to vector<8x128xf32>
    %220 = vector.extract_strided_slice %208 {offsets = [0, 384], sizes = [8, 128], strides = [1, 1]} : vector<8x512xf32> to vector<8x128xf32>
    %221 = math.tanh %220 : vector<8x128xf32>
    %222 = arith.mulf %218, %176 : vector<8x128xf32>
    %223 = arith.mulf %217, %221 : vector<8x128xf32>
    %224 = arith.addf %222, %223 : vector<8x128xf32>
    %225 = math.tanh %224 : vector<8x128xf32>
    %226 = arith.mulf %219, %225 : vector<8x128xf32>
    %227 = tpu.concatenate %178, %201 in 1 : vector<8x128xf32>, vector<8x128xf32> -> vector<8x256xf32>
    %228 = arith.truncf %227 : vector<8x256xf32> to vector<8x256xbf16>
    %cst_77 = arith.constant dense<0.000000e+00> : vector<8x512xf32>
    %229 = tpu.matmul %228, %23, %cst_77 {dimension_numbers = #tpu.dot_dimension_numbers<[1], [0], [0], [1], [0, 0, 1, 1], [], []>} : vector<8x256xbf16>, vector<256x512xbf16>, vector<8x512xf32> -> vector<8x512xf32>
    %230 = vector.broadcast %25 : vector<1x512xf32> to vector<8x512xf32>
    %231 = arith.addf %229, %230 : vector<8x512xf32>
    %232 = vector.extract_strided_slice %231 {offsets = [0, 0], sizes = [8, 384], strides = [1, 1]} : vector<8x512xf32> to vector<8x384xf32>
    %cst_78 = arith.constant 5.000000e-01 : f32
    %233 = vector.broadcast %cst_78 : f32 to vector<8x384xf32>
    %234 = arith.mulf %233, %232 : vector<8x384xf32>
    %235 = math.tanh %234 : vector<8x384xf32>
    %cst_79 = arith.constant 5.000000e-01 : f32
    %236 = vector.broadcast %cst_79 : f32 to vector<8x384xf32>
    %237 = arith.mulf %236, %235 : vector<8x384xf32>
    %cst_80 = arith.constant 5.000000e-01 : f32
    %238 = vector.broadcast %cst_80 : f32 to vector<8x384xf32>
    %239 = arith.addf %237, %238 : vector<8x384xf32>
    %240 = vector.extract_strided_slice %239 {offsets = [0, 0], sizes = [8, 128], strides = [1, 1]} : vector<8x384xf32> to vector<8x128xf32>
    %241 = vector.extract_strided_slice %239 {offsets = [0, 128], sizes = [8, 128], strides = [1, 1]} : vector<8x384xf32> to vector<8x128xf32>
    %242 = vector.extract_strided_slice %239 {offsets = [0, 256], sizes = [8, 128], strides = [1, 1]} : vector<8x384xf32> to vector<8x128xf32>
    %243 = vector.extract_strided_slice %231 {offsets = [0, 384], sizes = [8, 128], strides = [1, 1]} : vector<8x512xf32> to vector<8x128xf32>
    %244 = math.tanh %243 : vector<8x128xf32>
    %245 = arith.mulf %241, %199 : vector<8x128xf32>
    %246 = arith.mulf %240, %244 : vector<8x128xf32>
    %247 = arith.addf %245, %246 : vector<8x128xf32>
    %248 = math.tanh %247 : vector<8x128xf32>
    %249 = arith.mulf %242, %248 : vector<8x128xf32>
    %c5_i32 = arith.constant 5 : i32
    %250 = arith.index_cast %c5_i32 : i32 to index
    %c0_81 = arith.constant 0 : index
    %c0_82 = arith.constant 0 : index
    %251 = vector.load %arg12[%250, %c0_81, %c0_82] : memref<8x8x512xbf16, #tpu.memory_space<vmem>>, vector<1x8x512xbf16>
    %252 = vector.shape_cast %251 : vector<1x8x512xbf16> to vector<8x512xbf16>
    %253 = arith.extf %252 : vector<8x512xbf16> to vector<8x512xf32>
    %254 = arith.truncf %226 : vector<8x128xf32> to vector<8x128xbf16>
    %cst_83 = arith.constant dense<0.000000e+00> : vector<8x512xf32>
    %255 = tpu.matmul %254, %12, %cst_83 {dimension_numbers = #tpu.dot_dimension_numbers<[1], [0], [0], [1], [0, 0, 1, 1], [], []>} : vector<8x128xbf16>, vector<128x512xbf16>, vector<8x512xf32> -> vector<8x512xf32>
    %256 = arith.addf %253, %255 : vector<8x512xf32>
    %257 = vector.extract_strided_slice %256 {offsets = [0, 0], sizes = [8, 384], strides = [1, 1]} : vector<8x512xf32> to vector<8x384xf32>
    %cst_84 = arith.constant 5.000000e-01 : f32
    %258 = vector.broadcast %cst_84 : f32 to vector<8x384xf32>
    %259 = arith.mulf %258, %257 : vector<8x384xf32>
    %260 = math.tanh %259 : vector<8x384xf32>
    %cst_85 = arith.constant 5.000000e-01 : f32
    %261 = vector.broadcast %cst_85 : f32 to vector<8x384xf32>
    %262 = arith.mulf %261, %260 : vector<8x384xf32>
    %cst_86 = arith.constant 5.000000e-01 : f32
    %263 = vector.broadcast %cst_86 : f32 to vector<8x384xf32>
    %264 = arith.addf %262, %263 : vector<8x384xf32>
    %265 = vector.extract_strided_slice %264 {offsets = [0, 0], sizes = [8, 128], strides = [1, 1]} : vector<8x384xf32> to vector<8x128xf32>
    %266 = vector.extract_strided_slice %264 {offsets = [0, 128], sizes = [8, 128], strides = [1, 1]} : vector<8x384xf32> to vector<8x128xf32>
    %267 = vector.extract_strided_slice %264 {offsets = [0, 256], sizes = [8, 128], strides = [1, 1]} : vector<8x384xf32> to vector<8x128xf32>
    %268 = vector.extract_strided_slice %256 {offsets = [0, 384], sizes = [8, 128], strides = [1, 1]} : vector<8x512xf32> to vector<8x128xf32>
    %269 = math.tanh %268 : vector<8x128xf32>
    %270 = arith.mulf %266, %224 : vector<8x128xf32>
    %271 = arith.mulf %265, %269 : vector<8x128xf32>
    %272 = arith.addf %270, %271 : vector<8x128xf32>
    %273 = math.tanh %272 : vector<8x128xf32>
    %274 = arith.mulf %267, %273 : vector<8x128xf32>
    %275 = tpu.concatenate %226, %249 in 1 : vector<8x128xf32>, vector<8x128xf32> -> vector<8x256xf32>
    %276 = arith.truncf %275 : vector<8x256xf32> to vector<8x256xbf16>
    %cst_87 = arith.constant dense<0.000000e+00> : vector<8x512xf32>
    %277 = tpu.matmul %276, %23, %cst_87 {dimension_numbers = #tpu.dot_dimension_numbers<[1], [0], [0], [1], [0, 0, 1, 1], [], []>} : vector<8x256xbf16>, vector<256x512xbf16>, vector<8x512xf32> -> vector<8x512xf32>
    %278 = vector.broadcast %25 : vector<1x512xf32> to vector<8x512xf32>
    %279 = arith.addf %277, %278 : vector<8x512xf32>
    %280 = vector.extract_strided_slice %279 {offsets = [0, 0], sizes = [8, 384], strides = [1, 1]} : vector<8x512xf32> to vector<8x384xf32>
    %cst_88 = arith.constant 5.000000e-01 : f32
    %281 = vector.broadcast %cst_88 : f32 to vector<8x384xf32>
    %282 = arith.mulf %281, %280 : vector<8x384xf32>
    %283 = math.tanh %282 : vector<8x384xf32>
    %cst_89 = arith.constant 5.000000e-01 : f32
    %284 = vector.broadcast %cst_89 : f32 to vector<8x384xf32>
    %285 = arith.mulf %284, %283 : vector<8x384xf32>
    %cst_90 = arith.constant 5.000000e-01 : f32
    %286 = vector.broadcast %cst_90 : f32 to vector<8x384xf32>
    %287 = arith.addf %285, %286 : vector<8x384xf32>
    %288 = vector.extract_strided_slice %287 {offsets = [0, 0], sizes = [8, 128], strides = [1, 1]} : vector<8x384xf32> to vector<8x128xf32>
    %289 = vector.extract_strided_slice %287 {offsets = [0, 128], sizes = [8, 128], strides = [1, 1]} : vector<8x384xf32> to vector<8x128xf32>
    %290 = vector.extract_strided_slice %287 {offsets = [0, 256], sizes = [8, 128], strides = [1, 1]} : vector<8x384xf32> to vector<8x128xf32>
    %291 = vector.extract_strided_slice %279 {offsets = [0, 384], sizes = [8, 128], strides = [1, 1]} : vector<8x512xf32> to vector<8x128xf32>
    %292 = math.tanh %291 : vector<8x128xf32>
    %293 = arith.mulf %289, %247 : vector<8x128xf32>
    %294 = arith.mulf %288, %292 : vector<8x128xf32>
    %295 = arith.addf %293, %294 : vector<8x128xf32>
    %296 = math.tanh %295 : vector<8x128xf32>
    %297 = arith.mulf %290, %296 : vector<8x128xf32>
    %c6_i32 = arith.constant 6 : i32
    %298 = arith.index_cast %c6_i32 : i32 to index
    %c0_91 = arith.constant 0 : index
    %c0_92 = arith.constant 0 : index
    %299 = vector.load %arg12[%298, %c0_91, %c0_92] : memref<8x8x512xbf16, #tpu.memory_space<vmem>>, vector<1x8x512xbf16>
    %300 = vector.shape_cast %299 : vector<1x8x512xbf16> to vector<8x512xbf16>
    %301 = arith.extf %300 : vector<8x512xbf16> to vector<8x512xf32>
    %302 = arith.truncf %274 : vector<8x128xf32> to vector<8x128xbf16>
    %cst_93 = arith.constant dense<0.000000e+00> : vector<8x512xf32>
    %303 = tpu.matmul %302, %12, %cst_93 {dimension_numbers = #tpu.dot_dimension_numbers<[1], [0], [0], [1], [0, 0, 1, 1], [], []>} : vector<8x128xbf16>, vector<128x512xbf16>, vector<8x512xf32> -> vector<8x512xf32>
    %304 = arith.addf %301, %303 : vector<8x512xf32>
    %305 = vector.extract_strided_slice %304 {offsets = [0, 0], sizes = [8, 384], strides = [1, 1]} : vector<8x512xf32> to vector<8x384xf32>
    %cst_94 = arith.constant 5.000000e-01 : f32
    %306 = vector.broadcast %cst_94 : f32 to vector<8x384xf32>
    %307 = arith.mulf %306, %305 : vector<8x384xf32>
    %308 = math.tanh %307 : vector<8x384xf32>
    %cst_95 = arith.constant 5.000000e-01 : f32
    %309 = vector.broadcast %cst_95 : f32 to vector<8x384xf32>
    %310 = arith.mulf %309, %308 : vector<8x384xf32>
    %cst_96 = arith.constant 5.000000e-01 : f32
    %311 = vector.broadcast %cst_96 : f32 to vector<8x384xf32>
    %312 = arith.addf %310, %311 : vector<8x384xf32>
    %313 = vector.extract_strided_slice %312 {offsets = [0, 0], sizes = [8, 128], strides = [1, 1]} : vector<8x384xf32> to vector<8x128xf32>
    %314 = vector.extract_strided_slice %312 {offsets = [0, 128], sizes = [8, 128], strides = [1, 1]} : vector<8x384xf32> to vector<8x128xf32>
    %315 = vector.extract_strided_slice %312 {offsets = [0, 256], sizes = [8, 128], strides = [1, 1]} : vector<8x384xf32> to vector<8x128xf32>
    %316 = vector.extract_strided_slice %304 {offsets = [0, 384], sizes = [8, 128], strides = [1, 1]} : vector<8x512xf32> to vector<8x128xf32>
    %317 = math.tanh %316 : vector<8x128xf32>
    %318 = arith.mulf %314, %272 : vector<8x128xf32>
    %319 = arith.mulf %313, %317 : vector<8x128xf32>
    %320 = arith.addf %318, %319 : vector<8x128xf32>
    %321 = math.tanh %320 : vector<8x128xf32>
    %322 = arith.mulf %315, %321 : vector<8x128xf32>
    %323 = tpu.concatenate %274, %297 in 1 : vector<8x128xf32>, vector<8x128xf32> -> vector<8x256xf32>
    %324 = arith.truncf %323 : vector<8x256xf32> to vector<8x256xbf16>
    %cst_97 = arith.constant dense<0.000000e+00> : vector<8x512xf32>
    %325 = tpu.matmul %324, %23, %cst_97 {dimension_numbers = #tpu.dot_dimension_numbers<[1], [0], [0], [1], [0, 0, 1, 1], [], []>} : vector<8x256xbf16>, vector<256x512xbf16>, vector<8x512xf32> -> vector<8x512xf32>
    %326 = vector.broadcast %25 : vector<1x512xf32> to vector<8x512xf32>
    %327 = arith.addf %325, %326 : vector<8x512xf32>
    %328 = vector.extract_strided_slice %327 {offsets = [0, 0], sizes = [8, 384], strides = [1, 1]} : vector<8x512xf32> to vector<8x384xf32>
    %cst_98 = arith.constant 5.000000e-01 : f32
    %329 = vector.broadcast %cst_98 : f32 to vector<8x384xf32>
    %330 = arith.mulf %329, %328 : vector<8x384xf32>
    %331 = math.tanh %330 : vector<8x384xf32>
    %cst_99 = arith.constant 5.000000e-01 : f32
    %332 = vector.broadcast %cst_99 : f32 to vector<8x384xf32>
    %333 = arith.mulf %332, %331 : vector<8x384xf32>
    %cst_100 = arith.constant 5.000000e-01 : f32
    %334 = vector.broadcast %cst_100 : f32 to vector<8x384xf32>
    %335 = arith.addf %333, %334 : vector<8x384xf32>
    %336 = vector.extract_strided_slice %335 {offsets = [0, 0], sizes = [8, 128], strides = [1, 1]} : vector<8x384xf32> to vector<8x128xf32>
    %337 = vector.extract_strided_slice %335 {offsets = [0, 128], sizes = [8, 128], strides = [1, 1]} : vector<8x384xf32> to vector<8x128xf32>
    %338 = vector.extract_strided_slice %335 {offsets = [0, 256], sizes = [8, 128], strides = [1, 1]} : vector<8x384xf32> to vector<8x128xf32>
    %339 = vector.extract_strided_slice %327 {offsets = [0, 384], sizes = [8, 128], strides = [1, 1]} : vector<8x512xf32> to vector<8x128xf32>
    %340 = math.tanh %339 : vector<8x128xf32>
    %341 = arith.mulf %337, %295 : vector<8x128xf32>
    %342 = arith.mulf %336, %340 : vector<8x128xf32>
    %343 = arith.addf %341, %342 : vector<8x128xf32>
    %344 = math.tanh %343 : vector<8x128xf32>
    %345 = arith.mulf %338, %344 : vector<8x128xf32>
    %c7_i32 = arith.constant 7 : i32
    %346 = arith.index_cast %c7_i32 : i32 to index
    %c0_101 = arith.constant 0 : index
    %c0_102 = arith.constant 0 : index
    %347 = vector.load %arg12[%346, %c0_101, %c0_102] : memref<8x8x512xbf16, #tpu.memory_space<vmem>>, vector<1x8x512xbf16>
    %348 = vector.shape_cast %347 : vector<1x8x512xbf16> to vector<8x512xbf16>
    %349 = arith.extf %348 : vector<8x512xbf16> to vector<8x512xf32>
    %350 = arith.truncf %322 : vector<8x128xf32> to vector<8x128xbf16>
    %cst_103 = arith.constant dense<0.000000e+00> : vector<8x512xf32>
    %351 = tpu.matmul %350, %12, %cst_103 {dimension_numbers = #tpu.dot_dimension_numbers<[1], [0], [0], [1], [0, 0, 1, 1], [], []>} : vector<8x128xbf16>, vector<128x512xbf16>, vector<8x512xf32> -> vector<8x512xf32>
    %352 = arith.addf %349, %351 : vector<8x512xf32>
    %353 = vector.extract_strided_slice %352 {offsets = [0, 0], sizes = [8, 384], strides = [1, 1]} : vector<8x512xf32> to vector<8x384xf32>
    %cst_104 = arith.constant 5.000000e-01 : f32
    %354 = vector.broadcast %cst_104 : f32 to vector<8x384xf32>
    %355 = arith.mulf %354, %353 : vector<8x384xf32>
    %356 = math.tanh %355 : vector<8x384xf32>
    %cst_105 = arith.constant 5.000000e-01 : f32
    %357 = vector.broadcast %cst_105 : f32 to vector<8x384xf32>
    %358 = arith.mulf %357, %356 : vector<8x384xf32>
    %cst_106 = arith.constant 5.000000e-01 : f32
    %359 = vector.broadcast %cst_106 : f32 to vector<8x384xf32>
    %360 = arith.addf %358, %359 : vector<8x384xf32>
    %361 = vector.extract_strided_slice %360 {offsets = [0, 0], sizes = [8, 128], strides = [1, 1]} : vector<8x384xf32> to vector<8x128xf32>
    %362 = vector.extract_strided_slice %360 {offsets = [0, 128], sizes = [8, 128], strides = [1, 1]} : vector<8x384xf32> to vector<8x128xf32>
    %363 = vector.extract_strided_slice %360 {offsets = [0, 256], sizes = [8, 128], strides = [1, 1]} : vector<8x384xf32> to vector<8x128xf32>
    %364 = vector.extract_strided_slice %352 {offsets = [0, 384], sizes = [8, 128], strides = [1, 1]} : vector<8x512xf32> to vector<8x128xf32>
    %365 = math.tanh %364 : vector<8x128xf32>
    %366 = arith.mulf %362, %320 : vector<8x128xf32>
    %367 = arith.mulf %361, %365 : vector<8x128xf32>
    %368 = arith.addf %366, %367 : vector<8x128xf32>
    %369 = math.tanh %368 : vector<8x128xf32>
    %370 = arith.mulf %363, %369 : vector<8x128xf32>
    %371 = tpu.concatenate %322, %345 in 1 : vector<8x128xf32>, vector<8x128xf32> -> vector<8x256xf32>
    %372 = arith.truncf %371 : vector<8x256xf32> to vector<8x256xbf16>
    %cst_107 = arith.constant dense<0.000000e+00> : vector<8x512xf32>
    %373 = tpu.matmul %372, %23, %cst_107 {dimension_numbers = #tpu.dot_dimension_numbers<[1], [0], [0], [1], [0, 0, 1, 1], [], []>} : vector<8x256xbf16>, vector<256x512xbf16>, vector<8x512xf32> -> vector<8x512xf32>
    %374 = vector.broadcast %25 : vector<1x512xf32> to vector<8x512xf32>
    %375 = arith.addf %373, %374 : vector<8x512xf32>
    %376 = vector.extract_strided_slice %375 {offsets = [0, 0], sizes = [8, 384], strides = [1, 1]} : vector<8x512xf32> to vector<8x384xf32>
    %cst_108 = arith.constant 5.000000e-01 : f32
    %377 = vector.broadcast %cst_108 : f32 to vector<8x384xf32>
    %378 = arith.mulf %377, %376 : vector<8x384xf32>
    %379 = math.tanh %378 : vector<8x384xf32>
    %cst_109 = arith.constant 5.000000e-01 : f32
    %380 = vector.broadcast %cst_109 : f32 to vector<8x384xf32>
    %381 = arith.mulf %380, %379 : vector<8x384xf32>
    %cst_110 = arith.constant 5.000000e-01 : f32
    %382 = vector.broadcast %cst_110 : f32 to vector<8x384xf32>
    %383 = arith.addf %381, %382 : vector<8x384xf32>
    %384 = vector.extract_strided_slice %383 {offsets = [0, 0], sizes = [8, 128], strides = [1, 1]} : vector<8x384xf32> to vector<8x128xf32>
    %385 = vector.extract_strided_slice %383 {offsets = [0, 128], sizes = [8, 128], strides = [1, 1]} : vector<8x384xf32> to vector<8x128xf32>
    %386 = vector.extract_strided_slice %383 {offsets = [0, 256], sizes = [8, 128], strides = [1, 1]} : vector<8x384xf32> to vector<8x128xf32>
    %387 = vector.extract_strided_slice %375 {offsets = [0, 384], sizes = [8, 128], strides = [1, 1]} : vector<8x512xf32> to vector<8x128xf32>
    %388 = math.tanh %387 : vector<8x128xf32>
    %389 = arith.mulf %385, %343 : vector<8x128xf32>
    %390 = arith.mulf %384, %388 : vector<8x128xf32>
    %391 = arith.addf %389, %390 : vector<8x128xf32>
    %392 = math.tanh %391 : vector<8x128xf32>
    %393 = arith.mulf %386, %392 : vector<8x128xf32>
    %c7_i32_111 = arith.constant 7 : i32
    %394 = tpu.concatenate %370, %393 in 1 : vector<8x128xf32>, vector<8x128xf32> -> vector<8x256xf32>
    %395 = arith.truncf %394 : vector<8x256xf32> to vector<8x256xbf16>
    %cst_112 = arith.constant dense<0.000000e+00> : vector<8x512xf32>
    %396 = tpu.matmul %395, %23, %cst_112 {dimension_numbers = #tpu.dot_dimension_numbers<[1], [0], [0], [1], [0, 0, 1, 1], [], []>} : vector<8x256xbf16>, vector<256x512xbf16>, vector<8x512xf32> -> vector<8x512xf32>
    %397 = vector.broadcast %25 : vector<1x512xf32> to vector<8x512xf32>
    %398 = arith.addf %396, %397 : vector<8x512xf32>
    %399 = vector.extract_strided_slice %398 {offsets = [0, 0], sizes = [8, 384], strides = [1, 1]} : vector<8x512xf32> to vector<8x384xf32>
    %cst_113 = arith.constant 5.000000e-01 : f32
    %400 = vector.broadcast %cst_113 : f32 to vector<8x384xf32>
    %401 = arith.mulf %400, %399 : vector<8x384xf32>
    %402 = math.tanh %401 : vector<8x384xf32>
    %cst_114 = arith.constant 5.000000e-01 : f32
    %403 = vector.broadcast %cst_114 : f32 to vector<8x384xf32>
    %404 = arith.mulf %403, %402 : vector<8x384xf32>
    %cst_115 = arith.constant 5.000000e-01 : f32
    %405 = vector.broadcast %cst_115 : f32 to vector<8x384xf32>
    %406 = arith.addf %404, %405 : vector<8x384xf32>
    %407 = vector.extract_strided_slice %406 {offsets = [0, 0], sizes = [8, 128], strides = [1, 1]} : vector<8x384xf32> to vector<8x128xf32>
    %408 = vector.extract_strided_slice %406 {offsets = [0, 128], sizes = [8, 128], strides = [1, 1]} : vector<8x384xf32> to vector<8x128xf32>
    %409 = vector.extract_strided_slice %406 {offsets = [0, 256], sizes = [8, 128], strides = [1, 1]} : vector<8x384xf32> to vector<8x128xf32>
    %410 = vector.extract_strided_slice %398 {offsets = [0, 384], sizes = [8, 128], strides = [1, 1]} : vector<8x512xf32> to vector<8x128xf32>
    %411 = math.tanh %410 : vector<8x128xf32>
    %412 = arith.mulf %408, %391 : vector<8x128xf32>
    %413 = arith.mulf %407, %411 : vector<8x128xf32>
    %414 = arith.addf %412, %413 : vector<8x128xf32>
    %415 = math.tanh %414 : vector<8x128xf32>
    %416 = arith.mulf %409, %415 : vector<8x128xf32>
    %c0_116 = arith.constant 0 : index
    %c0_117 = arith.constant 0 : index
    %c0_118 = arith.constant 0 : index
    %417 = vector.load %arg10[%c0_116, %c0_117, %c0_118] : memref<2x8x128xf32, #tpu.memory_space<vmem>>, vector<1x8x128xf32>
    %418 = vector.shape_cast %417 : vector<1x8x128xf32> to vector<8x128xf32>
    %419 = vector.shape_cast %370 : vector<8x128xf32> to vector<1x8x128xf32>
    tpu.vector_store %arg10[%c0_116, %c0_117, %c0_118], %419 {strides = array<i32>} : memref<2x8x128xf32, #tpu.memory_space<vmem>>, vector<1x8x128xf32>,
    %c0_119 = arith.constant 0 : index
    %c0_120 = arith.constant 0 : index
    %c0_121 = arith.constant 0 : index
    %420 = vector.load %arg11[%c0_119, %c0_120, %c0_121] : memref<2x8x128xf32, #tpu.memory_space<vmem>>, vector<1x8x128xf32>
    %421 = vector.shape_cast %420 : vector<1x8x128xf32> to vector<8x128xf32>
    %422 = vector.shape_cast %368 : vector<8x128xf32> to vector<1x8x128xf32>
    tpu.vector_store %arg11[%c0_119, %c0_120, %c0_121], %422 {strides = array<i32>} : memref<2x8x128xf32, #tpu.memory_space<vmem>>, vector<1x8x128xf32>,
    %c1_122 = arith.constant 1 : index
    %c0_123 = arith.constant 0 : index
    %c0_124 = arith.constant 0 : index
    %423 = vector.load %arg10[%c1_122, %c0_123, %c0_124] : memref<2x8x128xf32, #tpu.memory_space<vmem>>, vector<1x8x128xf32>
    %424 = vector.shape_cast %423 : vector<1x8x128xf32> to vector<8x128xf32>
    %425 = vector.shape_cast %416 : vector<8x128xf32> to vector<1x8x128xf32>
    tpu.vector_store %arg10[%c1_122, %c0_123, %c0_124], %425 {strides = array<i32>} : memref<2x8x128xf32, #tpu.memory_space<vmem>>, vector<1x8x128xf32>,
    %c1_125 = arith.constant 1 : index
    %c0_126 = arith.constant 0 : index
    %c0_127 = arith.constant 0 : index
    %426 = vector.load %arg11[%c1_125, %c0_126, %c0_127] : memref<2x8x128xf32, #tpu.memory_space<vmem>>, vector<1x8x128xf32>
    %427 = vector.shape_cast %426 : vector<1x8x128xf32> to vector<8x128xf32>
    %428 = vector.shape_cast %414 : vector<8x128xf32> to vector<1x8x128xf32>
    tpu.vector_store %arg11[%c1_125, %c0_126, %c0_127], %428 {strides = array<i32>} : memref<2x8x128xf32, #tpu.memory_space<vmem>>, vector<1x8x128xf32>,
    %429 = arith.truncf %416 : vector<8x128xf32> to vector<8x128xbf16>
    %c0_128 = arith.constant 0 : index
    %c0_129 = arith.constant 0 : index
    %430 = vector.load %arg7[%c0_128, %c0_129] : memref<128x128xbf16, #tpu.memory_space<vmem>>, vector<128x128xbf16>
    %cst_130 = arith.constant dense<0.000000e+00> : vector<8x128xf32>
    %431 = tpu.matmul %429, %430, %cst_130 {dimension_numbers = #tpu.dot_dimension_numbers<[1], [0], [0], [1], [0, 0, 1, 1], [], []>} : vector<8x128xbf16>, vector<128x128xbf16>, vector<8x128xf32> -> vector<8x128xf32>
    %c0_131 = arith.constant 0 : index
    %c0_132 = arith.constant 0 : index
    %432 = vector.load %arg8[%c0_131, %c0_132] : memref<1x128xf32, #tpu.memory_space<vmem>>, vector<1x128xf32>
    %433 = vector.broadcast %432 : vector<1x128xf32> to vector<8x128xf32>
    %434 = arith.addf %431, %433 : vector<8x128xf32>
    %c0_133 = arith.constant 0 : index
    %c0_134 = arith.constant 0 : index
    %435 = vector.load %arg9[%c0_133, %c0_134] : memref<8x128xf32, #tpu.memory_space<vmem>>, vector<8x128xf32>
    tpu.vector_store %arg9[%c0_133, %c0_134], %434 {strides = array<i32>} : memref<8x128xf32, #tpu.memory_space<vmem>>, vector<8x128xf32>,
    return
  }
}

</mosaic_0001>

<bundles_post_ra>
// kernel: lstm_predictor_forward.1
= control target key start
LH: loop header
LB: loop body
LE: loop exit
PB: predicated region body
PF: predicated region fallthrough
CT: control target
= control target key end

     0   :  { %vm82_vm0 = vcmask 1041408   ;;  %vm69_vm1 = vcmask 31744   ;;  %s5907_s3 = inlined_call_operand.vmem [shape: bf16[4,128], index: 3, kind: input, shape index: {}]   ;;  %s5908_s0 = inlined_call_operand.vmem [shape: bf16[8,8,4], index: 0, kind: input, shape index: {}]   ;;  %s5909_s4 = inlined_call_operand.vmem [shape: f32[1,128], index: 4, kind: input, shape index: {}]   ;;  %s5910_s5 = inlined_call_operand.vmem [shape: bf16[2,256,512], index: 5, kind: input, shape index: {}]   ;;  %s5911_s1 = inlined_call_operand.vmem [shape: f32[2,8,128], index: 1, kind: input, shape index: {}, may-alias: {1,10}]   ;;  %s5912_s6 = inlined_call_operand.vmem [shape: f32[2,1,512], index: 6, kind: input, shape index: {}]   ;;  %s5913_s2 = inlined_call_operand.vmem [shape: f32[2,8,128], index: 2, kind: input, shape index: {}, may-alias: {2,11}]   ;;  %s5914_s11 = inlined_call_operand.vmem [shape: f32[2,8,128], index: 11, kind: output, shape index: {2}, may-alias: {2,11}]   ;;  %s5915_s10 = inlined_call_operand.vmem [shape: f32[2,8,128], index: 10, kind: output, shape index: {1}, may-alias: {1,10}]   ;;  %s5916_s8 = inlined_call_operand.vmem [shape: f32[1,128], index: 8, kind: input, shape index: {}]   ;;  %s5917_s7 = inlined_call_operand.vmem [shape: bf16[128,128], index: 7, kind: input, shape index: {}]   ;;  %s5918_s9 = inlined_call_operand.vmem [shape: f32[8,128], index: 9, kind: output, shape index: {0}]  }
   0x1   :  { %v44_v0 = vld [vmem:[%s5907_s3] sm:$0x3]  ;;  %v3446_v3 = vld [vmem:[%s5908_s0 + $0x8] sm:$0xff]  ;;  %v3479_v5 = vld [vmem:[%s5910_s5 + $0xec] sm:$0xf0] }
   0x2   :  { %v84_v1 = vsel %vm82_vm0, %v44_v0, 0  ;;  %v3445_v2 = vld [vmem:[%s5908_s0] sm:$0xff]  ;;  %v2948_v8 = vld [vmem:[%s5910_s5 + $0xf0] sm:$0xf0]  ;;  %v2954_v9 = vld [vmem:[%s5910_s5 + $0xe8] sm:$0xf] }
   0x3   :  { %93 = vmatpush.bf16.msra.mxu0 %v84_v1  ;;  %v2946_v4 = vld [vmem:[%s5910_s5 + $0xe0] sm:$0xf]  ;;  %v3477_v6 = vld [vmem:[%s5910_s5 + $0xe4] sm:$0xf]  ;;  %v3480_v10 = vld [vmem:[%s5910_s5 + $0xf4] sm:$0xf0] }
   0x4   :  { %v2947_v7 = vor.u32 %v3479_v5, %v2946_v4  ;;  %v2951_v11 = vor.u32 %v3477_v6, %v2948_v8  ;;  %v2955_v12 = vor.u32 %v3480_v10, %v2954_v9  ;;  %v3478_v13 = vld [vmem:[%s5910_s5 + $0xec] sm:$0xf]  ;;  %v2956_v14 = vld [vmem:[%s5910_s5 + $0xf8] sm:$0xf0]  ;;  %v2930_v15 = vld [vmem:[%s5910_s5 + $0xc0] sm:$0xf] }
   0x5   :  { %v2959_v16 = vor.u32 %v3478_v13, %v2956_v14  ;;  %v3475_v17 = vld [vmem:[%s5910_s5 + $0xcc] sm:$0xf0]  ;;  %v3473_v18 = vld [vmem:[%s5910_s5 + $0xc4] sm:$0xf]  ;;  %v2932_v19 = vld [vmem:[%s5910_s5 + $0xd0] sm:$0xf0] }
   0x6   :  { %2828 = vmatmul.msk.bf16.vlgmr.msra.gmra.mxu0 %vm69_vm1, %v3445_v2  ;;  %361 = vmatpush.bf16.msra.mxu1 %v2947_v7  ;;  %v2931_v20 = vor.u32 %v3475_v17, %v2930_v15  ;;  %v2935_v21 = vor.u32 %v3473_v18, %v2932_v19  ;;  %v2938_v22 = vld [vmem:[%s5910_s5 + $0xc8] sm:$0xf]  ;;  %v3476_v23 = vld [vmem:[%s5910_s5 + $0xd4] sm:$0xf0]  ;;  %v3474_v24 = vld [vmem:[%s5910_s5 + $0xcc] sm:$0xf] }
   0x7   :  { %390 = vmatpush.bf16.msra.mxu2 %v2951_v11  ;;  %419 = vmatpush.bf16.msra.mxu3 %v2955_v12  ;;  %v2939_v25 = vor.u32 %v3476_v23, %v2938_v22  ;;  %v2940_v26 = vld [vmem:[%s5910_s5 + $0xd8] sm:$0xf0]  ;;  %v2914_v27 = vld [vmem:[%s5910_s5 + $0xa0] sm:$0xf]  ;;  %v3471_v28 = vld [vmem:[%s5910_s5 + $0xac] sm:$0xf0] }
   0x8   :  { %448 = vmatpush.bf16.msrb.mxu0 %v2959_v16  ;;  %v2943_v29 = vor.u32 %v3474_v24, %v2940_v26  ;;  %v3469_v30 = vld [vmem:[%s5910_s5 + $0xa4] sm:$0xf]  ;;  %v2916_v31 = vld [vmem:[%s5910_s5 + $0xb0] sm:$0xf0]  ;;  %v2922_v32 = vld [vmem:[%s5910_s5 + $0xa8] sm:$0xf]  ;;  %v2915_v33 = vor.u32 %v3471_v28, %v2914_v27 }
   0x9   :  { %v3472_v34 = vld [vmem:[%s5910_s5 + $0xb4] sm:$0xf0]  ;;  %v3470_v35 = vld [vmem:[%s5910_s5 + $0xac] sm:$0xf]  ;;  %v2924_v36 = vld [vmem:[%s5910_s5 + $0xb8] sm:$0xf0]  ;;  %v2919_v37 = vor.u32 %v3469_v30, %v2916_v31 }
   0xa   :  { %362 = vmatpush.bf16.msra.mxu1 %v2931_v20  ;;  %v2923_v38 = vor.u32 %v3472_v34, %v2922_v32  ;;  %v2898_v39 = vld [vmem:[%s5910_s5 + $0x80] sm:$0xf]  ;;  %v3467_v40 = vld [vmem:[%s5910_s5 + $0x8c] sm:$0xf0]  ;;  %v2927_v41 = vor.u32 %v3470_v35, %v2924_v36  ;;  %v3465_v42 = vld [vmem:[%s5910_s5 + $0x84] sm:$0xf] }
   0xb   :  { %391 = vmatpush.bf16.msra.mxu2 %v2935_v21  ;;  %420 = vmatpush.bf16.msra.mxu3 %v2939_v25  ;;  %v2900_v43 = vld [vmem:[%s5910_s5 + $0x90] sm:$0xf0]  ;;  %v2906_v44 = vld [vmem:[%s5910_s5 + $0x88] sm:$0xf]  ;;  %v3468_v45 = vld [vmem:[%s5910_s5 + $0x94] sm:$0xf0]  ;;  %v2899_v48 = vor.u32 %v3467_v40, %v2898_v39 }
   0xc   :  { %449 = vmatpush.bf16.msrb.mxu0 %v2943_v29  ;;  %v3466_v46 = vld [vmem:[%s5910_s5 + $0x8c] sm:$0xf]  ;;  %v2908_v47 = vld [vmem:[%s5910_s5 + $0x98] sm:$0xf0]  ;;  %v3447_v49 = vld [vmem:[%s5908_s0 + $0x10] sm:$0xff]  ;;  %v2903_v50 = vor.u32 %v3465_v42, %v2900_v43  ;;  %v2907_v51 = vor.u32 %v3468_v45, %v2906_v44 }
   0xd   :  { %v2911_v52 = vor.u32 %v3466_v46, %v2908_v47  ;;  %v3448_v53 = vld [vmem:[%s5908_s0 + $0x18] sm:$0xff]  ;;  %v2882_v54 = vld [vmem:[%s5910_s5 + $0x60] sm:$0xf]  ;;  %v3463_v55 = vld [vmem:[%s5910_s5 + $0x6c] sm:$0xf0] }
   0xe   :  { %363 = vmatpush.bf16.msra.mxu1 %v2915_v33  ;;  %v3461_v56 = vld [vmem:[%s5910_s5 + $0x64] sm:$0xf]  ;;  %v2883_v57 = vor.u32 %v3463_v55, %v2882_v54  ;;  %v2884_v58 = vld [vmem:[%s5910_s5 + $0x70] sm:$0xf0]  ;;  %v2890_v59 = vld [vmem:[%s5910_s5 + $0x68] sm:$0xf] }
   0xf   :  { %392 = vmatpush.bf16.msra.mxu2 %v2919_v37  ;;  %421 = vmatpush.bf16.msra.mxu3 %v2923_v38  ;;  %v3464_v60 = vld [vmem:[%s5910_s5 + $0x74] sm:$0xf0]  ;;  %v2887_v61 = vor.u32 %v3461_v56, %v2884_v58  ;;  %v3462_v63 = vld [vmem:[%s5910_s5 + $0x6c] sm:$0xf]  ;;  %v2892_v0 = vld [vmem:[%s5910_s5 + $0x78] sm:$0xf0] }
  0x10   :  { %450 = vmatpush.bf16.msrb.mxu0 %v2927_v41  ;;  %v2891_v62 = vor.u32 %v3464_v60, %v2890_v59  ;;  %v2895_v1 = vor.u32 %v3462_v63, %v2892_v0  ;;  %v2866_v2 = vld [vmem:[%s5910_s5 + $0x40] sm:$0xf]  ;;  %v3457_v4 = vld [vmem:[%s5910_s5 + $0x44] sm:$0xf]  ;;  %v2868_v6 = vld [vmem:[%s5910_s5 + $0x50] sm:$0xf0] }
  0x11   :  { %v2874_v7 = vld [vmem:[%s5910_s5 + $0x48] sm:$0xf]  ;;  %v3460_v8 = vld [vmem:[%s5910_s5 + $0x54] sm:$0xf0]  ;;  %v2871_v9 = vor.u32 %v3457_v4, %v2868_v6  ;;  %v3458_v11 = vld [vmem:[%s5910_s5 + $0x4c] sm:$0xf] }
  0x12   :  { %364 = vmatpush.bf16.msra.mxu1 %v2899_v48  ;;  %v2875_v10 = vor.u32 %v3460_v8, %v2874_v7  ;;  %v2876_v12 = vld [vmem:[%s5910_s5 + $0x58] sm:$0xf0]  ;;  %v2850_v14 = vld [vmem:[%s5910_s5 + $0x20] sm:$0xf]  ;;  %v3455_v15 = vld [vmem:[%s5910_s5 + $0x2c] sm:$0xf0] }
  0x13   :  { %393 = vmatpush.bf16.msra.mxu2 %v2903_v50  ;;  %422 = vmatpush.bf16.msra.mxu3 %v2907_v51  ;;  %v2879_v13 = vor.u32 %v3458_v11, %v2876_v12  ;;  %v3453_v16 = vld [vmem:[%s5910_s5 + $0x24] sm:$0xf]  ;;  %v2851_v17 = vor.u32 %v3455_v15, %v2850_v14  ;;  %v2852_v18 = vld [vmem:[%s5910_s5 + $0x30] sm:$0xf0]  ;;  %v2858_v19 = vld [vmem:[%s5910_s5 + $0x28] sm:$0xf] }
  0x14   :  { %451 = vmatpush.bf16.msrb.mxu0 %v2911_v52  ;;  %v3456_v20 = vld [vmem:[%s5910_s5 + $0x34] sm:$0xf0]  ;;  %v2855_v21 = vor.u32 %v3453_v16, %v2852_v18  ;;  %v3454_v23 = vld [vmem:[%s5910_s5 + $0x2c] sm:$0xf]  ;;  %v2860_v24 = vld [vmem:[%s5910_s5 + $0x38] sm:$0xf0] }
  0x15   :  { %v2859_v22 = vor.u32 %v3456_v20, %v2858_v19  ;;  %v2863_v25 = vor.u32 %v3454_v23, %v2860_v24  ;;  %v2834_v26 = vld [vmem:[%s5910_s5] sm:$0xf]  ;;  %v3451_v27 = vld [vmem:[%s5910_s5 + $0xc] sm:$0xf0]  ;;  %v3449_v28 = vld [vmem:[%s5910_s5 + $0x4] sm:$0xf] }
  0x16   :  { %2829 = vmatmul.msk.bf16.gmra.mxu0 %vm69_vm1, %v3446_v3  ;;  %365 = vmatpush.bf16.msra.mxu1 %v2883_v57  ;;  %v3459_v3 = vld [vmem:[%s5910_s5 + $0x4c] sm:$0xf0]  ;;  %v2835_v29 = vor.u32 %v3451_v27, %v2834_v26  ;;  %v2836_v30 = vld [vmem:[%s5910_s5 + $0x10] sm:$0xf0]  ;;  %v2842_v31 = vld [vmem:[%s5910_s5 + $0x8] sm:$0xf] }
  0x17   :  { %394 = vmatpush.bf16.msra.mxu2 %v2887_v61  ;;  %423 = vmatpush.bf16.msra.mxu3 %v2891_v62  ;;  %v2867_v5 = vor.u32 %v3459_v3, %v2866_v2  ;;  %v3452_v32 = vld [vmem:[%s5910_s5 + $0x14] sm:$0xf0]  ;;  %v2839_v33 = vor.u32 %v3449_v28, %v2836_v30  ;;  %v3450_v35 = vld [vmem:[%s5910_s5 + $0xc] sm:$0xf]  ;;  %v2844_v36 = vld [vmem:[%s5910_s5 + $0x18] sm:$0xf0] }
  0x18   :  { %452 = vmatpush.bf16.msrb.mxu0 %v2895_v1  ;;  %v2843_v34 = vor.u32 %v3452_v32, %v2842_v31  ;;  %v2847_v37 = vor.u32 %v3450_v35, %v2844_v36  ;;  %v3141_v38 = vld [vmem:[%s5910_s5 + $0x1e0] sm:$0xf]  ;;  %v3511_v39 = vld [vmem:[%s5910_s5 + $0x1ec] sm:$0xf0]  ;;  %v3509_v41 = vld [vmem:[%s5910_s5 + $0x1e4] sm:$0xf] }
  0x19   :  { %v4024_v40 = vor.u32 %v3511_v39, %v3141_v38  ;;  %v3143_v42 = vld [vmem:[%s5910_s5 + $0x1f0] sm:$0xf0]  ;;  %v3125_v43 = vld [vmem:[%s5910_s5 + $0x1c0] sm:$0xf]  ;;  %v3507_v45 = vld [vmem:[%s5910_s5 + $0x1cc] sm:$0xf0] }
  0x1a   :  { %366 = vmatpush.bf16.msra.mxu1 %v2867_v5  ;;  %v4036_v44 = vor.u32 %v3509_v41, %v3143_v42  ;;  %v4041_v46 = vor.u32 %v3507_v45, %v3125_v43  ;;  %v3505_v47 = vld [vmem:[%s5910_s5 + $0x1c4] sm:$0xf]  ;;  %v3127_v48 = vld [vmem:[%s5910_s5 + $0x1d0] sm:$0xf0]  ;;  %v3512_v51 = vld [vmem:[%s5910_s5 + $0x1f4] sm:$0xf0] }
  0x1b   :  { %395 = vmatpush.bf16.msra.mxu2 %v2871_v9  ;;  %424 = vmatpush.bf16.msra.mxu3 %v2875_v10  ;;  %v4054_v50 = vor.u32 %v3505_v47, %v3127_v48  ;;  %v3109_v54 = vld [vmem:[%s5910_s5 + $0x1a0] sm:$0xf]  ;;  %v3503_v55 = vld [vmem:[%s5910_s5 + $0x1ac] sm:$0xf0]  ;;  %v3501_v58 = vld [vmem:[%s5910_s5 + $0x1a4] sm:$0xf] }
  0x1c   :  { %453 = vmatpush.bf16.msrb.mxu0 %v2879_v13  ;;  %6108 = vst [vmem:[#allocation3_spill] sm:$0xff] %v4036_v44  ;;  %v4069_v56 = vor.u32 %v3503_v55, %v3109_v54  ;;  %v4075_v57 = vld [vmem:[%s5909_s4] ss:$0 sm:$0xff]  ;;  %v3111_v59 = vld [vmem:[%s5910_s5 + $0x1b0] sm:$0xf0] }
  0x1d   :  { %6109 = vst [vmem:[#allocation4_spill] sm:$0xff] %v4041_v46  ;;  %v4084_v60 = vor.u32 %v3501_v58, %v3111_v59  ;;  %v3133_v61 = vld [vmem:[%s5910_s5 + $0x1c8] sm:$0xf]  ;;  %v3508_v62 = vld [vmem:[%s5910_s5 + $0x1d4] sm:$0xf0] }
  0x1e   :  { %367 = vmatpush.bf16.msra.mxu1 %v2851_v17  ;;  %6110 = vst [vmem:[#allocation5_spill] sm:$0xff] %v4054_v50  ;;  %v3093_v63 = vld [vmem:[%s5910_s5 + $0x180] sm:$0xf]  ;;  %v4095_v0 = vor.u32 %v3508_v62, %v3133_v61  ;;  %v3499_v1 = vld [vmem:[%s5910_s5 + $0x18c] sm:$0xf0] }
  0x1f   :  { %396 = vmatpush.bf16.msra.mxu2 %v2855_v21  ;;  %425 = vmatpush.bf16.msra.mxu3 %v2859_v22  ;;  %6111 = vst [vmem:[#allocation6_spill] sm:$0xff] %v4069_v56  ;;  %v4101_v2 = vor.u32 %v3499_v1, %v3093_v63  ;;  %v3497_v9 = vld [vmem:[%s5910_s5 + $0x184] sm:$0xf]  ;;  %v3095_v10 = vld [vmem:[%s5910_s5 + $0x190] sm:$0xf0] }
  0x20   :  { %454 = vmatpush.bf16.msrb.mxu0 %v2863_v25  ;;  %6112 = vst [vmem:[#allocation7_spill] sm:$0xff] %v4084_v60  ;;  %v3117_v11 = vld [vmem:[%s5910_s5 + $0x1a8] sm:$0xf]  ;;  %v4117_v12 = vor.u32 %v3497_v9, %v3095_v10  ;;  %v3504_v13 = vld [vmem:[%s5910_s5 + $0x1b4] sm:$0xf0] }
  0x21   :  { %6113 = vst [vmem:[#allocation8_spill] sm:$0xff] %v4095_v0  ;;  %v4122_v14 = vor.u32 %v3504_v13, %v3117_v11  ;;  %v3077_v16 = vld [vmem:[%s5910_s5 + $0x160] sm:$0xf]  ;;  %v3495_v17 = vld [vmem:[%s5910_s5 + $0x16c] sm:$0xf0] }
  0x22   :  { %368 = vmatpush.bf16.msra.mxu1 %v2835_v29  ;;  %6114 = vst [vmem:[#allocation9_spill] sm:$0xff] %v4101_v2  ;;  %v4132_v18 = vor.u32 %v3495_v17, %v3077_v16  ;;  %v3493_v19 = vld [vmem:[%s5910_s5 + $0x164] sm:$0xf]  ;;  %v3079_v20 = vld [vmem:[%s5910_s5 + $0x170] sm:$0xf0] }
  0x23   :  { %397 = vmatpush.bf16.msra.mxu2 %v2839_v33  ;;  %426 = vmatpush.bf16.msra.mxu3 %v2843_v34  ;;  %6115 = vst [vmem:[#allocation10_spill] sm:$0xff] %v4117_v12  ;;  %v4142_v21 = vor.u32 %v3493_v19, %v3079_v20  ;;  %v3101_v22 = vld [vmem:[%s5910_s5 + $0x188] sm:$0xf]  ;;  %v3500_v23 = vld [vmem:[%s5910_s5 + $0x194] sm:$0xf0] }
  0x24   :  { %455 = vmatpush.bf16.msrb.mxu0 %v2847_v37  ;;  %6116 = vst [vmem:[#allocation11_spill] sm:$0xff] %v4122_v14  ;;  %v3061_v24 = vld [vmem:[%s5910_s5 + $0x140] sm:$0xf]  ;;  %v4153_v25 = vor.u32 %v3500_v23, %v3101_v22  ;;  %v3491_v26 = vld [vmem:[%s5910_s5 + $0x14c] sm:$0xf0] }
  0x25   :  { %6117 = vst [vmem:[#allocation12_spill] sm:$0xff] %v4132_v18  ;;  %v4159_v27 = vor.u32 %v3491_v26, %v3061_v24  ;;  %v3045_v31 = vld [vmem:[%s5910_s5 + $0x120] sm:$0xf]  ;;  %v3487_v32 = vld [vmem:[%s5910_s5 + $0x12c] sm:$0xf0] }
  0x26   :  { %2830 = vmatmul.msk.bf16.gmra.mxu0 %vm69_vm1, %v3447_v49  ;;  %749 = vmatpush.bf16.msrb.mxu1 %v4024_v40  ;;  %v3149_v49 = vld [vmem:[%s5910_s5 + $0x1e8] sm:$0xf]  ;;  %6118 = vst [vmem:[#allocation13_spill] sm:$0xff] %v4142_v21  ;;  %v4172_v33 = vor.u32 %v3487_v32, %v3045_v31  ;;  %v3489_v37 = vld [vmem:[%s5910_s5 + $0x144] sm:$0xf] }
  0x27   :  { %762 = vmatpush.bf16.msrb.mxu2 %v4036_v44  ;;  %v4059_v52 = vor.u32 %v3512_v51, %v3149_v49  ;;  %6119 = vst [vmem:[#allocation14_spill] sm:$0xff] %v4153_v25  ;;  %v3063_v38 = vld [vmem:[%s5910_s5 + $0x150] sm:$0xf0]  ;;  %v3085_v39 = vld [vmem:[%s5910_s5 + $0x168] sm:$0xf] }
  0x28   :  { %6120 = vst [vmem:[#allocation15_spill] sm:$0xff] %v4159_v27  ;;  %v4184_v41 = vor.u32 %v3489_v37, %v3063_v38  ;;  %v3496_v42 = vld [vmem:[%s5910_s5 + $0x174] sm:$0xf0]  ;;  %v3029_v43 = vld [vmem:[%s5910_s5 + $0x100] sm:$0xf] }
  0x29   :  { %775 = vmatpush.bf16.msrb.mxu3 %v4059_v52  ;;  %857 = vmatpush.bf16.msra.mxu0 %v4059_v52  ;;  %6121 = vst [vmem:[#allocation16_spill] sm:$0xff] %v4172_v33  ;;  %v3483_v45 = vld [vmem:[%s5910_s5 + $0x10c] sm:$0xf0]  ;;  %v4195_v47 = vor.u32 %v3496_v42, %v3085_v39  ;;  %v3510_v49 = vld [vmem:[%s5910_s5 + $0x1ec] sm:$0xf] }
  0x2a   :  { %750 = vmatpush.bf16.msrb.mxu1 %v4041_v46  ;;  %6122 = vst [vmem:[#allocation17_spill] sm:$0xff] %v4184_v41  ;;  %v4197_v48 = vor.u32 %v3483_v45, %v3029_v43  ;;  %v3151_v51 = vld [vmem:[%s5910_s5 + $0x1f8] sm:$0xf0]  ;;  %v3485_v55 = vld [vmem:[%s5910_s5 + $0x124] sm:$0xf] }
  0x2b   :  { %763 = vmatpush.bf16.msrb.mxu2 %v4054_v50  ;;  %6123 = vst [vmem:[#allocation18_spill] sm:$0xff] %v4195_v47  ;;  %v4205_v54 = vor.u32 %v3510_v49, %v3151_v51  ;;  %v3047_v58 = vld [vmem:[%s5910_s5 + $0x130] sm:$0xf0]  ;;  %v3069_v59 = vld [vmem:[%s5910_s5 + $0x148] sm:$0xf] }
  0x2c   :  { %6124 = vst [vmem:[#allocation19_spill] sm:$0xff] %v4197_v48  ;;  %v4218_v61 = vor.u32 %v3485_v55, %v3047_v58  ;;  %v3492_v62 = vld [vmem:[%s5910_s5 + $0x154] sm:$0xf0]  ;;  %v3506_v63 = vld [vmem:[%s5910_s5 + $0x1cc] sm:$0xf] }
  0x2d   :  { %776 = vmatpush.bf16.msrb.mxu3 %v4095_v0  ;;  %858 = vmatpush.bf16.msra.mxu0 %v4095_v0  ;;  %6125 = vst [vmem:[#allocation20_spill] sm:$0xff] %v4205_v54  ;;  %v3135_v1 = vld [vmem:[%s5910_s5 + $0x1d8] sm:$0xf0]  ;;  %v3031_v10 = vld [vmem:[%s5910_s5 + $0x110] sm:$0xf0] }
  0x2e   :  { %751 = vmatpush.bf16.msrb.mxu1 %v4069_v56  ;;  %6126 = vst [vmem:[#allocation21_spill] sm:$0xff] %v4218_v61  ;;  %v3119_v9 = vld [vmem:[%s5910_s5 + $0x1b8] sm:$0xf0]  ;;  %v3484_v16 = vld [vmem:[%s5910_s5 + $0x114] sm:$0xf0] }
  0x2f   :  { %764 = vmatpush.bf16.msrb.mxu2 %v4084_v60  ;;  %v3498_v24 = vld [vmem:[%s5910_s5 + $0x18c] sm:$0xf]  ;;  %v3103_v26 = vld [vmem:[%s5910_s5 + $0x198] sm:$0xf0] }
  0x30   :  { %v4286_v31 = vor.u32 %v3498_v24, %v3103_v26  ;;  %v3494_v32 = vld [vmem:[%s5910_s5 + $0x16c] sm:$0xf]  ;;  %v3071_v38 = vld [vmem:[%s5910_s5 + $0x158] sm:$0xf0] }
  0x31   :  { %777 = vmatpush.bf16.msrb.mxu3 %v4122_v14  ;;  %859 = vmatpush.bf16.msra.mxu0 %v4122_v14  ;;  %v3490_v37 = vld [vmem:[%s5910_s5 + $0x14c] sm:$0xf]  ;;  %v3055_v43 = vld [vmem:[%s5910_s5 + $0x138] sm:$0xf0] }
  0x32   :  { %752 = vmatpush.bf16.msrb.mxu1 %v4101_v2  ;;  %6133 = vst [vmem:[#allocation28_spill] sm:$0xff] %v4286_v31  ;;  %v4309_v39 = vor.u32 %v3490_v37, %v3071_v38  ;;  %v3486_v42 = vld [vmem:[%s5910_s5 + $0x12c] sm:$0xf]  ;;  %v3039_v58 = vld [vmem:[%s5910_s5 + $0x118] sm:$0xf0] }
  0x33   :  { %765 = vmatpush.bf16.msrb.mxu2 %v4117_v12  ;;  %v3482_v55 = vld [vmem:[%s5910_s5 + $0x10c] sm:$0xf] }
  0x34   :  { %6135 = vst [vmem:[#allocation30_spill] sm:$0xff] %v4309_v39 }
  0x35   :  { %778 = vmatpush.bf16.msrb.mxu3 %v4153_v25  ;;  %860 = vmatpush.bf16.msra.mxu0 %v4153_v25 }
  0x36   :  { %2831 = vmatmul.msk.bf16.gmra.mxu0 %vm69_vm1, %v3448_v53  ;;  %753 = vmatpush.bf16.msrb.mxu1 %v4132_v18 }
  0x37   :  { %766 = vmatpush.bf16.msrb.mxu2 %v4142_v21 }
  0x39   :  { %779 = vmatpush.bf16.msrb.mxu3 %v4195_v47  ;;  %861 = vmatpush.bf16.msra.mxu0 %v4195_v47 }
  0x3a   :  { %754 = vmatpush.bf16.msrb.mxu1 %v4159_v27 }
  0x3b   :  { %767 = vmatpush.bf16.msrb.mxu2 %v4184_v41 }
  0x3e   :  { %755 = vmatpush.bf16.msrb.mxu1 %v4172_v33 }
  0x3f   :  { %768 = vmatpush.bf16.msrb.mxu2 %v4218_v61 }
  0x42   :  { %756 = vmatpush.bf16.msrb.mxu1 %v4197_v48 }
  0x83   :  { %v95_v53 = vpop.f32.mrf.mxu0 }
  0x84   :  { %v96_v3 = vadd.f32 %v4075_v57, %v95_v53 }
  0x86   :  { %v115_v6 = vmax.f32 %v96_v3, 0.0  ;;  %v4230_v3 = vor.u32 %v3492_v62, %v3069_v59 }
  0x88   :  { %6127 = vst [vmem:[#allocation22_spill] sm:$0xff] %v4230_v3  ;;  %780 = vmatpush.bf16.msrb.mxu3 %v4230_v3  ;;  %862 = vmatpush.bf16.msra.mxu0 %v4230_v3 }
  0x8b   :  { %v97_v4 = vpop.f32.mrf.mxu0 }
  0x8c   :  { %v98_v5 = vadd.f32 %v4075_v57, %v97_v4  ;;  %v3053_v4 = vld [vmem:[%s5910_s5 + $0x128] sm:$0xf] }
  0x8e   :  { %v116_v7 = vmax.f32 %v98_v5, 0.0  ;;  %v3488_v5 = vld [vmem:[%s5910_s5 + $0x134] sm:$0xf0] }
  0x8f   :  { %v4256_v11 = vor.u32 %v3488_v5, %v3053_v4 }
  0x90   :  { %v187_v8 = vpack.c.bf16 %v116_v7, %v115_v6  ;;  %v4240_v6 = vor.u32 %v3506_v63, %v3135_v1  ;;  %v3481_v7 = vld [vmem:[%s5910_s5 + $0x104] sm:$0xf] }
  0x91   :  { %6129 = vst [vmem:[#allocation24_spill] sm:$0xff] %v4256_v11  ;;  %v4258_v13 = vor.u32 %v3481_v7, %v3031_v10  ;;  %781 = vmatpush.bf16.msrb.mxu3 %v4256_v11  ;;  %863 = vmatpush.bf16.msra.mxu0 %v4256_v11  ;;  %v576_v1 = vld [vmem:[%s5911_s1] sm:$0xff] }
  0x92   :  { %369 = vmatmul.bf16.vlgmr.msra.gmra.mxu1 %v187_v8  ;;  %398 = vmatmul.bf16.vlgmr.msra.gmra.mxu2 %v187_v8  ;;  %6128 = vst [vmem:[#allocation23_spill] sm:$0xff] %v4240_v6  ;;  %v588_v4 = vpack.c.bf16 %v576_v1, %v576_v1 }
  0x93   :  { %427 = vmatmul.bf16.vlgmr.msra.gmra.mxu3 %v187_v8  ;;  %456 = vmatmul.bf16.vlgmr.msrb.gmra.mxu0 %v187_v8  ;;  %v100_v15 = vpop.f32.mrf.mxu0  ;;  %v3502_v8 = vld [vmem:[%s5910_s5 + $0x1ac] sm:$0xf]  ;;  %6130 = vst [vmem:[#allocation25_spill] sm:$0xff] %v4258_v13 }
  0x94   :  { %v101_v28 = vadd.f32 %v4075_v57, %v100_v15  ;;  %788 = vmatpush.bf16.msra.mxu1 %v4205_v54  ;;  %v3037_v15 = vld [vmem:[%s5910_s5 + $0x108] sm:$0xf]  ;;  %v4269_v19 = vor.u32 %v3502_v8, %v3119_v9  ;;  %769 = vmatpush.bf16.msrb.mxu2 %v4258_v13 }
  0x95   :  { %v4274_v23 = vor.u32 %v3484_v16, %v3037_v15  ;;  %v191_v16 = vld [vmem:[%s5912_s6] sm:$0xf] }
  0x96   :  { %v117_v34 = vmax.f32 %v101_v28, 0.0  ;;  %6131 = vst [vmem:[#allocation26_spill] sm:$0xff] %v4269_v19  ;;  %v4371_v24 = vperm.slane %v191_v16, 2 }
  0x97   :  { %6132 = vst [vmem:[#allocation27_spill] sm:$0xff] %v4274_v23  ;;  %782 = vmatpush.bf16.msrb.mxu3 %v4274_v23  ;;  %864 = vmatpush.bf16.msra.mxu0 %v4274_v23 }
  0x98   :  { %789 = vmatpush.bf16.msra.mxu1 %v4240_v6  ;;  %831 = vmatpush.bf16.msra.mxu2 %v4024_v40 }
  0x9b   :  { %v102_v29 = vpop.f32.mrf.mxu0  ;;  %844 = vmatpush.bf16.msra.mxu3 %v4036_v44 }
  0x9c   :  { %v103_v30 = vadd.f32 %v4075_v57, %v102_v29  ;;  %790 = vmatpush.bf16.msra.mxu1 %v4269_v19  ;;  %832 = vmatpush.bf16.msra.mxu2 %v4041_v46 }
  0x9e   :  { %v118_v35 = vmax.f32 %v103_v30, 0.0 }
  0x9f   :  { %845 = vmatpush.bf16.msra.mxu3 %v4054_v50 }
  0xa0   :  { %v188_v36 = vpack.c.bf16 %v118_v35, %v117_v34  ;;  %v3087_v34 = vld [vmem:[%s5910_s5 + $0x178] sm:$0xf0]  ;;  %791 = vmatpush.bf16.msra.mxu1 %v4286_v31  ;;  %833 = vmatpush.bf16.msra.mxu2 %v4069_v56 }
  0xa2   :  { %374 = vmatmul.bf16.gmra.mxu1 %v188_v36  ;;  %403 = vmatmul.bf16.gmra.mxu2 %v188_v36 }
  0xa3   :  { %432 = vmatmul.bf16.gmra.mxu3 %v188_v36  ;;  %461 = vmatmul.bf16.gmra.mxu0 %v188_v36  ;;  %v105_v53 = vpop.f32.mrf.mxu0  ;;  %v4297_v36 = vor.u32 %v3494_v32, %v3087_v34 }
  0xa4   :  { %v106_v17 = vadd.f32 %v4075_v57, %v105_v53  ;;  %846 = vmatpush.bf16.msra.mxu3 %v4084_v60  ;;  %834 = vmatpush.bf16.msra.mxu2 %v4101_v2  ;;  %v4322_v53 = vor.u32 %v3486_v42, %v3055_v43 }
  0xa5   :  { %6134 = vst [vmem:[#allocation29_spill] sm:$0xff] %v4297_v36  ;;  %792 = vmatpush.bf16.msra.mxu1 %v4297_v36 }
  0xa6   :  { %v119_v28 = vmax.f32 %v106_v17, 0.0  ;;  %6136 = vst [vmem:[#allocation31_spill] sm:$0xff] %v4322_v53  ;;  %v4365_v17 = vperm.slane %v191_v16, 0 }
  0xa8   :  { %847 = vmatpush.bf16.msra.mxu3 %v4117_v12  ;;  %835 = vmatpush.bf16.msra.mxu2 %v4132_v18 }
  0xa9   :  { %793 = vmatpush.bf16.msra.mxu1 %v4309_v39 }
  0xab   :  { %v107_v20 = vpop.f32.mrf.mxu0 }
  0xac   :  { %v108_v22 = vadd.f32 %v4075_v57, %v107_v20  ;;  %848 = vmatpush.bf16.msra.mxu3 %v4142_v21  ;;  %836 = vmatpush.bf16.msra.mxu2 %v4159_v27  ;;  %v4367_v20 = vperm.slane %v191_v16, 1 }
  0xad   :  { %794 = vmatpush.bf16.msra.mxu1 %v4322_v53 }
  0xae   :  { %v120_v29 = vmax.f32 %v108_v22, 0.0  ;;  %v4369_v22 = vperm.slane %v191_v16, 3 }
  0xb0   :  { %v189_v30 = vpack.c.bf16 %v120_v29, %v119_v28  ;;  %849 = vmatpush.bf16.msra.mxu3 %v4184_v41  ;;  %837 = vmatpush.bf16.msra.mxu2 %v4172_v33 }
  0xb2   :  { %379 = vmatmul.bf16.gmra.mxu1 %v189_v30  ;;  %408 = vmatmul.bf16.gmra.mxu2 %v189_v30 }
  0xb3   :  { %437 = vmatmul.bf16.gmra.mxu3 %v189_v30  ;;  %466 = vmatmul.bf16.gmra.mxu0 %v189_v30  ;;  %v110_v35 = vpop.f32.mrf.mxu0 }
  0xb4   :  { %v111_v45 = vadd.f32 %v4075_v57, %v110_v35  ;;  %850 = vmatpush.bf16.msra.mxu3 %v4218_v61  ;;  %838 = vmatpush.bf16.msra.mxu2 %v4197_v48 }
  0xb6   :  { %v121_v59 = vmax.f32 %v111_v45, 0.0 }
  0xb8   :  { %851 = vmatpush.bf16.msra.mxu3 %v4258_v13 }
  0xbb   :  { %v112_v49 = vpop.f32.mrf.mxu0 }
  0xbc   :  { %v113_v51 = vadd.f32 %v4075_v57, %v112_v49  ;;  %v4333_v57 = vor.u32 %v3482_v55, %v3039_v58 }
  0xbe   :  { %v122_v62 = vmax.f32 %v113_v51, 0.0  ;;  %6137 = vst [vmem:[#allocation32_spill] sm:$0xff] %v4333_v57  ;;  %795 = vmatpush.bf16.msra.mxu1 %v4333_v57 }
  0xc0   :  { %v190_v63 = vpack.c.bf16 %v122_v62, %v121_v59 }
  0xc2   :  { %384 = vmatmul.bf16.gmra.mxu1 %v190_v63  ;;  %413 = vmatmul.bf16.gmra.mxu2 %v190_v63 }
  0xc3   :  { %442 = vmatmul.bf16.gmra.mxu3 %v190_v63  ;;  %471 = vmatmul.bf16.gmra.mxu0 %v190_v63 }
  0xd2   :  { %757 = vmatmul.bf16.vlgmr.msrb.gmra.mxu1 %v588_v4  ;;  %770 = vmatmul.bf16.vlgmr.msrb.gmra.mxu2 %v588_v4 }
  0xd3   :  { %783 = vmatmul.bf16.vlgmr.msrb.gmra.mxu3 %v588_v4  ;;  %870 = vmatpush.bf16.msrb.mxu1 %v4205_v54 }
  0xd7   :  { %871 = vmatpush.bf16.msrb.mxu1 %v4240_v6 }
  0xdb   :  { %872 = vmatpush.bf16.msrb.mxu1 %v4269_v19 }
  0xdf   :  { %873 = vmatpush.bf16.msrb.mxu1 %v4286_v31 }
  0xe2   :  { %796 = vmatmul.bf16.vlgmr.msra.gmra.mxu1 %v588_v4 }
  0xe3   :  { %874 = vmatpush.bf16.msrb.mxu1 %v4297_v36 }
  0xe7   :  { %875 = vmatpush.bf16.msrb.mxu1 %v4309_v39 }
  0xeb   :  { %876 = vmatpush.bf16.msrb.mxu1 %v4322_v53 }
  0xef   :  { %877 = vmatpush.bf16.msrb.mxu1 %v4333_v57 }
 0x10f   :  { %v4354_v5 = vpop.f32.mrf.mxu1 }
 0x110   :  { %v4356_v7 = vpop.f32.mrf.mxu0 }
 0x115   :  { %v4358_v8 = vpop.f32.mrf.mxu2 }
 0x116   :  { %v4360_v9 = vpop.f32.mrf.mxu3 }
 0x117   :  { %v372_v10 = vpop.f32.mrf.mxu1 }
 0x118   :  { %v459_v15 = vpop.f32.mrf.mxu0  ;;  %v373_v28 = vadd.f32 %v372_v10, %v4365_v17 }
 0x119   :  { %v460_v32 = vadd.f32 %v459_v15, %v4369_v22 }
 0x11d   :  { %v401_v26 = vpop.f32.mrf.mxu2 }
 0x11e   :  { %v402_v29 = vadd.f32 %v401_v26, %v4367_v20  ;;  %v430_v30 = vpop.f32.mrf.mxu3 }
 0x11f   :  { %v431_v34 = vadd.f32 %v430_v30, %v4371_v24  ;;  %v375_v35 = vpop.f32.mrf.mxu1 }
 0x120   :  { %v4377_v37 = vpack.c.bf16 %v402_v29, %v373_v28  ;;  %v376_v38 = vadd.f32 %v375_v35, %v4365_v17  ;;  %v462_v42 = vpop.f32.mrf.mxu0 }
 0x121   :  { %v4380_v43 = vpack.c.bf16 %v460_v32, %v431_v34  ;;  %v463_v45 = vadd.f32 %v462_v42, %v4369_v22 }
 0x122   :  { %6138 = vst [vmem:[#allocation33_spill] sm:$0xff] %v4377_v37  ;;  %v3563_v37 = vld [vmem:[%s5910_s5 + $0x38c] sm:$0xf0] }
 0x123   :  { %6139 = vst [vmem:[#allocation34_spill] sm:$0xff] %v4380_v43 }
 0x125   :  { %v404_v49 = vpop.f32.mrf.mxu2 }
 0x126   :  { %v405_v51 = vadd.f32 %v404_v49, %v4367_v20  ;;  %v433_v55 = vpop.f32.mrf.mxu3 }
 0x127   :  { %v434_v58 = vadd.f32 %v433_v55, %v4371_v24  ;;  %v377_v59 = vpop.f32.mrf.mxu1 }
 0x128   :  { %v4385_v62 = vpack.c.bf16 %v405_v51, %v376_v38  ;;  %v464_v63 = vpop.f32.mrf.mxu0  ;;  %v378_v10 = vadd.f32 %v377_v59, %v4365_v17 }
 0x129   :  { %v4387_v1 = vpack.c.bf16 %v463_v45, %v434_v58  ;;  %v465_v26 = vadd.f32 %v464_v63, %v4369_v22 }
 0x12a   :  { %6140 = vst [vmem:[#allocation35_spill] sm:$0xff] %v4385_v62 }
 0x12b   :  { %6141 = vst [vmem:[#allocation36_spill] sm:$0xff] %v4387_v1  ;;  %v3383_v1 = vld [vmem:[%s5910_s5 + $0x3d0] sm:$0xf0] }
 0x12d   :  { %v406_v4 = vpop.f32.mrf.mxu2 }
 0x12e   :  { %v407_v15 = vadd.f32 %v406_v4, %v4367_v20  ;;  %v435_v16 = vpop.f32.mrf.mxu3  ;;  %v3269_v4 = vld [vmem:[%s5910_s5 + $0x2e0] sm:$0xf] }
 0x12f   :  { %v436_v28 = vadd.f32 %v435_v16, %v4371_v24  ;;  %v380_v29 = vpop.f32.mrf.mxu1 }
 0x130   :  { %v4393_v30 = vpack.c.bf16 %v407_v15, %v378_v10  ;;  %v381_v32 = vadd.f32 %v380_v29, %v4365_v17  ;;  %v467_v34 = vpop.f32.mrf.mxu0  ;;  %v3543_v10 = vld [vmem:[%s5910_s5 + $0x2ec] sm:$0xf0]  ;;  %v3397_v15 = vld [vmem:[%s5910_s5 + $0x3e0] sm:$0xf]  ;;  %v3271_v29 = vld [vmem:[%s5910_s5 + $0x2f0] sm:$0xf0] }
 0x131   :  { %v4396_v35 = vpack.c.bf16 %v465_v26, %v436_v28  ;;  %v468_v38 = vadd.f32 %v467_v34, %v4369_v22  ;;  %v4414_v16 = vor.u32 %v3543_v10, %v3269_v4  ;;  %v3575_v26 = vld [vmem:[%s5910_s5 + $0x3ec] sm:$0xf0]  ;;  %v3541_v28 = vld [vmem:[%s5910_s5 + $0x2e4] sm:$0xf] }
 0x132   :  { %6142 = vst [vmem:[#allocation37_spill] sm:$0xff] %v4393_v30  ;;  %v4427_v34 = vor.u32 %v3541_v28, %v3271_v29  ;;  %v3381_v28 = vld [vmem:[%s5910_s5 + $0x3c0] sm:$0xf] }
 0x133   :  { %6143 = vst [vmem:[#allocation38_spill] sm:$0xff] %v4396_v35  ;;  %1235 = vmatpush.bf16.msrb.mxu2 %v4414_v16 }
 0x134   :  { %6146 = vst [vmem:[#allocation41_spill] sm:$0xff] %v4414_v16  ;;  %1261 = vmatpush.bf16.msrb.mxu0 %v4427_v34 }
 0x135   :  { %v409_v42 = vpop.f32.mrf.mxu2  ;;  %6148 = vst [vmem:[#allocation43_spill] sm:$0xff] %v4427_v34 }
 0x136   :  { %v410_v45 = vadd.f32 %v409_v42, %v4367_v20  ;;  %v438_v49 = vpop.f32.mrf.mxu3  ;;  %v3399_v42 = vld [vmem:[%s5910_s5 + $0x3f0] sm:$0xf0] }
 0x137   :  { %v439_v51 = vadd.f32 %v438_v49, %v4371_v24  ;;  %v382_v55 = vpop.f32.mrf.mxu1 }
 0x138   :  { %v4401_v58 = vpack.c.bf16 %v410_v45, %v381_v32  ;;  %v469_v59 = vpop.f32.mrf.mxu0  ;;  %v4425_v32 = vor.u32 %v3575_v26, %v3397_v15  ;;  %v3253_v15 = vld [vmem:[%s5910_s5 + $0x2c0] sm:$0xf]  ;;  %v3539_v26 = vld [vmem:[%s5910_s5 + $0x2cc] sm:$0xf0] }
 0x139   :  { %v4403_v63 = vpack.c.bf16 %v468_v38, %v439_v51  ;;  %v3573_v38 = vld [vmem:[%s5910_s5 + $0x3e4] sm:$0xf]  ;;  %v383_v51 = vadd.f32 %v382_v55, %v4365_v17  ;;  %v470_v55 = vadd.f32 %v469_v59, %v4369_v22 }
 0x13a   :  { %6144 = vst [vmem:[#allocation39_spill] sm:$0xff] %v4401_v58  ;;  %v4436_v49 = vor.u32 %v3573_v38, %v3399_v42  ;;  %1248 = vmatpush.bf16.msrb.mxu3 %v4425_v32  ;;  %v4454_v42 = vor.u32 %v3539_v26, %v3253_v15  ;;  %v3255_v58 = vld [vmem:[%s5910_s5 + $0x2d0] sm:$0xf0]  ;;  %v3569_v26 = vld [vmem:[%s5910_s5 + $0x3c4] sm:$0xf] }
 0x13b   :  { %6145 = vst [vmem:[#allocation40_spill] sm:$0xff] %v4403_v63  ;;  %v3537_v63 = vld [vmem:[%s5910_s5 + $0x2c4] sm:$0xf] }
 0x13c   :  { %6147 = vst [vmem:[#allocation42_spill] sm:$0xff] %v4425_v32  ;;  %1274 = vmatpush.bf16.msra.mxu1 %v4436_v49  ;;  %v4470_v15 = vor.u32 %v3537_v63, %v3255_v58  ;;  %1236 = vmatpush.bf16.msrb.mxu2 %v4454_v42  ;;  %v3237_v58 = vld [vmem:[%s5910_s5 + $0x2a0] sm:$0xf]  ;;  %v3535_v63 = vld [vmem:[%s5910_s5 + $0x2ac] sm:$0xf0] }
 0x13d   :  { %v411_v45 = vpop.f32.mrf.mxu2  ;;  %6149 = vst [vmem:[#allocation44_spill] sm:$0xff] %v4436_v49 }
 0x13e   :  { %v412_v4 = vadd.f32 %v411_v45, %v4367_v20  ;;  %v440_v10 = vpop.f32.mrf.mxu3  ;;  %6150 = vst [vmem:[#allocation45_spill] sm:$0xff] %v4454_v42  ;;  %v3571_v45 = vld [vmem:[%s5910_s5 + $0x3cc] sm:$0xf0]  ;;  %1262 = vmatpush.bf16.msrb.mxu0 %v4470_v15 }
 0x13f   :  { %v441_v29 = vadd.f32 %v440_v10, %v4371_v24  ;;  %v385_v38 = vpop.f32.mrf.mxu1  ;;  %v4468_v30 = vor.u32 %v3571_v45, %v3381_v28  ;;  %6153 = vst [vmem:[#allocation48_spill] sm:$0xff] %v4470_v15  ;;  %v3567_v28 = vld [vmem:[%s5910_s5 + $0x3ac] sm:$0xf0] }
 0x140   :  { %v4465_v59 = vpack.c.bf16 %v412_v4, %v383_v51  ;;  %v386_v10 = vadd.f32 %v385_v38, %v4365_v17  ;;  %v472_v35 = vpop.f32.mrf.mxu0  ;;  %v4482_v4 = vor.u32 %v3569_v26, %v3383_v1  ;;  %v4496_v1 = vor.u32 %v3535_v63, %v3237_v58  ;;  %v3565_v26 = vld [vmem:[%s5910_s5 + $0x3a4] sm:$0xf]  ;;  %v3367_v58 = vld [vmem:[%s5910_s5 + $0x3b0] sm:$0xf0] }
 0x141   :  { %6152 = vst [vmem:[#allocation47_spill] sm:$0xff] %v4468_v30  ;;  %v4478_v62 = vpack.c.bf16 %v470_v55, %v441_v29  ;;  %v473_v51 = vadd.f32 %v472_v35, %v4369_v22  ;;  %1249 = vmatpush.bf16.msrb.mxu3 %v4468_v30  ;;  %v3365_v35 = vld [vmem:[%s5910_s5 + $0x3a0] sm:$0xf]  ;;  %v3533_v55 = vld [vmem:[%s5910_s5 + $0x2a4] sm:$0xf] }
 0x142   :  { %6151 = vst [vmem:[#allocation46_spill] sm:$0xff] %v4465_v59  ;;  %1275 = vmatpush.bf16.msra.mxu1 %v4482_v4  ;;  %v3239_v29 = vld [vmem:[%s5910_s5 + $0x2b0] sm:$0xf0]  ;;  %v4507_v38 = vor.u32 %v3567_v28, %v3365_v35  ;;  %1237 = vmatpush.bf16.msrb.mxu2 %v4496_v1  ;;  %v3221_v35 = vld [vmem:[%s5910_s5 + $0x280] sm:$0xf] }
 0x143   :  { %6154 = vst [vmem:[#allocation49_spill] sm:$0xff] %v4478_v62  ;;  %v4509_v45 = vor.u32 %v3533_v55, %v3239_v29  ;;  %v4518_v62 = vor.u32 %v3565_v26, %v3367_v58  ;;  %v3531_v28 = vld [vmem:[%s5910_s5 + $0x28c] sm:$0xf0]  ;;  %v3349_v55 = vld [vmem:[%s5910_s5 + $0x380] sm:$0xf]  ;;  %v400_v29 = vadd.f32 %v4358_v8, %v4367_v20 }
 0x144   :  { %6155 = vst [vmem:[#allocation50_spill] sm:$0xff] %v4482_v4 }
 0x145   :  { %6156 = vst [vmem:[#allocation51_spill] sm:$0xff] %v4496_v1  ;;  %v414_v63 = vpop.f32.mrf.mxu2  ;;  %1250 = vmatpush.bf16.msrb.mxu3 %v4507_v38  ;;  %1263 = vmatpush.bf16.msrb.mxu0 %v4509_v45 }
 0x146   :  { %6157 = vst [vmem:[#allocation52_spill] sm:$0xff] %v4507_v38  ;;  %v415_v59 = vadd.f32 %v414_v63, %v4367_v20  ;;  %v443_v43 = vpop.f32.mrf.mxu3  ;;  %1276 = vmatpush.bf16.msra.mxu1 %v4518_v62  ;;  %v4536_v63 = vor.u32 %v3531_v28, %v3221_v35  ;;  %v3529_v38 = vld [vmem:[%s5910_s5 + $0x284] sm:$0xf]  ;;  %v3351_v28 = vld [vmem:[%s5910_s5 + $0x390] sm:$0xf0] }
 0x147   :  { %6158 = vst [vmem:[#allocation53_spill] sm:$0xff] %v4509_v45  ;;  %v444_v26 = vadd.f32 %v443_v43, %v4371_v24  ;;  %v387_v58 = vpop.f32.mrf.mxu1  ;;  %v3223_v45 = vld [vmem:[%s5910_s5 + $0x290] sm:$0xf0]  ;;  %v4549_v43 = vor.u32 %v3563_v37, %v3349_v55  ;;  %v3561_v35 = vld [vmem:[%s5910_s5 + $0x384] sm:$0xf] }
 0x148   :  { %6159 = vst [vmem:[#allocation54_spill] sm:$0xff] %v4518_v62  ;;  %v4547_v8 = vpack.c.bf16 %v415_v59, %v386_v10  ;;  %v4551_v1 = vor.u32 %v3529_v38, %v3223_v45  ;;  %v371_v62 = vadd.f32 %v4354_v5, %v4365_v17  ;;  %1238 = vmatpush.bf16.msrb.mxu2 %v4536_v63  ;;  %v3205_v37 = vld [vmem:[%s5910_s5 + $0x260] sm:$0xf]  ;;  %v3527_v10 = vld [vmem:[%s5910_s5 + $0x26c] sm:$0xf0] }
 0x149   :  { %6160 = vst [vmem:[#allocation55_spill] sm:$0xff] %v4536_v63  ;;  %v4561_v4 = vpack.c.bf16 %v473_v51, %v444_v26  ;;  %v4564_v59 = vor.u32 %v3561_v35, %v3351_v28  ;;  %1251 = vmatpush.bf16.msrb.mxu3 %v4549_v43  ;;  %v3333_v5 = vld [vmem:[%s5910_s5 + $0x360] sm:$0xf]  ;;  %v4578_v38 = vor.u32 %v3527_v10, %v3205_v37  ;;  %v3559_v45 = vld [vmem:[%s5910_s5 + $0x36c] sm:$0xf0]  ;;  %v474_v35 = vpop.f32.mrf.mxu0 }
 0x14a   :  { %6161 = vst [vmem:[#allocation56_spill] sm:$0xff] %v4547_v8  ;;  %1264 = vmatpush.bf16.msrb.mxu0 %v4551_v1  ;;  %v477_v51 = vpack.c.bf16 %v400_v29, %v371_v62  ;;  %v3525_v55 = vld [vmem:[%s5910_s5 + $0x264] sm:$0xf]  ;;  %v3207_v26 = vld [vmem:[%s5910_s5 + $0x270] sm:$0xf0]  ;;  %v4589_v28 = vor.u32 %v3559_v45, %v3333_v5  ;;  %v388_v8 = vadd.f32 %v387_v58, %v4365_v17 }
 0x14b   :  { %6162 = vst [vmem:[#allocation57_spill] sm:$0xff] %v4549_v43  ;;  %1277 = vmatpush.bf16.msra.mxu1 %v4564_v59  ;;  %v4591_v62 = vor.u32 %v3525_v55, %v3207_v26  ;;  %v3557_v29 = vld [vmem:[%s5910_s5 + $0x364] sm:$0xf]  ;;  %v3335_v37 = vld [vmem:[%s5910_s5 + $0x370] sm:$0xf0]  ;;  %v475_v17 = vadd.f32 %v474_v35, %v4369_v22 }
 0x14c   :  { %6163 = vst [vmem:[#allocation58_spill] sm:$0xff] %v4551_v1  ;;  %1239 = vmatpush.bf16.msrb.mxu2 %v4578_v38  ;;  %v3189_v55 = vld [vmem:[%s5910_s5 + $0x240] sm:$0xf]  ;;  %v3523_v26 = vld [vmem:[%s5910_s5 + $0x24c] sm:$0xf0]  ;;  %v584_v58 = vunpack.c.l.bf16 %v477_v51 }
 0x14d   :  { %6164 = vst [vmem:[#allocation59_spill] sm:$0xff] %v4561_v4  ;;  %v416_v10 = vpop.f32.mrf.mxu2  ;;  %v4600_v4 = vor.u32 %v3557_v29, %v3335_v37  ;;  %1252 = vmatpush.bf16.msrb.mxu3 %v4589_v28  ;;  %v3317_v29 = vld [vmem:[%s5910_s5 + $0x340] sm:$0xf]  ;;  %v3191_v35 = vld [vmem:[%s5910_s5 + $0x250] sm:$0xf0] }
 0x14e   :  { %6165 = vst [vmem:[#allocation60_spill] sm:$0xff] %v4564_v59  ;;  %v417_v5 = vadd.f32 %v416_v10, %v4367_v20  ;;  %v445_v45 = vpop.f32.mrf.mxu3  ;;  %1265 = vmatpush.bf16.msrb.mxu0 %v4591_v62  ;;  %v4618_v10 = vor.u32 %v3523_v26, %v3189_v55  ;;  %v3553_v55 = vld [vmem:[%s5910_s5 + $0x344] sm:$0xf]  ;;  %v3319_v26 = vld [vmem:[%s5910_s5 + $0x350] sm:$0xf0] }
 0x14f   :  { %6166 = vst [vmem:[#allocation61_spill] sm:$0xff] %v4578_v38  ;;  %v446_v20 = vadd.f32 %v445_v45, %v4371_v24  ;;  %v758_v37 = vpop.f32.mrf.mxu1  ;;  %1278 = vmatpush.bf16.msra.mxu1 %v4600_v4  ;;  %v4644_v1 = vor.u32 %v3553_v55, %v3319_v26  ;;  %v458_v55 = vadd.f32 %v4356_v7, %v4369_v22  ;;  %v3515_v7 = vld [vmem:[%s5910_s5 + $0x20c] sm:$0xf0]  ;;  %v3285_v22 = vld [vmem:[%s5910_s5 + $0x300] sm:$0xf] }
 0x150   :  { %6167 = vst [vmem:[#allocation62_spill] sm:$0xff] %v4589_v28  ;;  %v3555_v28 = vld [vmem:[%s5910_s5 + $0x34c] sm:$0xf0]  ;;  %v4629_v38 = vpack.c.bf16 %v417_v5, %v388_v8  ;;  %v801_v43 = vadd.f32 %v758_v37, %v584_v58  ;;  %1240 = vmatpush.bf16.msrb.mxu2 %v4618_v10  ;;  %v3173_v8 = vld [vmem:[%s5910_s5 + $0x220] sm:$0xf]  ;;  %v585_v58 = vunpack.c.h.bf16 %v477_v51 }
 0x151   :  { %6168 = vst [vmem:[#allocation63_spill] sm:$0xff] %v4591_v62  ;;  %v3521_v62 = vld [vmem:[%s5910_s5 + $0x244] sm:$0xf]  ;;  %v4631_v45 = vor.u32 %v3555_v28, %v3317_v29  ;;  %v3519_v28 = vld [vmem:[%s5910_s5 + $0x22c] sm:$0xf0] }
 0x152   :  { %6169 = vst [vmem:[#allocation64_spill] sm:$0xff] %v4600_v4  ;;  %v4633_v59 = vor.u32 %v3521_v62, %v3191_v35  ;;  %v4641_v4 = vpack.c.bf16 %v475_v17, %v446_v20  ;;  %v429_v62 = vadd.f32 %v4360_v9, %v4371_v24  ;;  %v4657_v5 = vor.u32 %v3519_v28, %v3173_v8  ;;  %v3301_v29 = vld [vmem:[%s5910_s5 + $0x320] sm:$0xf]  ;;  %v3551_v17 = vld [vmem:[%s5910_s5 + $0x32c] sm:$0xf0] }
 0x153   :  { %6170 = vst [vmem:[#allocation65_spill] sm:$0xff] %v4618_v10  ;;  %1253 = vmatpush.bf16.msrb.mxu3 %v4631_v45  ;;  %1279 = vmatpush.bf16.msra.mxu1 %v4644_v1  ;;  %v3517_v20 = vld [vmem:[%s5910_s5 + $0x224] sm:$0xf]  ;;  %v4668_v37 = vor.u32 %v3551_v17, %v3301_v29  ;;  %v3175_v9 = vld [vmem:[%s5910_s5 + $0x230] sm:$0xf0]  ;;  %v805_v26 = vmul.f32 0.5, %v801_v43 }
 0x154   :  { %6171 = vst [vmem:[#allocation66_spill] sm:$0xff] %v4629_v38  ;;  %1266 = vmatpush.bf16.msrb.mxu0 %v4633_v59  ;;  %v3549_v24 = vld [vmem:[%s5910_s5 + $0x324] sm:$0xf]  ;;  %v3303_v35 = vld [vmem:[%s5910_s5 + $0x330] sm:$0xf0]  ;;  %1241 = vmatpush.bf16.msrb.mxu2 %v4657_v5  ;;  %v4682_v51 = vor.u32 %v3517_v20, %v3175_v9  ;;  %v478_v43 = vpack.c.bf16 %v458_v55, %v429_v62 }
 0x155   :  { %6172 = vst [vmem:[#allocation67_spill] sm:$0xff] %v4631_v45  ;;  %v771_v8 = vpop.f32.mrf.mxu2  ;;  %v4684_v28 = vor.u32 %v3549_v24, %v3303_v35  ;;  %v3547_v9 = vld [vmem:[%s5910_s5 + $0x30c] sm:$0xf0]  ;;  %v3513_v24 = vld [vmem:[%s5910_s5 + $0x204] sm:$0xf]  ;;  %3587 = vtanh.f32 %v805_v26 }
 0x156   :  { %6173 = vst [vmem:[#allocation68_spill] sm:$0xff] %v4633_v59  ;;  %v802_v29 = vadd.f32 %v771_v8, %v585_v58  ;;  %v784_v17 = vpop.f32.mrf.mxu3  ;;  %v3159_v35 = vld [vmem:[%s5910_s5 + $0x210] sm:$0xf0]  ;;  %v4709_v55 = vor.u32 %v3547_v9, %v3285_v22 }
 0x157   :  { %6174 = vst [vmem:[#allocation69_spill] sm:$0xff] %v4641_v4  ;;  %1254 = vmatpush.bf16.msrb.mxu3 %v4668_v37  ;;  %v3157_v4 = vld [vmem:[%s5910_s5 + $0x200] sm:$0xf]  ;;  %v760_v20 = vpop.f32.mrf.mxu1  ;;  %1280 = vmatpush.bf16.msra.mxu1 %v4684_v28  ;;  %v4711_v8 = vor.u32 %v3513_v24, %v3159_v35  ;;  %v587_v24 = vunpack.c.h.bf16 %v478_v43 }
 0x158   :  { %6175 = vst [vmem:[#allocation70_spill] sm:$0xff] %v4644_v1  ;;  %1267 = vmatpush.bf16.msrb.mxu0 %v4682_v51  ;;  %v4698_v58 = vor.u32 %v3515_v7, %v3157_v4  ;;  %v806_v62 = vmul.f32 0.5, %v802_v29  ;;  %v3545_v4 = vld [vmem:[%s5910_s5 + $0x304] sm:$0xf]  ;;  %v3287_v7 = vld [vmem:[%s5910_s5 + $0x310] sm:$0xf0]  ;;  %v586_v29 = vunpack.c.l.bf16 %v478_v43 }
 0x159   :  { %6176 = vst [vmem:[#allocation71_spill] sm:$0xff] %v4657_v5  ;;  %v4720_v20 = vor.u32 %v3545_v4, %v3287_v7  ;;  %v579_v7 = vld [vmem:[%s5913_s2] sm:$0xff] }
 0x15a   :  { %6177 = vst [vmem:[#allocation72_spill] sm:$0xff] %v4668_v37  ;;  %1242 = vmatpush.bf16.msrb.mxu2 %v4698_v58  ;;  %3589 = vtanh.f32 %v806_v62  ;;  %v803_v22 = vadd.f32 %v784_v17, %v586_v29 }
 0x15b   :  { %6178 = vst [vmem:[#allocation73_spill] sm:$0xff] %v4682_v51  ;;  %1255 = vmatpush.bf16.msrb.mxu3 %v4709_v55  ;;  %1281 = vmatpush.bf16.msra.mxu1 %v4720_v20  ;;  %v3588_v38 = vpop.eup %3587 }
 0x15c   :  { %6179 = vst [vmem:[#allocation74_spill] sm:$0xff] %v4684_v28  ;;  %1268 = vmatpush.bf16.msrb.mxu0 %v4711_v8  ;;  %v811_v4 = vmul.f32 0.5, %v3588_v38  ;;  %v3277_v38 = vld [vmem:[%s5910_s5 + $0x2e8] sm:$0xf] }
 0x15d   :  { %6180 = vst [vmem:[#allocation75_spill] sm:$0xff] %v4698_v58  ;;  %v773_v9 = vpop.f32.mrf.mxu2  ;;  %v807_v58 = vmul.f32 0.5, %v803_v22  ;;  %v3542_v22 = vld [vmem:[%s5910_s5 + $0x2ec] sm:$0xf] }
 0x15e   :  { %6181 = vst [vmem:[#allocation76_spill] sm:$0xff] %v4709_v55  ;;  %v786_v35 = vpop.f32.mrf.mxu3  ;;  %v814_v55 = vadd.f32 0.5, %v811_v4  ;;  %v3574_v4 = vld [vmem:[%s5910_s5 + $0x3ec] sm:$0xf] }
 0x15f   :  { %6182 = vst [vmem:[#allocation77_spill] sm:$0xff] %v4711_v8  ;;  %v797_v28 = vpop.f32.mrf.mxu1 }
 0x160   :  { %6183 = vst [vmem:[#allocation78_spill] sm:$0xff] %v4720_v20  ;;  %v3590_v37 = vpop.eup %3589  ;;  %v804_v26 = vadd.f32 %v797_v28, %v587_v24 }
 0x161   :  { %v812_v51 = vmul.f32 0.5, %v3590_v37 }
 0x162   :  { %3591 = vtanh.f32 %v804_v26  ;;  %v3279_v26 = vld [vmem:[%s5910_s5 + $0x2f8] sm:$0xf0] }
 0x163   :  { %v815_v62 = vadd.f32 0.5, %v812_v51  ;;  %3593 = vtanh.f32 %v807_v58  ;;  %v3544_v51 = vld [vmem:[%s5910_s5 + $0x2f4] sm:$0xf0] }
 0x165   :  { %v818_v29 = vmul.f32 %v815_v62, %v579_v7  ;;  %v3407_v62 = vld [vmem:[%s5910_s5 + $0x3f8] sm:$0xf0] }
 0x167   :  { %v799_v20 = vpop.f32.mrf.mxu1 }
 0x168   :  { %v3592_v17 = vpop.eup %3591  ;;  %v3576_v20 = vld [vmem:[%s5910_s5 + $0x3f4] sm:$0xf0] }
 0x169   :  { %v819_v43 = vmul.f32 %v3592_v17, %v814_v55  ;;  %v3594_v9 = vpop.eup %3593  ;;  %v3405_v55 = vld [vmem:[%s5910_s5 + $0x3e8] sm:$0xf]  ;;  %v4757_v17 = vor.u32 %v3544_v51, %v3277_v38  ;;  %v3572_v38 = vld [vmem:[%s5910_s5 + $0x3d4] sm:$0xf0]  ;;  %v3538_v51 = vld [vmem:[%s5910_s5 + $0x2cc] sm:$0xf] }
 0x16a   :  { %v813_v37 = vmul.f32 0.5, %v3594_v9  ;;  %v3540_v9 = vld [vmem:[%s5910_s5 + $0x2d4] sm:$0xf0] }
 0x16b   :  { %v4728_v35 = vadd.f32 %v819_v43, %v818_v29  ;;  %6185 = vst [vmem:[#allocation80_spill] sm:$0xff] %v4757_v17  ;;  %v4759_v29 = vor.u32 %v3576_v20, %v3405_v55  ;;  %v3261_v43 = vld [vmem:[%s5910_s5 + $0x2c8] sm:$0xf]  ;;  %v3263_v55 = vld [vmem:[%s5910_s5 + $0x2d8] sm:$0xf0] }
 0x16c   :  { %v816_v28 = vadd.f32 0.5, %v813_v37  ;;  %v4767_v37 = vor.u32 %v3542_v22, %v3279_v26  ;;  %v3570_v20 = vld [vmem:[%s5910_s5 + $0x3cc] sm:$0xf]  ;;  %v3391_v22 = vld [vmem:[%s5910_s5 + $0x3d8] sm:$0xf0] }
 0x16d   :  { %6184 = vst [vmem:[#allocation79_spill] sm:$0xff] %v4728_v35  ;;  %3595 = vtanh.f32 %v4728_v35  ;;  %v4807_v35 = vor.u32 %v3538_v51, %v3263_v55  ;;  %v3566_v51 = vld [vmem:[%s5910_s5 + $0x3ac] sm:$0xf]  ;;  %v3375_v55 = vld [vmem:[%s5910_s5 + $0x3b8] sm:$0xf0] }
 0x16e   :  { %6186 = vst [vmem:[#allocation81_spill] sm:$0xff] %v4759_v29 }
 0x16f   :  { %6187 = vst [vmem:[#allocation82_spill] sm:$0xff] %v4767_v37 }
 0x170   :  { %6191 = vst [vmem:[#allocation86_spill] sm:$0xff] %v4807_v35 }
 0x173   :  { %v3596_v58 = vpop.eup %3595 }
 0x174   :  { %v822_v24 = vmul.f32 %v3596_v58, %v816_v28  ;;  %v4769_v28 = vor.u32 %v3574_v4, %v3407_v62  ;;  %v3389_v58 = vld [vmem:[%s5910_s5 + $0x3c8] sm:$0xf]  ;;  %v3536_v62 = vld [vmem:[%s5910_s5 + $0x2b4] sm:$0xf0] }
 0x175   :  { %v4797_v26 = vor.u32 %v3572_v38, %v3389_v58  ;;  %v3245_v4 = vld [vmem:[%s5910_s5 + $0x2a8] sm:$0xf]  ;;  %v3534_v58 = vld [vmem:[%s5910_s5 + $0x2ac] sm:$0xf]  ;;  %v3247_v38 = vld [vmem:[%s5910_s5 + $0x2b8] sm:$0xf0] }
 0x176   :  { %v4755_v7 = vpack.c.bf16 %v822_v24, %v822_v24  ;;  %6188 = vst [vmem:[#allocation83_spill] sm:$0xff] %v4769_v28  ;;  %v4795_v24 = vor.u32 %v3540_v9, %v3261_v43  ;;  %v3373_v43 = vld [vmem:[%s5910_s5 + $0x3a8] sm:$0xf]  ;;  %v3568_v9 = vld [vmem:[%s5910_s5 + $0x3b4] sm:$0xf0] }
 0x177   :  { %6190 = vst [vmem:[#allocation85_spill] sm:$0xff] %v4797_v26 }
 0x178   :  { %839 = vmatmul.bf16.vlgmr.msra.gmra.mxu2 %v4755_v7  ;;  %852 = vmatmul.bf16.vlgmr.msra.gmra.mxu3 %v4755_v7  ;;  %6189 = vst [vmem:[#allocation84_spill] sm:$0xff] %v4795_v24 }
 0x179   :  { %865 = vmatmul.bf16.vlgmr.msra.gmra.mxu0 %v4755_v7  ;;  %878 = vmatmul.bf16.vlgmr.msrb.gmra.mxu1 %v4755_v7 }
 0x17a   :  { %1287 = vmatpush.bf16.msra.mxu2 %v4757_v17  ;;  %1300 = vmatpush.bf16.msra.mxu3 %v4759_v29  ;;  %v4809_v17 = vor.u32 %v3570_v20, %v3391_v22  ;;  %v4831_v20 = vor.u32 %v3536_v62, %v3245_v4  ;;  %v4833_v22 = vor.u32 %v3568_v9, %v3373_v43  ;;  %v3532_v29 = vld [vmem:[%s5910_s5 + $0x294] sm:$0xf0]  ;;  %v3357_v4 = vld [vmem:[%s5910_s5 + $0x388] sm:$0xf]  ;;  %v3530_v43 = vld [vmem:[%s5910_s5 + $0x28c] sm:$0xf] }
 0x17b   :  { %1313 = vmatpush.bf16.msra.mxu0 %v4767_v37  ;;  %1326 = vmatpush.bf16.msrb.mxu1 %v4769_v28  ;;  %v3229_v28 = vld [vmem:[%s5910_s5 + $0x288] sm:$0xf]  ;;  %v4843_v37 = vor.u32 %v3534_v58, %v3247_v38  ;;  %v3564_v62 = vld [vmem:[%s5910_s5 + $0x394] sm:$0xf0]  ;;  %v3231_v9 = vld [vmem:[%s5910_s5 + $0x298] sm:$0xf0] }
 0x17c   :  { %6192 = vst [vmem:[#allocation87_spill] sm:$0xff] %v4809_v17  ;;  %v3562_v58 = vld [vmem:[%s5910_s5 + $0x38c] sm:$0xf]  ;;  %v3359_v38 = vld [vmem:[%s5910_s5 + $0x398] sm:$0xf0]  ;;  %v4882_v8 = vor.u32 %v3530_v43, %v3231_v9 }
 0x17d   :  { %6193 = vst [vmem:[#allocation88_spill] sm:$0xff] %v4831_v20  ;;  %v3215_v43 = vld [vmem:[%s5910_s5 + $0x278] sm:$0xf0]  ;;  %v3558_v9 = vld [vmem:[%s5910_s5 + $0x36c] sm:$0xf] }
 0x17e   :  { %1288 = vmatpush.bf16.msra.mxu2 %v4795_v24  ;;  %1301 = vmatpush.bf16.msra.mxu3 %v4797_v26  ;;  %6194 = vst [vmem:[#allocation89_spill] sm:$0xff] %v4833_v22  ;;  %v4845_v24 = vor.u32 %v3566_v51, %v3375_v55  ;;  %v3025_v51 = vld [vmem:[%s5911_s1 + $0x8] sm:$0xff]  ;;  %v4870_v55 = vor.u32 %v3532_v29, %v3229_v28  ;;  %v3560_v28 = vld [vmem:[%s5910_s5 + $0x374] sm:$0xf0] }
 0x17f   :  { %1314 = vmatpush.bf16.msra.mxu0 %v4807_v35  ;;  %1327 = vmatpush.bf16.msrb.mxu1 %v4809_v17  ;;  %6195 = vst [vmem:[#allocation90_spill] sm:$0xff] %v4843_v37  ;;  %v4872_v17 = vor.u32 %v3564_v62, %v3357_v4  ;;  %v3213_v26 = vld [vmem:[%s5910_s5 + $0x268] sm:$0xf]  ;;  %v3528_v35 = vld [vmem:[%s5910_s5 + $0x274] sm:$0xf0]  ;;  %v4895_v62 = vpack.c.bf16 %v3025_v51, %v3025_v51 }
 0x180   :  { %6196 = vst [vmem:[#allocation91_spill] sm:$0xff] %v4845_v24  ;;  %v3341_v29 = vld [vmem:[%s5910_s5 + $0x368] sm:$0xf]  ;;  %v3526_v4 = vld [vmem:[%s5910_s5 + $0x26c] sm:$0xf] }
 0x181   :  { %6197 = vst [vmem:[#allocation92_spill] sm:$0xff] %v4870_v55  ;;  %v4910_v51 = vor.u32 %v3560_v28, %v3341_v29  ;;  %v3522_v29 = vld [vmem:[%s5910_s5 + $0x24c] sm:$0xf]  ;;  %v3199_v28 = vld [vmem:[%s5910_s5 + $0x258] sm:$0xf0] }
 0x182   :  { %1289 = vmatpush.bf16.msra.mxu2 %v4831_v20  ;;  %1302 = vmatpush.bf16.msra.mxu3 %v4833_v22  ;;  %6198 = vst [vmem:[#allocation93_spill] sm:$0xff] %v4872_v17  ;;  %v4884_v20 = vor.u32 %v3562_v58, %v3359_v38  ;;  %v3343_v58 = vld [vmem:[%s5910_s5 + $0x378] sm:$0xf0]  ;;  %v4908_v38 = vor.u32 %v3528_v35, %v3213_v26  ;;  %v3524_v22 = vld [vmem:[%s5910_s5 + $0x254] sm:$0xf0] }
 0x183   :  { %1315 = vmatpush.bf16.msra.mxu0 %v4843_v37  ;;  %1328 = vmatpush.bf16.msrb.mxu1 %v4845_v24  ;;  %6199 = vst [vmem:[#allocation94_spill] sm:$0xff] %v4882_v8  ;;  %v3197_v24 = vld [vmem:[%s5910_s5 + $0x248] sm:$0xf]  ;;  %v4920_v37 = vor.u32 %v3526_v4, %v3215_v43  ;;  %v3556_v26 = vld [vmem:[%s5910_s5 + $0x354] sm:$0xf0] }
 0x184   :  { %6200 = vst [vmem:[#allocation95_spill] sm:$0xff] %v4884_v20  ;;  %v3325_v35 = vld [vmem:[%s5910_s5 + $0x348] sm:$0xf]  ;;  %v3554_v4 = vld [vmem:[%s5910_s5 + $0x34c] sm:$0xf] }
 0x185   :  { %6201 = vst [vmem:[#allocation96_spill] sm:$0xff] %v4908_v38  ;;  %v3327_v43 = vld [vmem:[%s5910_s5 + $0x358] sm:$0xf0] }
 0x186   :  { %1290 = vmatpush.bf16.msra.mxu2 %v4870_v55  ;;  %1303 = vmatpush.bf16.msra.mxu3 %v4872_v17  ;;  %6202 = vst [vmem:[#allocation97_spill] sm:$0xff] %v4910_v51  ;;  %v4922_v55 = vor.u32 %v3558_v9, %v3343_v58  ;;  %v4948_v9 = vor.u32 %v3524_v22, %v3197_v24  ;;  %v3520_v17 = vld [vmem:[%s5910_s5 + $0x234] sm:$0xf0]  ;;  %v3309_v24 = vld [vmem:[%s5910_s5 + $0x328] sm:$0xf] }
 0x187   :  { %1316 = vmatpush.bf16.msra.mxu0 %v4882_v8  ;;  %1329 = vmatpush.bf16.msrb.mxu1 %v4884_v20  ;;  %6203 = vst [vmem:[#allocation98_spill] sm:$0xff] %v4920_v37  ;;  %v4950_v58 = vor.u32 %v3556_v26, %v3325_v35  ;;  %v3181_v20 = vld [vmem:[%s5910_s5 + $0x228] sm:$0xf]  ;;  %v4960_v8 = vor.u32 %v3522_v29, %v3199_v28  ;;  %v3552_v22 = vld [vmem:[%s5910_s5 + $0x334] sm:$0xf0] }
 0x188   :  { %6204 = vst [vmem:[#allocation99_spill] sm:$0xff] %v4922_v55  ;;  %1243 = vmatmul.bf16.vlgmr.msrb.gmra.mxu2 %v4755_v7  ;;  %1256 = vmatmul.bf16.vlgmr.msrb.gmra.mxu3 %v4895_v62  ;;  %v3518_v35 = vld [vmem:[%s5910_s5 + $0x22c] sm:$0xf]  ;;  %v3183_v26 = vld [vmem:[%s5910_s5 + $0x238] sm:$0xf0] }
 0x189   :  { %1269 = vmatmul.bf16.vlgmr.msrb.gmra.mxu0 %v4755_v7  ;;  %1282 = vmatmul.bf16.vlgmr.msra.gmra.mxu1 %v4895_v62  ;;  %6205 = vst [vmem:[#allocation100_spill] sm:$0xff] %v4948_v9  ;;  %v3550_v29 = vld [vmem:[%s5910_s5 + $0x32c] sm:$0xf]  ;;  %v3311_v28 = vld [vmem:[%s5910_s5 + $0x338] sm:$0xf0] }
 0x18a   :  { %1291 = vmatpush.bf16.msra.mxu2 %v4908_v38  ;;  %1304 = vmatpush.bf16.msra.mxu3 %v4910_v51  ;;  %6206 = vst [vmem:[#allocation101_spill] sm:$0xff] %v4950_v58  ;;  %v4962_v38 = vor.u32 %v3554_v4, %v3327_v43  ;;  %v4984_v4 = vor.u32 %v3520_v17, %v3181_v20  ;;  %v3516_v51 = vld [vmem:[%s5910_s5 + $0x214] sm:$0xf0]  ;;  %v3293_v17 = vld [vmem:[%s5910_s5 + $0x308] sm:$0xf] }
 0x18b   :  { %1317 = vmatpush.bf16.msra.mxu0 %v4920_v37  ;;  %1330 = vmatpush.bf16.msrb.mxu1 %v4922_v55  ;;  %v4986_v43 = vor.u32 %v3552_v22, %v3309_v24  ;;  %v3165_v55 = vld [vmem:[%s5910_s5 + $0x208] sm:$0xf]  ;;  %v4996_v37 = vor.u32 %v3518_v35, %v3183_v26  ;;  %v3548_v20 = vld [vmem:[%s5910_s5 + $0x314] sm:$0xf0]  ;;  %v3514_v24 = vld [vmem:[%s5910_s5 + $0x20c] sm:$0xf] }
 0x18c   :  { %6207 = vst [vmem:[#allocation102_spill] sm:$0xff] %v4962_v38  ;;  %v3167_v22 = vld [vmem:[%s5910_s5 + $0x218] sm:$0xf0]  ;;  %v3546_v35 = vld [vmem:[%s5910_s5 + $0x30c] sm:$0xf] }
 0x18d   :  { %v3295_v26 = vld [vmem:[%s5910_s5 + $0x318] sm:$0xf0] }
 0x18e   :  { %1292 = vmatpush.bf16.msra.mxu2 %v4948_v9  ;;  %1305 = vmatpush.bf16.msra.mxu3 %v4950_v58  ;;  %v4998_v9 = vor.u32 %v3550_v29, %v3311_v28  ;;  %v5020_v29 = vor.u32 %v3516_v51, %v3165_v55  ;;  %v5022_v28 = vor.u32 %v3548_v20, %v3293_v17  ;;  %v6209_v55 = vld [vmem:[#allocation51_spill] sm:$0xff]  ;;  %v6211_v51 = vld [vmem:[#allocation52_spill] sm:$0xff]  ;;  %v6212_v17 = vld [vmem:[#allocation54_spill] sm:$0xff] }
 0x18f   :  { %1318 = vmatpush.bf16.msra.mxu0 %v4960_v8  ;;  %1331 = vmatpush.bf16.msrb.mxu1 %v4962_v38  ;;  %v5026_v38 = vor.u32 %v3514_v24, %v3167_v22  ;;  %v5028_v58 = vor.u32 %v3546_v35, %v3295_v26  ;;  %v6213_v20 = vld [vmem:[#allocation58_spill] sm:$0xff]  ;;  %v6214_v24 = vld [vmem:[#allocation57_spill] sm:$0xff]  ;;  %v6215_v22 = vld [vmem:[#allocation60_spill] sm:$0xff] }
 0x190   :  { %v6216_v35 = vld [vmem:[#allocation61_spill] sm:$0xff]  ;;  %v6217_v26 = vld [vmem:[#allocation63_spill] sm:$0xff] }
 0x192   :  { %1293 = vmatpush.bf16.msra.mxu2 %v4984_v4  ;;  %1306 = vmatpush.bf16.msra.mxu3 %v4986_v43 }
 0x193   :  { %1319 = vmatpush.bf16.msra.mxu0 %v4996_v37  ;;  %1332 = vmatpush.bf16.msrb.mxu1 %v4998_v9 }
 0x196   :  { %1294 = vmatpush.bf16.msra.mxu2 %v5020_v29  ;;  %1307 = vmatpush.bf16.msra.mxu3 %v5022_v28 }
 0x197   :  { %1320 = vmatpush.bf16.msra.mxu0 %v5026_v38  ;;  %1333 = vmatpush.bf16.msrb.mxu1 %v5028_v58 }
 0x199   :  { %1295 = vmatmul.bf16.vlgmr.msra.gmra.mxu2 %v4755_v7  ;;  %1308 = vmatmul.bf16.vlgmr.msra.gmra.mxu3 %v4895_v62 }
 0x19a   :  { %1365 = vmatpush.bf16.msrb.mxu2 %v4024_v40  ;;  %1321 = vmatmul.bf16.vlgmr.msra.gmra.mxu0 %v4755_v7  ;;  %v6208_v7 = vld [vmem:[#allocation50_spill] sm:$0xff] }
 0x19b   :  { %1391 = vmatpush.bf16.msrb.mxu0 %v4059_v52  ;;  %1334 = vmatmul.bf16.vlgmr.msrb.gmra.mxu1 %v4895_v62  ;;  %v6210_v62 = vld [vmem:[#allocation53_spill] sm:$0xff] }
 0x19c   :  { %1378 = vmatpush.bf16.msrb.mxu3 %v4036_v44  ;;  %1404 = vmatpush.bf16.msra.mxu1 %v4205_v54 }
 0x19e   :  { %1366 = vmatpush.bf16.msrb.mxu2 %v4041_v46 }
 0x19f   :  { %1392 = vmatpush.bf16.msrb.mxu0 %v4095_v0 }
 0x1a0   :  { %1379 = vmatpush.bf16.msrb.mxu3 %v4054_v50  ;;  %1405 = vmatpush.bf16.msra.mxu1 %v4240_v6 }
 0x1a2   :  { %1367 = vmatpush.bf16.msrb.mxu2 %v4069_v56 }
 0x1a3   :  { %1393 = vmatpush.bf16.msrb.mxu0 %v4122_v14 }
 0x1a4   :  { %1380 = vmatpush.bf16.msrb.mxu3 %v4084_v60  ;;  %1406 = vmatpush.bf16.msra.mxu1 %v4269_v19 }
 0x1a6   :  { %1368 = vmatpush.bf16.msrb.mxu2 %v4101_v2 }
 0x1a7   :  { %1394 = vmatpush.bf16.msrb.mxu0 %v4153_v25 }
 0x1a8   :  { %1381 = vmatpush.bf16.msrb.mxu3 %v4117_v12  ;;  %1407 = vmatpush.bf16.msra.mxu1 %v4286_v31 }
 0x1aa   :  { %1369 = vmatpush.bf16.msrb.mxu2 %v4132_v18 }
 0x1ab   :  { %1395 = vmatpush.bf16.msrb.mxu0 %v4195_v47 }
 0x1ac   :  { %1382 = vmatpush.bf16.msrb.mxu3 %v4142_v21  ;;  %1408 = vmatpush.bf16.msra.mxu1 %v4297_v36 }
 0x1ae   :  { %1370 = vmatpush.bf16.msrb.mxu2 %v4159_v27 }
 0x1af   :  { %1396 = vmatpush.bf16.msrb.mxu0 %v4230_v3 }
 0x1b0   :  { %1383 = vmatpush.bf16.msrb.mxu3 %v4184_v41  ;;  %1409 = vmatpush.bf16.msra.mxu1 %v4309_v39 }
 0x1b2   :  { %1371 = vmatpush.bf16.msrb.mxu2 %v4172_v33 }
 0x1b3   :  { %1397 = vmatpush.bf16.msrb.mxu0 %v4256_v11 }
 0x1b4   :  { %1384 = vmatpush.bf16.msrb.mxu3 %v4218_v61  ;;  %1410 = vmatpush.bf16.msra.mxu1 %v4322_v53 }
 0x1b6   :  { %1372 = vmatpush.bf16.msrb.mxu2 %v4197_v48 }
 0x1b7   :  { %1398 = vmatpush.bf16.msrb.mxu0 %v4274_v23 }
 0x1b8   :  { %1385 = vmatpush.bf16.msrb.mxu3 %v4258_v13  ;;  %1411 = vmatpush.bf16.msra.mxu1 %v4333_v57 }
 0x1ba   :  { %1440 = vmatpush.bf16.msra.mxu2 %v4414_v16 }
 0x1bb   :  { %1466 = vmatpush.bf16.msra.mxu0 %v4427_v34 }
 0x1bc   :  { %1453 = vmatpush.bf16.msra.mxu3 %v4425_v32  ;;  %1479 = vmatpush.bf16.msrb.mxu1 %v4436_v49 }
 0x1be   :  { %1441 = vmatpush.bf16.msra.mxu2 %v4454_v42  ;;  %v3024_v42 = vld [vmem:[%s5912_s6 + $0x4] sm:$0xf] }
 0x1bf   :  { %1467 = vmatpush.bf16.msra.mxu0 %v4470_v15 }
 0x1c0   :  { %1454 = vmatpush.bf16.msra.mxu3 %v4468_v30  ;;  %1480 = vmatpush.bf16.msrb.mxu1 %v6208_v7  ;;  %v6218_v7 = vld [vmem:[#allocation62_spill] sm:$0xff] }
 0x1c2   :  { %1442 = vmatpush.bf16.msra.mxu2 %v6209_v55  ;;  %v6219_v55 = vld [vmem:[#allocation64_spill] sm:$0xff] }
 0x1c3   :  { %1468 = vmatpush.bf16.msra.mxu0 %v6210_v62 }
 0x1c4   :  { %1455 = vmatpush.bf16.msra.mxu3 %v6211_v51  ;;  %1481 = vmatpush.bf16.msrb.mxu1 %v6212_v17  ;;  %v6228_v51 = vld [vmem:[#allocation34_spill] sm:$0xff] }
 0x1c6   :  { %1443 = vmatpush.bf16.msra.mxu2 %v4536_v63 }
 0x1c7   :  { %1469 = vmatpush.bf16.msra.mxu0 %v6213_v20  ;;  %v6227_v20 = vld [vmem:[#allocation33_spill] sm:$0xff] }
 0x1c8   :  { %1456 = vmatpush.bf16.msra.mxu3 %v6214_v24  ;;  %1482 = vmatpush.bf16.msrb.mxu1 %v6215_v22  ;;  %v6220_v24 = vld [vmem:[#allocation73_spill] sm:$0xff]  ;;  %v6221_v22 = vld [vmem:[#allocation72_spill] sm:$0xff] }
 0x1ca   :  { %1444 = vmatpush.bf16.msra.mxu2 %v6216_v35  ;;  %v6222_v35 = vld [vmem:[#allocation74_spill] sm:$0xff] }
 0x1cb   :  { %1470 = vmatpush.bf16.msra.mxu0 %v6217_v26  ;;  %v6223_v26 = vld [vmem:[#allocation75_spill] sm:$0xff] }
 0x1cc   :  { %1457 = vmatpush.bf16.msra.mxu3 %v6218_v7  ;;  %1483 = vmatpush.bf16.msrb.mxu1 %v6219_v55  ;;  %v6224_v7 = vld [vmem:[#allocation77_spill] sm:$0xff]  ;;  %v6225_v55 = vld [vmem:[#allocation76_spill] sm:$0xff] }
 0x1ce   :  { %1445 = vmatpush.bf16.msra.mxu2 %v4618_v10  ;;  %v6226_v10 = vld [vmem:[#allocation78_spill] sm:$0xff] }
 0x1cf   :  { %1471 = vmatpush.bf16.msra.mxu0 %v4633_v59 }
 0x1d0   :  { %1458 = vmatpush.bf16.msra.mxu3 %v4631_v45  ;;  %1484 = vmatpush.bf16.msrb.mxu1 %v4644_v1  ;;  %v826_v1 = vunpack.c.l.bf16 %v6227_v20 }
 0x1d2   :  { %1446 = vmatpush.bf16.msra.mxu2 %v4657_v5  ;;  %v827_v5 = vunpack.c.h.bf16 %v6227_v20 }
 0x1d3   :  { %1472 = vmatpush.bf16.msra.mxu0 %v6220_v24 }
 0x1d4   :  { %1459 = vmatpush.bf16.msra.mxu3 %v6221_v22  ;;  %1485 = vmatpush.bf16.msrb.mxu1 %v6222_v35  ;;  %v828_v35 = vunpack.c.l.bf16 %v6228_v51 }
 0x1d6   :  { %1447 = vmatpush.bf16.msra.mxu2 %v6223_v26  ;;  %v829_v26 = vunpack.c.h.bf16 %v6228_v51 }
 0x1d7   :  { %1473 = vmatpush.bf16.msra.mxu0 %v6224_v7 }
 0x1d8   :  { %1460 = vmatpush.bf16.msra.mxu3 %v6225_v55  ;;  %1486 = vmatpush.bf16.msrb.mxu1 %v6226_v10 }
 0x1f6   :  { %v866_v59 = vpop.f32.mrf.mxu0  ;;  %v879_v45 = vpop.f32.mrf.mxu1 }
 0x1f7   :  { %v885_v15 = vadd.f32 %v866_v59, %v828_v35  ;;  %v886_v10 = vadd.f32 %v879_v45, %v829_v26 }
 0x1fb   :  { %v840_v63 = vpop.f32.mrf.mxu2  ;;  %v853_v24 = vpop.f32.mrf.mxu3 }
 0x1fc   :  { %v883_v17 = vadd.f32 %v840_v63, %v826_v1  ;;  %v884_v22 = vadd.f32 %v853_v24, %v827_v5  ;;  %v5109_v1 = vperm.slane %v3024_v42, 1  ;;  %v889_v63 = vmul.f32 0.5, %v885_v15  ;;  %v6230_v15 = vld [vmem:[#allocation79_spill] sm:$0xff] }
 0x1fe   :  { %v887_v62 = vmul.f32 0.5, %v883_v17  ;;  %v888_v7 = vmul.f32 0.5, %v884_v22  ;;  %v868_v30 = vpop.f32.mrf.mxu0  ;;  %v881_v55 = vpop.f32.mrf.mxu1  ;;  %6229 = vst [vmem:[#allocation33_spill] sm:$0xff] %v5109_v1 }
 0x1ff   :  { %v5112_v55 = vperm.slane %v3024_v42, 0 }
 0x200   :  { %3597 = vtanh.f32 %v887_v62 }
 0x201   :  { %3599 = vtanh.f32 %v888_v7 }
 0x202   :  { %3601 = vtanh.f32 %v886_v10 }
 0x203   :  { %v842_v20 = vpop.f32.mrf.mxu2  ;;  %v855_v49 = vpop.f32.mrf.mxu3  ;;  %3603 = vtanh.f32 %v889_v63 }
 0x206   :  { %v3598_v5 = vpop.eup %3597  ;;  %v1270_v51 = vpop.f32.mrf.mxu0 }
 0x207   :  { %v1283_v17 = vpop.f32.mrf.mxu1  ;;  %v3600_v24 = vpop.eup %3599  ;;  %v893_v30 = vmul.f32 0.5, %v3598_v5  ;;  %v1271_v59 = vadd.f32 %v1270_v51, %v5109_v1 }
 0x208   :  { %v894_v45 = vmul.f32 0.5, %v3600_v24  ;;  %v3602_v22 = vpop.eup %3601 }
 0x209   :  { %v896_v62 = vadd.f32 0.5, %v893_v30  ;;  %v1284_v35 = vadd.f32 %v1283_v17, %v1271_v59  ;;  %v3604_v57 = vpop.eup %3603 }
 0x20a   :  { %v897_v7 = vadd.f32 0.5, %v894_v45  ;;  %v895_v1 = vmul.f32 0.5, %v3604_v57  ;;  %v5119_v45 = vperm.slane %v3024_v42, 3 }
 0x20b   :  { %v901_v49 = vmul.f32 %v3602_v22, %v896_v62  ;;  %v1244_v26 = vpop.f32.mrf.mxu2  ;;  %v1257_v20 = vpop.f32.mrf.mxu3  ;;  %v1340_v5 = vmul.f32 0.5, %v1284_v35 }
 0x20c   :  { %v900_v10 = vmul.f32 %v897_v7, %v6230_v15  ;;  %v1245_v32 = vadd.f32 %v1244_v26, %v5112_v55  ;;  %v898_v62 = vadd.f32 0.5, %v895_v1 }
 0x20e   :  { %v5116_v13 = vadd.f32 %v901_v49, %v900_v10  ;;  %v1258_v51 = vadd.f32 %v1257_v20, %v1245_v32  ;;  %v1272_v63 = vpop.f32.mrf.mxu0  ;;  %v5124_v20 = vperm.slane %v3024_v42, 2  ;;  %v6233_v42 = vld [vmem:[#allocation82_spill] sm:$0xff] }
 0x20f   :  { %v1285_v24 = vpop.f32.mrf.mxu1 }
 0x210   :  { %3605 = vtanh.f32 %v5116_v13  ;;  %v1339_v30 = vmul.f32 0.5, %v1258_v51  ;;  %6231 = vst [vmem:[#allocation34_spill] sm:$0xff] %v5124_v20 }
 0x211   :  { %3607 = vtanh.f32 %v1340_v5 }
 0x212   :  { %3609 = vtanh.f32 %v1339_v30  ;;  %v6232_v30 = vld [vmem:[#allocation80_spill] sm:$0xff] }
 0x213   :  { %v1246_v17 = vpop.f32.mrf.mxu2  ;;  %v1259_v59 = vpop.f32.mrf.mxu3 }
 0x214   :  { %v6234_v17 = vld [vmem:[#allocation81_spill] sm:$0xff]  ;;  %v6235_v59 = vld [vmem:[#allocation83_spill] sm:$0xff] }
 0x216   :  { %v3606_v22 = vpop.eup %3605 }
 0x217   :  { %v904_v7 = vmul.f32 %v3606_v22, %v898_v62  ;;  %v1322_v26 = vpop.f32.mrf.mxu0  ;;  %v3608_v15 = vpop.eup %3607 }
 0x218   :  { %v1335_v49 = vpop.f32.mrf.mxu1  ;;  %v1323_v32 = vadd.f32 %v1322_v26, %v5119_v45  ;;  %v3610_v10 = vpop.eup %3609  ;;  %v1346_v5 = vmul.f32 0.5, %v3608_v15 }
 0x219   :  { %v5122_v35 = vpack.c.bf16 %v904_v7, %v904_v7  ;;  %v1345_v63 = vmul.f32 0.5, %v3610_v10  ;;  %v6236_v10 = vld [vmem:[#allocation84_spill] sm:$0xff] }
 0x21a   :  { %v1336_v57 = vadd.f32 %v1335_v49, %v1323_v32  ;;  %v1349_v62 = vadd.f32 0.5, %v1346_v5  ;;  %v3026_v49 = vld [vmem:[%s5913_s2 + $0x8] sm:$0xff] }
 0x21b   :  { %1373 = vmatmul.bf16.vlgmr.msrb.gmra.mxu2 %v5122_v35  ;;  %1386 = vmatmul.bf16.vlgmr.msrb.gmra.mxu3 %v5122_v35  ;;  %v1348_v15 = vadd.f32 0.5, %v1345_v63  ;;  %v6241_v63 = vld [vmem:[#allocation90_spill] sm:$0xff] }
 0x21c   :  { %3611 = vtanh.f32 %v1336_v57  ;;  %1399 = vmatmul.bf16.vlgmr.msrb.gmra.mxu0 %v5122_v35  ;;  %1412 = vmatmul.bf16.vlgmr.msra.gmra.mxu1 %v5122_v35  ;;  %v1296_v1 = vpop.f32.mrf.mxu2  ;;  %v1309_v51 = vpop.f32.mrf.mxu3  ;;  %v6237_v57 = vld [vmem:[#allocation86_spill] sm:$0xff] }
 0x21d   :  { %v1297_v24 = vadd.f32 %v1296_v1, %v5124_v20  ;;  %1492 = vmatpush.bf16.msrb.mxu2 %v6232_v30  ;;  %1518 = vmatpush.bf16.msrb.mxu0 %v6233_v42  ;;  %v6238_v20 = vld [vmem:[#allocation85_spill] sm:$0xff] }
 0x21e   :  { %1505 = vmatpush.bf16.msrb.mxu3 %v6234_v17  ;;  %1531 = vmatpush.bf16.msra.mxu1 %v6235_v59  ;;  %v6239_v17 = vld [vmem:[#allocation87_spill] sm:$0xff]  ;;  %v1352_v59 = vmul.f32 %v3026_v49, %v1349_v62  ;;  %v6245_v62 = vld [vmem:[#allocation94_spill] sm:$0xff] }
 0x21f   :  { %v1310_v22 = vadd.f32 %v1309_v51, %v1297_v24  ;;  %v1324_v7 = vpop.f32.mrf.mxu0 }
 0x220   :  { %v1337_v26 = vpop.f32.mrf.mxu1 }
 0x221   :  { %v1341_v32 = vmul.f32 0.5, %v1310_v22  ;;  %1493 = vmatpush.bf16.msrb.mxu2 %v6236_v10  ;;  %1519 = vmatpush.bf16.msrb.mxu0 %v6237_v57  ;;  %v6240_v26 = vld [vmem:[#allocation88_spill] sm:$0xff]  ;;  %v6242_v22 = vld [vmem:[#allocation89_spill] sm:$0xff]  ;;  %v6243_v10 = vld [vmem:[#allocation91_spill] sm:$0xff] }
 0x222   :  { %v3612_v1 = vpop.eup %3611  ;;  %1506 = vmatpush.bf16.msrb.mxu3 %v6238_v20  ;;  %1532 = vmatpush.bf16.msra.mxu1 %v6239_v17  ;;  %v6244_v57 = vld [vmem:[#allocation92_spill] sm:$0xff] }
 0x223   :  { %v1353_v5 = vmul.f32 %v3612_v1, %v1348_v15  ;;  %3613 = vtanh.f32 %v1341_v32  ;;  %v6246_v15 = vld [vmem:[#allocation93_spill] sm:$0xff] }
 0x224   :  { %v1298_v51 = vpop.f32.mrf.mxu2  ;;  %v1311_v24 = vpop.f32.mrf.mxu3 }
 0x225   :  { %v5142_v7 = vadd.f32 %v1353_v5, %v1352_v59  ;;  %1494 = vmatpush.bf16.msrb.mxu2 %v6240_v26  ;;  %1520 = vmatpush.bf16.msrb.mxu0 %v6241_v63  ;;  %v6247_v59 = vld [vmem:[#allocation95_spill] sm:$0xff]  ;;  %v6248_v5 = vld [vmem:[#allocation96_spill] sm:$0xff]  ;;  %v6249_v51 = vld [vmem:[#allocation98_spill] sm:$0xff] }
 0x226   :  { %1507 = vmatpush.bf16.msrb.mxu3 %v6242_v22  ;;  %1533 = vmatpush.bf16.msra.mxu1 %v6243_v10  ;;  %v6250_v10 = vld [vmem:[#allocation97_spill] sm:$0xff] }
 0x227   :  { %3615 = vtanh.f32 %v5142_v7 }
 0x229   :  { %v3614_v20 = vpop.eup %3613  ;;  %1495 = vmatpush.bf16.msrb.mxu2 %v6244_v57  ;;  %1521 = vmatpush.bf16.msrb.mxu0 %v6245_v62  ;;  %v6251_v57 = vld [vmem:[#allocation99_spill] sm:$0xff]  ;;  %v6252_v62 = vld [vmem:[#allocation100_spill] sm:$0xff] }
 0x22a   :  { %v1347_v49 = vmul.f32 0.5, %v3614_v20  ;;  %1508 = vmatpush.bf16.msrb.mxu3 %v6246_v15  ;;  %1534 = vmatpush.bf16.msra.mxu1 %v6247_v59  ;;  %v6254_v59 = vld [vmem:[#allocation102_spill] sm:$0xff] }
 0x22b   :  { %1448 = vmatmul.bf16.vlgmr.msra.gmra.mxu2 %v5122_v35 }
 0x22c   :  { %v1350_v32 = vadd.f32 0.5, %v1347_v49  ;;  %1474 = vmatmul.bf16.vlgmr.msra.gmra.mxu0 %v5122_v35  ;;  %v6253_v49 = vld [vmem:[#allocation101_spill] sm:$0xff] }
 0x22d   :  { %v3616_v1 = vpop.eup %3615  ;;  %1496 = vmatpush.bf16.msrb.mxu2 %v6248_v5  ;;  %1522 = vmatpush.bf16.msrb.mxu0 %v6249_v51 }
 0x22e   :  { %v1356_v24 = vmul.f32 %v3616_v1, %v1350_v32  ;;  %1509 = vmatpush.bf16.msrb.mxu3 %v6250_v10  ;;  %1535 = vmatpush.bf16.msra.mxu1 %v6251_v57  ;;  %v6256_v32 = vld [vmem:[#allocation32_spill] sm:$0xff]  ;;  %v6257_v1 = vld [vmem:[#allocation42_spill] sm:$0xff] }
 0x230   :  { %v1439_v20 = vpack.c.bf16 %v1356_v24, %v1356_v24  ;;  %v6258_v24 = vld [vmem:[#allocation44_spill] sm:$0xff] }
 0x231   :  { %1497 = vmatpush.bf16.msrb.mxu2 %v6252_v62  ;;  %1523 = vmatpush.bf16.msrb.mxu0 %v4960_v8 }
 0x232   :  { %1461 = vmatmul.bf16.vlgmr.msra.gmra.mxu3 %v1439_v20  ;;  %1487 = vmatmul.bf16.vlgmr.msrb.gmra.mxu1 %v1439_v20 }
 0x233   :  { %1510 = vmatpush.bf16.msrb.mxu3 %v6253_v49  ;;  %1536 = vmatpush.bf16.msra.mxu1 %v6254_v59 }
 0x235   :  { %1498 = vmatpush.bf16.msrb.mxu2 %v4984_v4  ;;  %1524 = vmatpush.bf16.msrb.mxu0 %v4996_v37 }
 0x237   :  { %1511 = vmatpush.bf16.msrb.mxu3 %v4986_v43  ;;  %1537 = vmatpush.bf16.msra.mxu1 %v4998_v9 }
 0x239   :  { %1499 = vmatpush.bf16.msrb.mxu2 %v5020_v29  ;;  %1525 = vmatpush.bf16.msrb.mxu0 %v5026_v38 }
 0x23b   :  { %1512 = vmatpush.bf16.msrb.mxu3 %v5022_v28  ;;  %1538 = vmatpush.bf16.msra.mxu1 %v5028_v58 }
 0x23c   :  { %1500 = vmatmul.bf16.vlgmr.msrb.gmra.mxu2 %v5122_v35  ;;  %1526 = vmatmul.bf16.vlgmr.msrb.gmra.mxu0 %v5122_v35  ;;  %v6255_v35 = vld [vmem:[#allocation25_spill] sm:$0xff] }
 0x23d   :  { %1570 = vmatpush.bf16.msra.mxu2 %v4024_v40  ;;  %1596 = vmatpush.bf16.msra.mxu0 %v4059_v52 }
 0x23f   :  { %1583 = vmatpush.bf16.msra.mxu3 %v4036_v44  ;;  %1609 = vmatpush.bf16.msrb.mxu1 %v4205_v54 }
 0x241   :  { %1571 = vmatpush.bf16.msra.mxu2 %v4041_v46  ;;  %1597 = vmatpush.bf16.msra.mxu0 %v4095_v0 }
 0x242   :  { %1513 = vmatmul.bf16.vlgmr.msrb.gmra.mxu3 %v1439_v20  ;;  %1539 = vmatmul.bf16.vlgmr.msra.gmra.mxu1 %v1439_v20  ;;  %v6259_v20 = vld [vmem:[#allocation45_spill] sm:$0xff] }
 0x243   :  { %1584 = vmatpush.bf16.msra.mxu3 %v4054_v50  ;;  %1610 = vmatpush.bf16.msrb.mxu1 %v4240_v6 }
 0x245   :  { %1572 = vmatpush.bf16.msra.mxu2 %v4069_v56  ;;  %1598 = vmatpush.bf16.msra.mxu0 %v4122_v14 }
 0x247   :  { %1585 = vmatpush.bf16.msra.mxu3 %v4084_v60  ;;  %1611 = vmatpush.bf16.msrb.mxu1 %v4269_v19 }
 0x249   :  { %1573 = vmatpush.bf16.msra.mxu2 %v4101_v2  ;;  %1599 = vmatpush.bf16.msra.mxu0 %v4153_v25 }
 0x24b   :  { %1586 = vmatpush.bf16.msra.mxu3 %v4117_v12  ;;  %1612 = vmatpush.bf16.msrb.mxu1 %v4286_v31 }
 0x24d   :  { %1574 = vmatpush.bf16.msra.mxu2 %v4132_v18  ;;  %1600 = vmatpush.bf16.msra.mxu0 %v4195_v47 }
 0x24f   :  { %1587 = vmatpush.bf16.msra.mxu3 %v4142_v21  ;;  %1613 = vmatpush.bf16.msrb.mxu1 %v4297_v36 }
 0x251   :  { %1575 = vmatpush.bf16.msra.mxu2 %v4159_v27  ;;  %1601 = vmatpush.bf16.msra.mxu0 %v4230_v3 }
 0x253   :  { %1588 = vmatpush.bf16.msra.mxu3 %v4184_v41  ;;  %1614 = vmatpush.bf16.msrb.mxu1 %v4309_v39  ;;  %v6288_v41 = vld [vmem:[#allocation36_spill] sm:$0xff] }
 0x255   :  { %1576 = vmatpush.bf16.msra.mxu2 %v4172_v33  ;;  %1602 = vmatpush.bf16.msra.mxu0 %v4256_v11  ;;  %v6287_v11 = vld [vmem:[#allocation35_spill] sm:$0xff] }
 0x257   :  { %1589 = vmatpush.bf16.msra.mxu3 %v4218_v61  ;;  %1615 = vmatpush.bf16.msrb.mxu1 %v4322_v53  ;;  %v6260_v61 = vld [vmem:[#allocation48_spill] sm:$0xff]  ;;  %v6261_v53 = vld [vmem:[#allocation47_spill] sm:$0xff] }
 0x259   :  { %1577 = vmatpush.bf16.msra.mxu2 %v4197_v48  ;;  %1603 = vmatpush.bf16.msra.mxu0 %v4274_v23  ;;  %v6262_v48 = vld [vmem:[#allocation50_spill] sm:$0xff]  ;;  %v6263_v23 = vld [vmem:[#allocation51_spill] sm:$0xff] }
 0x25b   :  { %1590 = vmatpush.bf16.msra.mxu3 %v6255_v35  ;;  %1616 = vmatpush.bf16.msrb.mxu1 %v6256_v32  ;;  %v6266_v35 = vld [vmem:[#allocation54_spill] sm:$0xff]  ;;  %v6267_v32 = vld [vmem:[#allocation55_spill] sm:$0xff] }
 0x25d   :  { %1645 = vmatpush.bf16.msrb.mxu2 %v4414_v16  ;;  %1671 = vmatpush.bf16.msrb.mxu0 %v4427_v34  ;;  %v6264_v16 = vld [vmem:[#allocation53_spill] sm:$0xff]  ;;  %v6265_v34 = vld [vmem:[#allocation52_spill] sm:$0xff] }
 0x25f   :  { %1658 = vmatpush.bf16.msrb.mxu3 %v6257_v1  ;;  %1684 = vmatpush.bf16.msra.mxu1 %v6258_v24  ;;  %v6268_v1 = vld [vmem:[#allocation58_spill] sm:$0xff]  ;;  %v6269_v24 = vld [vmem:[#allocation57_spill] sm:$0xff] }
 0x261   :  { %1646 = vmatpush.bf16.msrb.mxu2 %v6259_v20  ;;  %1672 = vmatpush.bf16.msrb.mxu0 %v6260_v61  ;;  %v6270_v20 = vld [vmem:[#allocation60_spill] sm:$0xff]  ;;  %v6271_v61 = vld [vmem:[#allocation61_spill] sm:$0xff] }
 0x263   :  { %1659 = vmatpush.bf16.msrb.mxu3 %v6261_v53  ;;  %1685 = vmatpush.bf16.msra.mxu1 %v6262_v48  ;;  %v6272_v53 = vld [vmem:[#allocation63_spill] sm:$0xff]  ;;  %v6273_v48 = vld [vmem:[#allocation62_spill] sm:$0xff] }
 0x265   :  { %1647 = vmatpush.bf16.msrb.mxu2 %v6263_v23  ;;  %1673 = vmatpush.bf16.msrb.mxu0 %v6264_v16  ;;  %v6274_v23 = vld [vmem:[#allocation64_spill] sm:$0xff]  ;;  %v6275_v16 = vld [vmem:[#allocation65_spill] sm:$0xff] }
 0x267   :  { %1660 = vmatpush.bf16.msrb.mxu3 %v6265_v34  ;;  %1686 = vmatpush.bf16.msra.mxu1 %v6266_v35  ;;  %v6276_v34 = vld [vmem:[#allocation68_spill] sm:$0xff]  ;;  %v6277_v35 = vld [vmem:[#allocation67_spill] sm:$0xff] }
 0x269   :  { %1648 = vmatpush.bf16.msrb.mxu2 %v6267_v32  ;;  %1674 = vmatpush.bf16.msrb.mxu0 %v6268_v1  ;;  %v6278_v32 = vld [vmem:[#allocation70_spill] sm:$0xff]  ;;  %v6279_v1 = vld [vmem:[#allocation71_spill] sm:$0xff] }
 0x26b   :  { %1661 = vmatpush.bf16.msrb.mxu3 %v6269_v24  ;;  %1687 = vmatpush.bf16.msra.mxu1 %v6270_v20  ;;  %v6280_v24 = vld [vmem:[#allocation73_spill] sm:$0xff]  ;;  %v6281_v20 = vld [vmem:[#allocation72_spill] sm:$0xff] }
 0x26d   :  { %1649 = vmatpush.bf16.msrb.mxu2 %v6271_v61  ;;  %1675 = vmatpush.bf16.msrb.mxu0 %v6272_v53  ;;  %v6282_v61 = vld [vmem:[#allocation74_spill] sm:$0xff]  ;;  %v6283_v53 = vld [vmem:[#allocation75_spill] sm:$0xff] }
 0x26f   :  { %1662 = vmatpush.bf16.msrb.mxu3 %v6273_v48  ;;  %1688 = vmatpush.bf16.msra.mxu1 %v6274_v23  ;;  %v6284_v48 = vld [vmem:[#allocation77_spill] sm:$0xff]  ;;  %v6285_v23 = vld [vmem:[#allocation76_spill] sm:$0xff] }
 0x271   :  { %1650 = vmatpush.bf16.msrb.mxu2 %v6275_v16  ;;  %1676 = vmatpush.bf16.msrb.mxu0 %v6276_v34  ;;  %v6286_v16 = vld [vmem:[#allocation78_spill] sm:$0xff] }
 0x273   :  { %1663 = vmatpush.bf16.msrb.mxu3 %v6277_v35  ;;  %1689 = vmatpush.bf16.msra.mxu1 %v6278_v32  ;;  %v1360_v32 = vunpack.c.l.bf16 %v6287_v11 }
 0x275   :  { %1651 = vmatpush.bf16.msrb.mxu2 %v6279_v1  ;;  %1677 = vmatpush.bf16.msrb.mxu0 %v6280_v24  ;;  %v1361_v1 = vunpack.c.h.bf16 %v6287_v11 }
 0x277   :  { %1664 = vmatpush.bf16.msrb.mxu3 %v6281_v20  ;;  %1690 = vmatpush.bf16.msra.mxu1 %v6282_v61  ;;  %v1362_v61 = vunpack.c.l.bf16 %v6288_v41 }
 0x279   :  { %1652 = vmatpush.bf16.msrb.mxu2 %v6283_v53  ;;  %1678 = vmatpush.bf16.msrb.mxu0 %v6284_v48  ;;  %v1363_v53 = vunpack.c.h.bf16 %v6288_v41 }
 0x27b   :  { %1665 = vmatpush.bf16.msrb.mxu3 %v6285_v23  ;;  %1691 = vmatpush.bf16.msra.mxu1 %v6286_v16 }
 0x299   :  { %v1400_v34 = vpop.f32.mrf.mxu0  ;;  %v1413_v35 = vpop.f32.mrf.mxu1 }
 0x29a   :  { %v1419_v36 = vadd.f32 %v1400_v34, %v1362_v61  ;;  %v1420_v16 = vadd.f32 %v1413_v35, %v1363_v53 }
 0x29c   :  { %v1423_v18 = vmul.f32 0.5, %v1419_v36 }
 0x29e   :  { %v1374_v33 = vpop.f32.mrf.mxu2  ;;  %v1387_v24 = vpop.f32.mrf.mxu3 }
 0x29f   :  { %v1417_v39 = vadd.f32 %v1374_v33, %v1360_v32  ;;  %v1418_v20 = vadd.f32 %v1387_v24, %v1361_v1 }
 0x2a1   :  { %v1421_v3 = vmul.f32 0.5, %v1417_v39  ;;  %v1422_v48 = vmul.f32 0.5, %v1418_v20  ;;  %v1402_v27 = vpop.f32.mrf.mxu0  ;;  %v1415_v23 = vpop.f32.mrf.mxu1 }
 0x2a2   :  { %v6289_v27 = vld [vmem:[#allocation33_spill] sm:$0xff] }
 0x2a3   :  { %3617 = vtanh.f32 %v1421_v3 }
 0x2a4   :  { %3619 = vtanh.f32 %v1422_v48 }
 0x2a5   :  { %3621 = vtanh.f32 %v1420_v16 }
 0x2a6   :  { %v1376_v21 = vpop.f32.mrf.mxu2  ;;  %v1389_v47 = vpop.f32.mrf.mxu3  ;;  %3623 = vtanh.f32 %v1423_v18 }
 0x2a9   :  { %v3618_v11 = vpop.eup %3617  ;;  %v1475_v31 = vpop.f32.mrf.mxu0 }
 0x2aa   :  { %v3620_v33 = vpop.eup %3619  ;;  %v1427_v32 = vmul.f32 0.5, %v3618_v11  ;;  %v1476_v23 = vadd.f32 %v1475_v31, %v6289_v27 }
 0x2ab   :  { %v1428_v1 = vmul.f32 0.5, %v3620_v33  ;;  %v3622_v41 = vpop.eup %3621 }
 0x2ac   :  { %v1430_v24 = vadd.f32 0.5, %v1427_v32  ;;  %v3624_v47 = vpop.eup %3623 }
 0x2ad   :  { %v1431_v39 = vadd.f32 0.5, %v1428_v1  ;;  %v1429_v16 = vmul.f32 0.5, %v3624_v47 }
 0x2ae   :  { %v1435_v20 = vmul.f32 %v3622_v41, %v1430_v24  ;;  %v1449_v61 = vpop.f32.mrf.mxu2 }
 0x2af   :  { %v1434_v3 = vmul.f32 %v1431_v39, %v5116_v13  ;;  %v1488_v48 = vpop.f32.mrf.mxu1  ;;  %v1450_v18 = vadd.f32 %v1449_v61, %v5112_v55  ;;  %v1432_v31 = vadd.f32 0.5, %v1429_v16 }
 0x2b0   :  { %v1489_v21 = vadd.f32 %v1488_v48, %v1476_v23 }
 0x2b1   :  { %v5243_v36 = vadd.f32 %v1435_v20, %v1434_v3  ;;  %v1477_v53 = vpop.f32.mrf.mxu0 }
 0x2b2   :  { %v1545_v34 = vmul.f32 0.5, %v1489_v21 }
 0x2b3   :  { %3625 = vtanh.f32 %v5243_v36 }
 0x2b4   :  { %3627 = vtanh.f32 %v1545_v34  ;;  %v6291_v34 = vld [vmem:[#allocation83_spill] sm:$0xff] }
 0x2b5   :  { %v1462_v35 = vpop.f32.mrf.mxu3 }
 0x2b6   :  { %v1463_v11 = vadd.f32 %v1462_v35, %v1450_v18  ;;  %v1451_v33 = vpop.f32.mrf.mxu2  ;;  %v6290_v18 = vld [vmem:[#allocation81_spill] sm:$0xff] }
 0x2b7   :  { %v1490_v32 = vpop.f32.mrf.mxu1 }
 0x2b8   :  { %v1544_v1 = vmul.f32 0.5, %v1463_v11  ;;  %v6292_v11 = vld [vmem:[#allocation34_spill] sm:$0xff]  ;;  %v6293_v32 = vld [vmem:[#allocation84_spill] sm:$0xff] }
 0x2b9   :  { %v3626_v13 = vpop.eup %3625  ;;  %v1527_v24 = vpop.f32.mrf.mxu0 }
 0x2ba   :  { %v1438_v41 = vmul.f32 %v3626_v13, %v1432_v31  ;;  %3629 = vtanh.f32 %v1544_v1  ;;  %v3628_v23 = vpop.eup %3627  ;;  %v1528_v3 = vadd.f32 %v1527_v24, %v5119_v45  ;;  %v6294_v31 = vld [vmem:[#allocation86_spill] sm:$0xff]  ;;  %v6295_v24 = vld [vmem:[#allocation85_spill] sm:$0xff] }
 0x2bb   :  { %v1551_v53 = vmul.f32 0.5, %v3628_v23 }
 0x2bc   :  { %v5247_v39 = vpack.c.bf16 %v1438_v41, %v1438_v41 }
 0x2bd   :  { %v1464_v20 = vpop.f32.mrf.mxu3  ;;  %v1554_v1 = vadd.f32 0.5, %v1551_v53 }
 0x2be   :  { %1578 = vmatmul.bf16.vlgmr.msra.gmra.mxu2 %v5247_v39  ;;  %1591 = vmatmul.bf16.vlgmr.msra.gmra.mxu3 %v5247_v39 }
 0x2bf   :  { %1604 = vmatmul.bf16.vlgmr.msra.gmra.mxu0 %v5247_v39  ;;  %1617 = vmatmul.bf16.vlgmr.msrb.gmra.mxu1 %v5247_v39  ;;  %v1501_v61 = vpop.f32.mrf.mxu2  ;;  %v1540_v48 = vpop.f32.mrf.mxu1 }
 0x2c0   :  { %v3630_v21 = vpop.eup %3629  ;;  %1697 = vmatpush.bf16.msra.mxu2 %v6232_v30  ;;  %1723 = vmatpush.bf16.msra.mxu0 %v6233_v42  ;;  %v1541_v47 = vadd.f32 %v1540_v48, %v1528_v3  ;;  %v1502_v33 = vadd.f32 %v1501_v61, %v6292_v11  ;;  %v1557_v61 = vmul.f32 %v1554_v1, %v5142_v7 }
 0x2c1   :  { %v1529_v16 = vpop.f32.mrf.mxu0  ;;  %1710 = vmatpush.bf16.msra.mxu3 %v6290_v18  ;;  %1736 = vmatpush.bf16.msrb.mxu1 %v6291_v34  ;;  %v1550_v35 = vmul.f32 0.5, %v3630_v21 }
 0x2c2   :  { %3631 = vtanh.f32 %v1541_v47  ;;  %v6296_v47 = vld [vmem:[#allocation91_spill] sm:$0xff] }
 0x2c3   :  { %v1553_v20 = vadd.f32 0.5, %v1550_v35  ;;  %v6298_v35 = vld [vmem:[#allocation94_spill] sm:$0xff] }
 0x2c4   :  { %1698 = vmatpush.bf16.msra.mxu2 %v6293_v32  ;;  %1724 = vmatpush.bf16.msra.mxu0 %v6294_v31 }
 0x2c5   :  { %v1514_v13 = vpop.f32.mrf.mxu3  ;;  %1711 = vmatpush.bf16.msra.mxu3 %v6295_v24  ;;  %1737 = vmatpush.bf16.msrb.mxu1 %v6239_v17 }
 0x2c6   :  { %v1515_v41 = vadd.f32 %v1514_v13, %v1502_v33  ;;  %v6297_v33 = vld [vmem:[#allocation92_spill] sm:$0xff] }
 0x2c7   :  { %v1503_v23 = vpop.f32.mrf.mxu2  ;;  %v1542_v3 = vpop.f32.mrf.mxu1 }
 0x2c8   :  { %v3632_v48 = vpop.eup %3631  ;;  %v1546_v16 = vmul.f32 0.5, %v1515_v41  ;;  %1699 = vmatpush.bf16.msra.mxu2 %v6240_v26  ;;  %1725 = vmatpush.bf16.msra.mxu0 %v6241_v63  ;;  %v6299_v41 = vld [vmem:[#allocation95_spill] sm:$0xff] }
 0x2c9   :  { %v1558_v21 = vmul.f32 %v3632_v48, %v1553_v20  ;;  %1712 = vmatpush.bf16.msra.mxu3 %v6242_v22  ;;  %1738 = vmatpush.bf16.msrb.mxu1 %v6296_v47 }
 0x2ca   :  { %3633 = vtanh.f32 %v1546_v16  ;;  %v6301_v16 = vld [vmem:[#allocation12_spill] sm:$0xff] }
 0x2cb   :  { %v5268_v53 = vadd.f32 %v1558_v21, %v1557_v61  ;;  %v6302_v61 = vld [vmem:[#allocation18_spill] sm:$0xff]  ;;  %v6303_v21 = vld [vmem:[#allocation13_spill] sm:$0xff] }
 0x2cc   :  { %1700 = vmatpush.bf16.msra.mxu2 %v6297_v33  ;;  %1726 = vmatpush.bf16.msra.mxu0 %v6298_v35 }
 0x2cd   :  { %3635 = vtanh.f32 %v5268_v53  ;;  %v1516_v13 = vpop.f32.mrf.mxu3  ;;  %1713 = vmatpush.bf16.msra.mxu3 %v6246_v15  ;;  %1739 = vmatpush.bf16.msrb.mxu1 %v6299_v41 }
 0x2ce   :  { %1653 = vmatmul.bf16.vlgmr.msrb.gmra.mxu2 %v5247_v39  ;;  %v6304_v13 = vld [vmem:[#allocation29_spill] sm:$0xff] }
 0x2cf   :  { %1679 = vmatmul.bf16.vlgmr.msrb.gmra.mxu0 %v5247_v39 }
 0x2d0   :  { %v3634_v7 = vpop.eup %3633  ;;  %1701 = vmatpush.bf16.msra.mxu2 %v6248_v5  ;;  %1727 = vmatpush.bf16.msra.mxu0 %v6249_v51 }
 0x2d1   :  { %v1552_v1 = vmul.f32 0.5, %v3634_v7  ;;  %1714 = vmatpush.bf16.msra.mxu3 %v6250_v10  ;;  %1740 = vmatpush.bf16.msrb.mxu1 %v6251_v57  ;;  %v6305_v7 = vld [vmem:[#allocation15_spill] sm:$0xff] }
 0x2d3   :  { %v3636_v20 = vpop.eup %3635  ;;  %v1555_v23 = vadd.f32 0.5, %v1552_v1  ;;  %v6306_v1 = vld [vmem:[#allocation22_spill] sm:$0xff] }
 0x2d4   :  { %1702 = vmatpush.bf16.msra.mxu2 %v6252_v62  ;;  %1728 = vmatpush.bf16.msra.mxu0 %v4960_v8 }
 0x2d5   :  { %v1561_v3 = vmul.f32 %v3636_v20, %v1555_v23  ;;  %1715 = vmatpush.bf16.msra.mxu3 %v6253_v49  ;;  %1741 = vmatpush.bf16.msrb.mxu1 %v6254_v59  ;;  %v6307_v20 = vld [vmem:[#allocation17_spill] sm:$0xff]  ;;  %v6308_v23 = vld [vmem:[#allocation30_spill] sm:$0xff] }
 0x2d7   :  { %v1644_v48 = vpack.c.bf16 %v1561_v3, %v1561_v3  ;;  %v6309_v3 = vld [vmem:[#allocation16_spill] sm:$0xff] }
 0x2d8   :  { %1703 = vmatpush.bf16.msra.mxu2 %v4984_v4  ;;  %1729 = vmatpush.bf16.msra.mxu0 %v4996_v37 }
 0x2d9   :  { %1666 = vmatmul.bf16.vlgmr.msrb.gmra.mxu3 %v1644_v48  ;;  %1692 = vmatmul.bf16.vlgmr.msra.gmra.mxu1 %v1644_v48 }
 0x2da   :  { %1716 = vmatpush.bf16.msra.mxu3 %v4986_v43  ;;  %1742 = vmatpush.bf16.msrb.mxu1 %v4998_v9 }
 0x2dc   :  { %1704 = vmatpush.bf16.msra.mxu2 %v5020_v29  ;;  %1730 = vmatpush.bf16.msra.mxu0 %v5026_v38 }
 0x2de   :  { %1717 = vmatpush.bf16.msra.mxu3 %v5022_v28  ;;  %1743 = vmatpush.bf16.msrb.mxu1 %v5028_v58 }
 0x2df   :  { %1705 = vmatmul.bf16.vlgmr.msra.gmra.mxu2 %v5247_v39  ;;  %1731 = vmatmul.bf16.vlgmr.msra.gmra.mxu0 %v5247_v39  ;;  %v6300_v39 = vld [vmem:[#allocation28_spill] sm:$0xff] }
 0x2e0   :  { %1775 = vmatpush.bf16.msrb.mxu2 %v4024_v40  ;;  %1801 = vmatpush.bf16.msrb.mxu0 %v4059_v52 }
 0x2e2   :  { %1788 = vmatpush.bf16.msrb.mxu3 %v4036_v44  ;;  %1814 = vmatpush.bf16.msra.mxu1 %v4205_v54 }
 0x2e4   :  { %1776 = vmatpush.bf16.msrb.mxu2 %v4041_v46  ;;  %1802 = vmatpush.bf16.msrb.mxu0 %v4095_v0 }
 0x2e6   :  { %1789 = vmatpush.bf16.msrb.mxu3 %v4054_v50  ;;  %1815 = vmatpush.bf16.msra.mxu1 %v4240_v6 }
 0x2e8   :  { %1777 = vmatpush.bf16.msrb.mxu2 %v4069_v56  ;;  %1803 = vmatpush.bf16.msrb.mxu0 %v4122_v14 }
 0x2e9   :  { %1718 = vmatmul.bf16.vlgmr.msra.gmra.mxu3 %v1644_v48  ;;  %1744 = vmatmul.bf16.vlgmr.msrb.gmra.mxu1 %v1644_v48  ;;  %v6310_v48 = vld [vmem:[#allocation24_spill] sm:$0xff] }
 0x2ea   :  { %1790 = vmatpush.bf16.msrb.mxu3 %v4084_v60  ;;  %1816 = vmatpush.bf16.msra.mxu1 %v4269_v19  ;;  %v6350_v19 = vld [vmem:[#allocation38_spill] sm:$0xff] }
 0x2ec   :  { %1778 = vmatpush.bf16.msrb.mxu2 %v4101_v2  ;;  %1804 = vmatpush.bf16.msrb.mxu0 %v4153_v25 }
 0x2ee   :  { %1791 = vmatpush.bf16.msrb.mxu3 %v4117_v12  ;;  %1817 = vmatpush.bf16.msra.mxu1 %v6300_v39  ;;  %v6311_v39 = vld [vmem:[#allocation21_spill] sm:$0xff] }
 0x2ef   :  { %v6349_v12 = vld [vmem:[#allocation37_spill] sm:$0xff] }
 0x2f0   :  { %1779 = vmatpush.bf16.msrb.mxu2 %v6301_v16  ;;  %1805 = vmatpush.bf16.msrb.mxu0 %v6302_v61  ;;  %v6312_v16 = vld [vmem:[#allocation31_spill] sm:$0xff] }
 0x2f1   :  { %v6313_v61 = vld [vmem:[#allocation19_spill] sm:$0xff] }
 0x2f2   :  { %1792 = vmatpush.bf16.msrb.mxu3 %v6303_v21  ;;  %1818 = vmatpush.bf16.msra.mxu1 %v6304_v13  ;;  %v6314_v21 = vld [vmem:[#allocation27_spill] sm:$0xff]  ;;  %v6315_v13 = vld [vmem:[#allocation41_spill] sm:$0xff] }
 0x2f4   :  { %1780 = vmatpush.bf16.msrb.mxu2 %v6305_v7  ;;  %1806 = vmatpush.bf16.msrb.mxu0 %v6306_v1  ;;  %v6316_v7 = vld [vmem:[#allocation43_spill] sm:$0xff]  ;;  %v6317_v1 = vld [vmem:[#allocation25_spill] sm:$0xff] }
 0x2f6   :  { %1793 = vmatpush.bf16.msrb.mxu3 %v6307_v20  ;;  %1819 = vmatpush.bf16.msra.mxu1 %v6308_v23  ;;  %v6318_v20 = vld [vmem:[#allocation32_spill] sm:$0xff]  ;;  %v6319_v23 = vld [vmem:[#allocation42_spill] sm:$0xff] }
 0x2f8   :  { %1781 = vmatpush.bf16.msrb.mxu2 %v6309_v3  ;;  %1807 = vmatpush.bf16.msrb.mxu0 %v6310_v48  ;;  %v6320_v3 = vld [vmem:[#allocation44_spill] sm:$0xff]  ;;  %v6321_v48 = vld [vmem:[#allocation45_spill] sm:$0xff] }
 0x2fa   :  { %1794 = vmatpush.bf16.msrb.mxu3 %v6311_v39  ;;  %1820 = vmatpush.bf16.msra.mxu1 %v6312_v16  ;;  %v6322_v39 = vld [vmem:[#allocation48_spill] sm:$0xff]  ;;  %v6323_v16 = vld [vmem:[#allocation47_spill] sm:$0xff] }
 0x2fc   :  { %1782 = vmatpush.bf16.msrb.mxu2 %v6313_v61  ;;  %1808 = vmatpush.bf16.msrb.mxu0 %v6314_v21  ;;  %v6324_v61 = vld [vmem:[#allocation50_spill] sm:$0xff]  ;;  %v6325_v21 = vld [vmem:[#allocation51_spill] sm:$0xff] }
 0x2fe   :  { %1795 = vmatpush.bf16.msrb.mxu3 %v6317_v1  ;;  %1821 = vmatpush.bf16.msra.mxu1 %v6318_v20  ;;  %v6328_v1 = vld [vmem:[#allocation54_spill] sm:$0xff]  ;;  %v6329_v20 = vld [vmem:[#allocation55_spill] sm:$0xff] }
 0x300   :  { %1850 = vmatpush.bf16.msra.mxu2 %v6315_v13  ;;  %1876 = vmatpush.bf16.msra.mxu0 %v6316_v7  ;;  %v6326_v13 = vld [vmem:[#allocation53_spill] sm:$0xff]  ;;  %v6327_v7 = vld [vmem:[#allocation52_spill] sm:$0xff] }
 0x302   :  { %1863 = vmatpush.bf16.msra.mxu3 %v6319_v23  ;;  %1889 = vmatpush.bf16.msrb.mxu1 %v6320_v3  ;;  %v6330_v23 = vld [vmem:[#allocation58_spill] sm:$0xff]  ;;  %v6331_v3 = vld [vmem:[#allocation57_spill] sm:$0xff] }
 0x304   :  { %1851 = vmatpush.bf16.msra.mxu2 %v6321_v48  ;;  %1877 = vmatpush.bf16.msra.mxu0 %v6322_v39  ;;  %v6332_v48 = vld [vmem:[#allocation60_spill] sm:$0xff]  ;;  %v6333_v39 = vld [vmem:[#allocation61_spill] sm:$0xff] }
 0x306   :  { %1864 = vmatpush.bf16.msra.mxu3 %v6323_v16  ;;  %1890 = vmatpush.bf16.msrb.mxu1 %v6324_v61  ;;  %v6334_v16 = vld [vmem:[#allocation63_spill] sm:$0xff]  ;;  %v6335_v61 = vld [vmem:[#allocation62_spill] sm:$0xff] }
 0x308   :  { %1852 = vmatpush.bf16.msra.mxu2 %v6325_v21  ;;  %1878 = vmatpush.bf16.msra.mxu0 %v6326_v13  ;;  %v6336_v21 = vld [vmem:[#allocation64_spill] sm:$0xff]  ;;  %v6337_v13 = vld [vmem:[#allocation65_spill] sm:$0xff] }
 0x30a   :  { %1865 = vmatpush.bf16.msra.mxu3 %v6327_v7  ;;  %1891 = vmatpush.bf16.msrb.mxu1 %v6328_v1  ;;  %v6338_v7 = vld [vmem:[#allocation68_spill] sm:$0xff]  ;;  %v6339_v1 = vld [vmem:[#allocation67_spill] sm:$0xff] }
 0x30c   :  { %1853 = vmatpush.bf16.msra.mxu2 %v6329_v20  ;;  %1879 = vmatpush.bf16.msra.mxu0 %v6330_v23  ;;  %v6340_v20 = vld [vmem:[#allocation70_spill] sm:$0xff]  ;;  %v6341_v23 = vld [vmem:[#allocation71_spill] sm:$0xff] }
 0x30e   :  { %1866 = vmatpush.bf16.msra.mxu3 %v6331_v3  ;;  %1892 = vmatpush.bf16.msrb.mxu1 %v6332_v48  ;;  %v6342_v3 = vld [vmem:[#allocation73_spill] sm:$0xff]  ;;  %v6343_v48 = vld [vmem:[#allocation72_spill] sm:$0xff] }
 0x310   :  { %1854 = vmatpush.bf16.msra.mxu2 %v6333_v39  ;;  %1880 = vmatpush.bf16.msra.mxu0 %v6334_v16  ;;  %v6344_v39 = vld [vmem:[#allocation74_spill] sm:$0xff]  ;;  %v6345_v16 = vld [vmem:[#allocation75_spill] sm:$0xff] }
 0x312   :  { %1867 = vmatpush.bf16.msra.mxu3 %v6335_v61  ;;  %1893 = vmatpush.bf16.msrb.mxu1 %v6336_v21  ;;  %v6346_v61 = vld [vmem:[#allocation77_spill] sm:$0xff]  ;;  %v6347_v21 = vld [vmem:[#allocation76_spill] sm:$0xff] }
 0x314   :  { %1855 = vmatpush.bf16.msra.mxu2 %v6337_v13  ;;  %1881 = vmatpush.bf16.msra.mxu0 %v6338_v7  ;;  %v6348_v13 = vld [vmem:[#allocation78_spill] sm:$0xff] }
 0x316   :  { %1868 = vmatpush.bf16.msra.mxu3 %v6339_v1  ;;  %1894 = vmatpush.bf16.msrb.mxu1 %v6340_v20  ;;  %v1565_v20 = vunpack.c.l.bf16 %v6349_v12 }
 0x318   :  { %1856 = vmatpush.bf16.msra.mxu2 %v6341_v23  ;;  %1882 = vmatpush.bf16.msra.mxu0 %v6342_v3  ;;  %v1566_v23 = vunpack.c.h.bf16 %v6349_v12 }
 0x31a   :  { %1869 = vmatpush.bf16.msra.mxu3 %v6343_v48  ;;  %1895 = vmatpush.bf16.msrb.mxu1 %v6344_v39  ;;  %v1567_v39 = vunpack.c.l.bf16 %v6350_v19 }
 0x31c   :  { %1857 = vmatpush.bf16.msra.mxu2 %v6345_v16  ;;  %1883 = vmatpush.bf16.msra.mxu0 %v6346_v61  ;;  %v1568_v16 = vunpack.c.h.bf16 %v6350_v19 }
 0x31e   :  { %1870 = vmatpush.bf16.msra.mxu3 %v6347_v21  ;;  %1896 = vmatpush.bf16.msrb.mxu1 %v6348_v13 }
 0x33c   :  { %v1605_v7 = vpop.f32.mrf.mxu0  ;;  %v1618_v1 = vpop.f32.mrf.mxu1 }
 0x33d   :  { %v1624_v56 = vadd.f32 %v1605_v7, %v1567_v39  ;;  %v1625_v13 = vadd.f32 %v1618_v1, %v1568_v16 }
 0x33f   :  { %v1628_v0 = vmul.f32 0.5, %v1624_v56 }
 0x341   :  { %v1579_v25 = vpop.f32.mrf.mxu2  ;;  %v1592_v3 = vpop.f32.mrf.mxu3 }
 0x342   :  { %v1622_v2 = vadd.f32 %v1579_v25, %v1565_v20  ;;  %v1623_v48 = vadd.f32 %v1592_v3, %v1566_v23 }
 0x344   :  { %v1626_v60 = vmul.f32 0.5, %v1622_v2  ;;  %v1627_v61 = vmul.f32 0.5, %v1623_v48  ;;  %v1607_v14 = vpop.f32.mrf.mxu0  ;;  %v1620_v21 = vpop.f32.mrf.mxu1 }
 0x346   :  { %3637 = vtanh.f32 %v1626_v60 }
 0x347   :  { %3639 = vtanh.f32 %v1627_v61 }
 0x348   :  { %3641 = vtanh.f32 %v1625_v13 }
 0x349   :  { %v1581_v6 = vpop.f32.mrf.mxu2  ;;  %v1594_v50 = vpop.f32.mrf.mxu3  ;;  %3643 = vtanh.f32 %v1628_v0 }
 0x34c   :  { %v3638_v12 = vpop.eup %3637  ;;  %v1680_v46 = vpop.f32.mrf.mxu0 }
 0x34d   :  { %v3640_v25 = vpop.eup %3639  ;;  %v1632_v20 = vmul.f32 0.5, %v3638_v12  ;;  %v1681_v50 = vadd.f32 %v1680_v46, %v6289_v27 }
 0x34e   :  { %v1633_v23 = vmul.f32 0.5, %v3640_v25  ;;  %v3642_v19 = vpop.eup %3641 }
 0x34f   :  { %v1635_v3 = vadd.f32 0.5, %v1632_v20  ;;  %v3644_v16 = vpop.eup %3643 }
 0x350   :  { %v1636_v2 = vadd.f32 0.5, %v1633_v23  ;;  %v1634_v61 = vmul.f32 0.5, %v3644_v16 }
 0x351   :  { %v1640_v48 = vmul.f32 %v3642_v19, %v1635_v3  ;;  %v1654_v14 = vpop.f32.mrf.mxu2 }
 0x352   :  { %v1639_v39 = vmul.f32 %v1636_v2, %v5243_v36  ;;  %v1637_v13 = vadd.f32 0.5, %v1634_v61  ;;  %v1655_v7 = vadd.f32 %v1654_v14, %v5112_v55 }
 0x354   :  { %v5364_v60 = vadd.f32 %v1640_v48, %v1639_v39  ;;  %v1682_v6 = vpop.f32.mrf.mxu0 }
 0x356   :  { %3645 = vtanh.f32 %v5364_v60  ;;  %v1693_v56 = vpop.f32.mrf.mxu1 }
 0x357   :  { %v1694_v21 = vadd.f32 %v1693_v56, %v1681_v50 }
 0x359   :  { %v1656_v0 = vpop.f32.mrf.mxu2  ;;  %v1750_v1 = vmul.f32 0.5, %v1694_v21 }
 0x35b   :  { %3647 = vtanh.f32 %v1750_v1 }
 0x35c   :  { %v3646_v12 = vpop.eup %3645  ;;  %v1732_v25 = vpop.f32.mrf.mxu0 }
 0x35d   :  { %v1667_v20 = vpop.f32.mrf.mxu3  ;;  %v1643_v36 = vmul.f32 %v3646_v12, %v1637_v13  ;;  %v1733_v16 = vadd.f32 %v1732_v25, %v5119_v45 }
 0x35e   :  { %v1668_v23 = vadd.f32 %v1667_v20, %v1655_v7  ;;  %v1695_v3 = vpop.f32.mrf.mxu1 }
 0x35f   :  { %v5369_v19 = vpack.c.bf16 %v1643_v36, %v1643_v36 }
 0x360   :  { %v1749_v46 = vmul.f32 0.5, %v1668_v23 }
 0x361   :  { %1783 = vmatmul.bf16.vlgmr.msrb.gmra.mxu2 %v5369_v19  ;;  %1796 = vmatmul.bf16.vlgmr.msrb.gmra.mxu3 %v5369_v19  ;;  %v3648_v39 = vpop.eup %3647 }
 0x362   :  { %3649 = vtanh.f32 %v1749_v46  ;;  %1809 = vmatmul.bf16.vlgmr.msrb.gmra.mxu0 %v5369_v19  ;;  %1822 = vmatmul.bf16.vlgmr.msra.gmra.mxu1 %v5369_v19  ;;  %v1706_v2 = vpop.f32.mrf.mxu2  ;;  %v1756_v61 = vmul.f32 0.5, %v3648_v39 }
 0x363   :  { %1902 = vmatpush.bf16.msrb.mxu2 %v6232_v30  ;;  %1928 = vmatpush.bf16.msrb.mxu0 %v6233_v42  ;;  %v1707_v13 = vadd.f32 %v1706_v2, %v6292_v11 }
 0x364   :  { %v1734_v48 = vpop.f32.mrf.mxu0  ;;  %1915 = vmatpush.bf16.msrb.mxu3 %v6290_v18  ;;  %1941 = vmatpush.bf16.msra.mxu1 %v6291_v34  ;;  %v1759_v7 = vadd.f32 0.5, %v1756_v61  ;;  %v6352_v61 = vld [vmem:[#allocation8_spill] sm:$0xff] }
 0x365   :  { %v1669_v14 = vpop.f32.mrf.mxu3 }
 0x366   :  { %v1745_v6 = vpop.f32.mrf.mxu1  ;;  %v1762_v3 = vmul.f32 %v1759_v7, %v5268_v53  ;;  %v6356_v7 = vld [vmem:[#allocation11_spill] sm:$0xff] }
 0x367   :  { %1903 = vmatpush.bf16.msrb.mxu2 %v6293_v32  ;;  %1929 = vmatpush.bf16.msrb.mxu0 %v6294_v31  ;;  %v1746_v56 = vadd.f32 %v1745_v6, %v1733_v16 }
 0x368   :  { %v3650_v50 = vpop.eup %3649  ;;  %1916 = vmatpush.bf16.msrb.mxu3 %v6295_v24  ;;  %1942 = vmatpush.bf16.msra.mxu1 %v6239_v17 }
 0x369   :  { %3651 = vtanh.f32 %v1746_v56  ;;  %v1755_v21 = vmul.f32 0.5, %v3650_v50  ;;  %v6351_v56 = vld [vmem:[#allocation4_spill] sm:$0xff] }
 0x36a   :  { %v1708_v0 = vpop.f32.mrf.mxu2 }
 0x36b   :  { %1904 = vmatpush.bf16.msrb.mxu2 %v6240_v26  ;;  %1930 = vmatpush.bf16.msrb.mxu0 %v6241_v63  ;;  %v1758_v25 = vadd.f32 0.5, %v1755_v21  ;;  %v6353_v21 = vld [vmem:[#allocation5_spill] sm:$0xff]  ;;  %v6354_v0 = vld [vmem:[#allocation23_spill] sm:$0xff] }
 0x36c   :  { %1917 = vmatpush.bf16.msrb.mxu3 %v6242_v22  ;;  %1943 = vmatpush.bf16.msra.mxu1 %v6296_v47 }
 0x36d   :  { %v1719_v1 = vpop.f32.mrf.mxu3 }
 0x36e   :  { %v1720_v12 = vadd.f32 %v1719_v1, %v1707_v13  ;;  %v1747_v20 = vpop.f32.mrf.mxu1  ;;  %v6355_v13 = vld [vmem:[#allocation6_spill] sm:$0xff] }
 0x36f   :  { %v3652_v36 = vpop.eup %3651  ;;  %1905 = vmatpush.bf16.msrb.mxu2 %v6297_v33  ;;  %1931 = vmatpush.bf16.msrb.mxu0 %v6298_v35  ;;  %v6358_v1 = vld [vmem:[#allocation26_spill] sm:$0xff] }
 0x370   :  { %v1751_v23 = vmul.f32 0.5, %v1720_v12  ;;  %v1763_v46 = vmul.f32 %v3652_v36, %v1758_v25  ;;  %1918 = vmatpush.bf16.msrb.mxu3 %v6246_v15  ;;  %1944 = vmatpush.bf16.msra.mxu1 %v6299_v41  ;;  %v6359_v12 = vld [vmem:[#allocation9_spill] sm:$0xff]  ;;  %v6360_v25 = vld [vmem:[#allocation14_spill] sm:$0xff]  ;;  %v6362_v36 = vld [vmem:[#allocation28_spill] sm:$0xff] }
 0x371   :  { %1858 = vmatmul.bf16.vlgmr.msra.gmra.mxu2 %v5369_v19  ;;  %v6361_v20 = vld [vmem:[#allocation10_spill] sm:$0xff] }
 0x372   :  { %3653 = vtanh.f32 %v1751_v23  ;;  %v5395_v2 = vadd.f32 %v1763_v46, %v1762_v3  ;;  %1884 = vmatmul.bf16.vlgmr.msra.gmra.mxu0 %v5369_v19  ;;  %v6363_v23 = vld [vmem:[#allocation12_spill] sm:$0xff]  ;;  %v6364_v3 = vld [vmem:[#allocation18_spill] sm:$0xff]  ;;  %v6365_v46 = vld [vmem:[#allocation13_spill] sm:$0xff] }
 0x373   :  { %1906 = vmatpush.bf16.msrb.mxu2 %v6248_v5  ;;  %1932 = vmatpush.bf16.msrb.mxu0 %v6249_v51 }
 0x374   :  { %3655 = vtanh.f32 %v5395_v2  ;;  %1919 = vmatpush.bf16.msrb.mxu3 %v6250_v10  ;;  %1945 = vmatpush.bf16.msra.mxu1 %v6251_v57 }
 0x375   :  { %v1721_v48 = vpop.f32.mrf.mxu3 }
 0x376   :  { %v6366_v48 = vld [vmem:[#allocation29_spill] sm:$0xff] }
 0x377   :  { %1907 = vmatpush.bf16.msrb.mxu2 %v6252_v62  ;;  %1933 = vmatpush.bf16.msrb.mxu0 %v4960_v8 }
 0x378   :  { %v3654_v53 = vpop.eup %3653  ;;  %1920 = vmatpush.bf16.msrb.mxu3 %v6253_v49  ;;  %1946 = vmatpush.bf16.msra.mxu1 %v6254_v59 }
 0x379   :  { %v1757_v14 = vmul.f32 0.5, %v3654_v53  ;;  %v6367_v53 = vld [vmem:[#allocation15_spill] sm:$0xff] }
 0x37a   :  { %v3656_v39 = vpop.eup %3655 }
 0x37b   :  { %v1760_v16 = vadd.f32 0.5, %v1757_v14  ;;  %1908 = vmatpush.bf16.msrb.mxu2 %v4984_v4  ;;  %1934 = vmatpush.bf16.msrb.mxu0 %v4996_v37  ;;  %v6368_v14 = vld [vmem:[#allocation22_spill] sm:$0xff] }
 0x37c   :  { %1921 = vmatpush.bf16.msrb.mxu3 %v4986_v43  ;;  %1947 = vmatpush.bf16.msra.mxu1 %v4998_v9 }
 0x37d   :  { %v1766_v6 = vmul.f32 %v3656_v39, %v1760_v16  ;;  %v6369_v39 = vld [vmem:[#allocation17_spill] sm:$0xff]  ;;  %v6370_v16 = vld [vmem:[#allocation30_spill] sm:$0xff] }
 0x37f   :  { %v1849_v50 = vpack.c.bf16 %v1766_v6, %v1766_v6  ;;  %1909 = vmatpush.bf16.msrb.mxu2 %v5020_v29  ;;  %1935 = vmatpush.bf16.msrb.mxu0 %v5026_v38  ;;  %v6371_v6 = vld [vmem:[#allocation16_spill] sm:$0xff] }
 0x380   :  { %1922 = vmatpush.bf16.msrb.mxu3 %v5022_v28  ;;  %1948 = vmatpush.bf16.msra.mxu1 %v5028_v58 }
 0x381   :  { %1871 = vmatmul.bf16.vlgmr.msra.gmra.mxu3 %v1849_v50  ;;  %1897 = vmatmul.bf16.vlgmr.msrb.gmra.mxu1 %v1849_v50 }
 0x382   :  { %1910 = vmatmul.bf16.vlgmr.msrb.gmra.mxu2 %v5369_v19  ;;  %1936 = vmatmul.bf16.vlgmr.msrb.gmra.mxu0 %v5369_v19  ;;  %v6357_v19 = vld [vmem:[#allocation7_spill] sm:$0xff] }
 0x383   :  { %1980 = vmatpush.bf16.msra.mxu2 %v4024_v40  ;;  %2006 = vmatpush.bf16.msra.mxu0 %v4059_v52 }
 0x384   :  { %1993 = vmatpush.bf16.msra.mxu3 %v4036_v44  ;;  %2019 = vmatpush.bf16.msrb.mxu1 %v4205_v54 }
 0x387   :  { %1981 = vmatpush.bf16.msra.mxu2 %v6351_v56  ;;  %2007 = vmatpush.bf16.msra.mxu0 %v6352_v61 }
 0x388   :  { %1994 = vmatpush.bf16.msra.mxu3 %v6353_v21  ;;  %2020 = vmatpush.bf16.msrb.mxu1 %v6354_v0 }
 0x38b   :  { %1982 = vmatpush.bf16.msra.mxu2 %v6355_v13  ;;  %2008 = vmatpush.bf16.msra.mxu0 %v6356_v7 }
 0x38c   :  { %1995 = vmatpush.bf16.msra.mxu3 %v6357_v19  ;;  %2021 = vmatpush.bf16.msrb.mxu1 %v6358_v1 }
 0x38f   :  { %1983 = vmatpush.bf16.msra.mxu2 %v6359_v12  ;;  %2009 = vmatpush.bf16.msra.mxu0 %v6360_v25  ;;  %v6412_v25 = vld [vmem:[#allocation40_spill] sm:$0xff] }
 0x390   :  { %1996 = vmatpush.bf16.msra.mxu3 %v6361_v20  ;;  %2022 = vmatpush.bf16.msrb.mxu1 %v6362_v36  ;;  %v6373_v36 = vld [vmem:[#allocation21_spill] sm:$0xff]  ;;  %v6374_v20 = vld [vmem:[#allocation31_spill] sm:$0xff] }
 0x391   :  { %1923 = vmatmul.bf16.vlgmr.msrb.gmra.mxu3 %v1849_v50  ;;  %1949 = vmatmul.bf16.vlgmr.msra.gmra.mxu1 %v1849_v50  ;;  %v6372_v50 = vld [vmem:[#allocation24_spill] sm:$0xff] }
 0x393   :  { %1984 = vmatpush.bf16.msra.mxu2 %v6363_v23  ;;  %2010 = vmatpush.bf16.msra.mxu0 %v6364_v3  ;;  %v6375_v3 = vld [vmem:[#allocation19_spill] sm:$0xff] }
 0x394   :  { %1997 = vmatpush.bf16.msra.mxu3 %v6365_v46  ;;  %2023 = vmatpush.bf16.msrb.mxu1 %v6366_v48  ;;  %v6376_v46 = vld [vmem:[#allocation27_spill] sm:$0xff]  ;;  %v6377_v48 = vld [vmem:[#allocation41_spill] sm:$0xff] }
 0x395   :  { %v6411_v23 = vld [vmem:[#allocation39_spill] sm:$0xff] }
 0x397   :  { %1985 = vmatpush.bf16.msra.mxu2 %v6367_v53  ;;  %2011 = vmatpush.bf16.msra.mxu0 %v6368_v14  ;;  %v6378_v53 = vld [vmem:[#allocation43_spill] sm:$0xff]  ;;  %v6379_v14 = vld [vmem:[#allocation25_spill] sm:$0xff] }
 0x398   :  { %1998 = vmatpush.bf16.msra.mxu3 %v6369_v39  ;;  %2024 = vmatpush.bf16.msrb.mxu1 %v6370_v16  ;;  %v6380_v39 = vld [vmem:[#allocation32_spill] sm:$0xff]  ;;  %v6381_v16 = vld [vmem:[#allocation42_spill] sm:$0xff] }
 0x39b   :  { %1986 = vmatpush.bf16.msra.mxu2 %v6371_v6  ;;  %2012 = vmatpush.bf16.msra.mxu0 %v6372_v50  ;;  %v6382_v6 = vld [vmem:[#allocation44_spill] sm:$0xff]  ;;  %v6383_v50 = vld [vmem:[#allocation45_spill] sm:$0xff] }
 0x39c   :  { %1999 = vmatpush.bf16.msra.mxu3 %v6373_v36  ;;  %2025 = vmatpush.bf16.msrb.mxu1 %v6374_v20  ;;  %v6384_v36 = vld [vmem:[#allocation48_spill] sm:$0xff]  ;;  %v6385_v20 = vld [vmem:[#allocation47_spill] sm:$0xff] }
 0x39f   :  { %1987 = vmatpush.bf16.msra.mxu2 %v6375_v3  ;;  %2013 = vmatpush.bf16.msra.mxu0 %v6376_v46  ;;  %v6386_v3 = vld [vmem:[#allocation50_spill] sm:$0xff]  ;;  %v6387_v46 = vld [vmem:[#allocation51_spill] sm:$0xff] }
 0x3a0   :  { %2000 = vmatpush.bf16.msra.mxu3 %v6379_v14  ;;  %2026 = vmatpush.bf16.msrb.mxu1 %v6380_v39  ;;  %v6390_v14 = vld [vmem:[#allocation54_spill] sm:$0xff]  ;;  %v6391_v39 = vld [vmem:[#allocation55_spill] sm:$0xff] }
 0x3a3   :  { %2055 = vmatpush.bf16.msrb.mxu2 %v6377_v48  ;;  %2081 = vmatpush.bf16.msrb.mxu0 %v6378_v53  ;;  %v6388_v48 = vld [vmem:[#allocation53_spill] sm:$0xff]  ;;  %v6389_v53 = vld [vmem:[#allocation52_spill] sm:$0xff] }
 0x3a4   :  { %2068 = vmatpush.bf16.msrb.mxu3 %v6381_v16  ;;  %2094 = vmatpush.bf16.msra.mxu1 %v6382_v6  ;;  %v6392_v16 = vld [vmem:[#allocation58_spill] sm:$0xff]  ;;  %v6393_v6 = vld [vmem:[#allocation57_spill] sm:$0xff] }
 0x3a7   :  { %2056 = vmatpush.bf16.msrb.mxu2 %v6383_v50  ;;  %2082 = vmatpush.bf16.msrb.mxu0 %v6384_v36  ;;  %v6394_v50 = vld [vmem:[#allocation60_spill] sm:$0xff]  ;;  %v6395_v36 = vld [vmem:[#allocation61_spill] sm:$0xff] }
 0x3a8   :  { %2069 = vmatpush.bf16.msrb.mxu3 %v6385_v20  ;;  %2095 = vmatpush.bf16.msra.mxu1 %v6386_v3  ;;  %v6396_v20 = vld [vmem:[#allocation63_spill] sm:$0xff]  ;;  %v6397_v3 = vld [vmem:[#allocation62_spill] sm:$0xff] }
 0x3ab   :  { %2057 = vmatpush.bf16.msrb.mxu2 %v6387_v46  ;;  %2083 = vmatpush.bf16.msrb.mxu0 %v6388_v48  ;;  %v6398_v46 = vld [vmem:[#allocation64_spill] sm:$0xff]  ;;  %v6399_v48 = vld [vmem:[#allocation65_spill] sm:$0xff] }
 0x3ac   :  { %2070 = vmatpush.bf16.msrb.mxu3 %v6389_v53  ;;  %2096 = vmatpush.bf16.msra.mxu1 %v6390_v14  ;;  %v6400_v53 = vld [vmem:[#allocation68_spill] sm:$0xff]  ;;  %v6401_v14 = vld [vmem:[#allocation67_spill] sm:$0xff] }
 0x3af   :  { %2058 = vmatpush.bf16.msrb.mxu2 %v6391_v39  ;;  %2084 = vmatpush.bf16.msrb.mxu0 %v6392_v16  ;;  %v6402_v39 = vld [vmem:[#allocation70_spill] sm:$0xff]  ;;  %v6403_v16 = vld [vmem:[#allocation71_spill] sm:$0xff] }
 0x3b0   :  { %2071 = vmatpush.bf16.msrb.mxu3 %v6393_v6  ;;  %2097 = vmatpush.bf16.msra.mxu1 %v6394_v50  ;;  %v6404_v6 = vld [vmem:[#allocation73_spill] sm:$0xff]  ;;  %v6405_v50 = vld [vmem:[#allocation72_spill] sm:$0xff] }
 0x3b3   :  { %2059 = vmatpush.bf16.msrb.mxu2 %v6395_v36  ;;  %2085 = vmatpush.bf16.msrb.mxu0 %v6396_v20  ;;  %v6406_v36 = vld [vmem:[#allocation74_spill] sm:$0xff]  ;;  %v6407_v20 = vld [vmem:[#allocation75_spill] sm:$0xff] }
 0x3b4   :  { %2072 = vmatpush.bf16.msrb.mxu3 %v6397_v3  ;;  %2098 = vmatpush.bf16.msra.mxu1 %v6398_v46  ;;  %v6408_v3 = vld [vmem:[#allocation77_spill] sm:$0xff]  ;;  %v6409_v46 = vld [vmem:[#allocation76_spill] sm:$0xff] }
 0x3b7   :  { %2060 = vmatpush.bf16.msrb.mxu2 %v6399_v48  ;;  %2086 = vmatpush.bf16.msrb.mxu0 %v6400_v53  ;;  %v6410_v48 = vld [vmem:[#allocation78_spill] sm:$0xff] }
 0x3b8   :  { %2073 = vmatpush.bf16.msrb.mxu3 %v6401_v14  ;;  %2099 = vmatpush.bf16.msra.mxu1 %v6402_v39  ;;  %v1770_v39 = vunpack.c.l.bf16 %v6411_v23 }
 0x3bb   :  { %2061 = vmatpush.bf16.msrb.mxu2 %v6403_v16  ;;  %2087 = vmatpush.bf16.msrb.mxu0 %v6404_v6  ;;  %v1771_v16 = vunpack.c.h.bf16 %v6411_v23 }
 0x3bc   :  { %2074 = vmatpush.bf16.msrb.mxu3 %v6405_v50  ;;  %2100 = vmatpush.bf16.msra.mxu1 %v6406_v36  ;;  %v1772_v36 = vunpack.c.l.bf16 %v6412_v25 }
 0x3bf   :  { %2062 = vmatpush.bf16.msrb.mxu2 %v6407_v20  ;;  %2088 = vmatpush.bf16.msrb.mxu0 %v6408_v3  ;;  %v1773_v20 = vunpack.c.h.bf16 %v6412_v25 }
 0x3c0   :  { %2075 = vmatpush.bf16.msrb.mxu3 %v6409_v46  ;;  %2101 = vmatpush.bf16.msra.mxu1 %v6410_v48 }
 0x3df   :  { %v1810_v53 = vpop.f32.mrf.mxu0  ;;  %v1823_v14 = vpop.f32.mrf.mxu1 }
 0x3e0   :  { %v1829_v21 = vadd.f32 %v1810_v53, %v1772_v36  ;;  %v1830_v48 = vadd.f32 %v1823_v14, %v1773_v20 }
 0x3e2   :  { %v1833_v54 = vmul.f32 0.5, %v1829_v21 }
 0x3e4   :  { %v1784_v1 = vpop.f32.mrf.mxu2  ;;  %v1797_v6 = vpop.f32.mrf.mxu3 }
 0x3e5   :  { %v1827_v19 = vadd.f32 %v1784_v1, %v1770_v39  ;;  %v1828_v50 = vadd.f32 %v1797_v6, %v1771_v16 }
 0x3e7   :  { %v1831_v12 = vmul.f32 0.5, %v1827_v19  ;;  %v1832_v3 = vmul.f32 0.5, %v1828_v50  ;;  %v1812_v0 = vpop.f32.mrf.mxu0  ;;  %v1825_v46 = vpop.f32.mrf.mxu1 }
 0x3e9   :  { %3657 = vtanh.f32 %v1831_v12 }
 0x3ea   :  { %3659 = vtanh.f32 %v1832_v3 }
 0x3eb   :  { %3661 = vtanh.f32 %v1830_v48 }
 0x3ec   :  { %v1786_v7 = vpop.f32.mrf.mxu2  ;;  %v1799_v13 = vpop.f32.mrf.mxu3  ;;  %3663 = vtanh.f32 %v1833_v54 }
 0x3ef   :  { %v3658_v23 = vpop.eup %3657  ;;  %v1885_v44 = vpop.f32.mrf.mxu0 }
 0x3f0   :  { %v3660_v1 = vpop.eup %3659  ;;  %v1837_v39 = vmul.f32 0.5, %v3658_v23  ;;  %v1886_v13 = vadd.f32 %v1885_v44, %v6289_v27 }
 0x3f1   :  { %v1838_v16 = vmul.f32 0.5, %v3660_v1  ;;  %v3662_v25 = vpop.eup %3661 }
 0x3f2   :  { %v1840_v6 = vadd.f32 0.5, %v1837_v39  ;;  %v3664_v20 = vpop.eup %3663 }
 0x3f3   :  { %v1841_v19 = vadd.f32 0.5, %v1838_v16  ;;  %v1839_v21 = vmul.f32 0.5, %v3664_v20 }
 0x3f4   :  { %v1845_v50 = vmul.f32 %v3662_v25, %v1840_v6  ;;  %v1859_v0 = vpop.f32.mrf.mxu2 }
 0x3f5   :  { %v1844_v36 = vmul.f32 %v1841_v19, %v5364_v60  ;;  %v1842_v54 = vadd.f32 0.5, %v1839_v21  ;;  %v1860_v60 = vadd.f32 %v1859_v0, %v5112_v55 }
 0x3f7   :  { %v5486_v12 = vadd.f32 %v1845_v50, %v1844_v36  ;;  %v1887_v7 = vpop.f32.mrf.mxu0 }
 0x3f9   :  { %3665 = vtanh.f32 %v5486_v12 }
 0x3fc   :  { %v1861_v3 = vpop.f32.mrf.mxu2 }
 0x3fe   :  { %v1898_v46 = vpop.f32.mrf.mxu1 }
 0x3ff   :  { %v1899_v48 = vadd.f32 %v1898_v46, %v1886_v13  ;;  %v3666_v53 = vpop.eup %3665  ;;  %v1937_v14 = vpop.f32.mrf.mxu0 }
 0x400   :  { %v1848_v23 = vmul.f32 %v3666_v53, %v1842_v54  ;;  %v1938_v20 = vadd.f32 %v1937_v14, %v5119_v45 }
 0x401   :  { %v1955_v39 = vmul.f32 0.5, %v1899_v48 }
 0x402   :  { %v5490_v1 = vpack.c.bf16 %v1848_v23, %v1848_v23 }
 0x403   :  { %3667 = vtanh.f32 %v1955_v39 }
 0x404   :  { %v1872_v16 = vpop.f32.mrf.mxu3  ;;  %1988 = vmatmul.bf16.vlgmr.msra.gmra.mxu2 %v5490_v1  ;;  %2001 = vmatmul.bf16.vlgmr.msra.gmra.mxu3 %v5490_v1 }
 0x405   :  { %v1873_v6 = vadd.f32 %v1872_v16, %v1860_v60  ;;  %2014 = vmatmul.bf16.vlgmr.msra.gmra.mxu0 %v5490_v1  ;;  %2027 = vmatmul.bf16.vlgmr.msrb.gmra.mxu1 %v5490_v1  ;;  %v1911_v44 = vpop.f32.mrf.mxu2 }
 0x406   :  { %v1900_v25 = vpop.f32.mrf.mxu1  ;;  %2107 = vmatpush.bf16.msra.mxu2 %v6232_v30  ;;  %2133 = vmatpush.bf16.msra.mxu0 %v6233_v42  ;;  %v1912_v48 = vadd.f32 %v1911_v44, %v6292_v11 }
 0x407   :  { %v1954_v19 = vmul.f32 0.5, %v1873_v6  ;;  %v1939_v50 = vpop.f32.mrf.mxu0  ;;  %2120 = vmatpush.bf16.msra.mxu3 %v6290_v18  ;;  %2146 = vmatpush.bf16.msrb.mxu1 %v6291_v34 }
 0x409   :  { %3669 = vtanh.f32 %v1954_v19  ;;  %v3668_v36 = vpop.eup %3667 }
 0x40a   :  { %2108 = vmatpush.bf16.msra.mxu2 %v6293_v32  ;;  %2134 = vmatpush.bf16.msra.mxu0 %v6294_v31  ;;  %v1961_v46 = vmul.f32 0.5, %v3668_v36 }
 0x40b   :  { %2121 = vmatpush.bf16.msra.mxu3 %v6295_v24  ;;  %2147 = vmatpush.bf16.msrb.mxu1 %v6239_v17 }
 0x40c   :  { %v1874_v0 = vpop.f32.mrf.mxu3  ;;  %v1964_v53 = vadd.f32 0.5, %v1961_v46  ;;  %v6415_v46 = vld [vmem:[#allocation6_spill] sm:$0xff] }
 0x40d   :  { %v1913_v7 = vpop.f32.mrf.mxu2 }
 0x40e   :  { %v1950_v21 = vpop.f32.mrf.mxu1  ;;  %2109 = vmatpush.bf16.msra.mxu2 %v6240_v26  ;;  %2135 = vmatpush.bf16.msra.mxu0 %v6241_v63  ;;  %v1967_v44 = vmul.f32 %v1964_v53, %v5395_v2  ;;  %v6418_v53 = vld [vmem:[#allocation23_spill] sm:$0xff] }
 0x40f   :  { %v3670_v13 = vpop.eup %3669  ;;  %v1951_v3 = vadd.f32 %v1950_v21, %v1938_v20  ;;  %2122 = vmatpush.bf16.msra.mxu3 %v6242_v22  ;;  %2148 = vmatpush.bf16.msrb.mxu1 %v6296_v47 }
 0x410   :  { %v1960_v54 = vmul.f32 0.5, %v3670_v13  ;;  %v6413_v13 = vld [vmem:[#allocation3_spill] sm:$0xff] }
 0x411   :  { %3671 = vtanh.f32 %v1951_v3  ;;  %v6414_v3 = vld [vmem:[#allocation20_spill] sm:$0xff] }
 0x412   :  { %2110 = vmatpush.bf16.msra.mxu2 %v6297_v33  ;;  %2136 = vmatpush.bf16.msra.mxu0 %v6298_v35  ;;  %v1963_v60 = vadd.f32 0.5, %v1960_v54  ;;  %v6416_v54 = vld [vmem:[#allocation11_spill] sm:$0xff] }
 0x413   :  { %2123 = vmatpush.bf16.msra.mxu3 %v6246_v15  ;;  %2149 = vmatpush.bf16.msrb.mxu1 %v6299_v41 }
 0x414   :  { %v1924_v14 = vpop.f32.mrf.mxu3  ;;  %2063 = vmatmul.bf16.vlgmr.msrb.gmra.mxu2 %v5490_v1 }
 0x415   :  { %v1925_v23 = vadd.f32 %v1924_v14, %v1912_v48  ;;  %2089 = vmatmul.bf16.vlgmr.msrb.gmra.mxu0 %v5490_v1  ;;  %v6417_v48 = vld [vmem:[#allocation5_spill] sm:$0xff] }
 0x416   :  { %v1952_v39 = vpop.f32.mrf.mxu1  ;;  %2111 = vmatpush.bf16.msra.mxu2 %v6248_v5  ;;  %2137 = vmatpush.bf16.msra.mxu0 %v6249_v51  ;;  %v6419_v14 = vld [vmem:[#allocation9_spill] sm:$0xff] }
 0x417   :  { %v3672_v16 = vpop.eup %3671  ;;  %v1956_v6 = vmul.f32 0.5, %v1925_v23  ;;  %2124 = vmatpush.bf16.msra.mxu3 %v6250_v10  ;;  %2150 = vmatpush.bf16.msrb.mxu1 %v6251_v57  ;;  %v6421_v23 = vld [vmem:[#allocation7_spill] sm:$0xff]  ;;  %v6423_v39 = vld [vmem:[#allocation12_spill] sm:$0xff] }
 0x418   :  { %v1968_v25 = vmul.f32 %v3672_v16, %v1963_v60  ;;  %v6422_v60 = vld [vmem:[#allocation26_spill] sm:$0xff] }
 0x419   :  { %3673 = vtanh.f32 %v1956_v6  ;;  %v6424_v16 = vld [vmem:[#allocation18_spill] sm:$0xff] }
 0x41a   :  { %v5522_v19 = vadd.f32 %v1968_v25, %v1967_v44  ;;  %2112 = vmatpush.bf16.msra.mxu2 %v6252_v62  ;;  %2138 = vmatpush.bf16.msra.mxu0 %v4960_v8  ;;  %v6425_v6 = vld [vmem:[#allocation10_spill] sm:$0xff]  ;;  %v6426_v44 = vld [vmem:[#allocation28_spill] sm:$0xff]  ;;  %v6427_v25 = vld [vmem:[#allocation15_spill] sm:$0xff] }
 0x41b   :  { %2125 = vmatpush.bf16.msra.mxu3 %v6253_v49  ;;  %2151 = vmatpush.bf16.msrb.mxu1 %v6254_v59 }
 0x41c   :  { %3675 = vtanh.f32 %v5522_v19  ;;  %v1926_v50 = vpop.f32.mrf.mxu3 }
 0x41d   :  { %v6428_v50 = vld [vmem:[#allocation22_spill] sm:$0xff] }
 0x41e   :  { %2113 = vmatpush.bf16.msra.mxu2 %v4984_v4  ;;  %2139 = vmatpush.bf16.msra.mxu0 %v4996_v37 }
 0x41f   :  { %v3674_v2 = vpop.eup %3673  ;;  %2126 = vmatpush.bf16.msra.mxu3 %v4986_v43  ;;  %2152 = vmatpush.bf16.msrb.mxu1 %v4998_v9 }
 0x420   :  { %v1962_v0 = vmul.f32 0.5, %v3674_v2  ;;  %v6429_v2 = vld [vmem:[#allocation13_spill] sm:$0xff] }
 0x422   :  { %v3676_v36 = vpop.eup %3675  ;;  %v1965_v20 = vadd.f32 0.5, %v1962_v0  ;;  %2114 = vmatpush.bf16.msra.mxu2 %v5020_v29  ;;  %2140 = vmatpush.bf16.msra.mxu0 %v5026_v38  ;;  %v6430_v0 = vld [vmem:[#allocation29_spill] sm:$0xff] }
 0x423   :  { %2127 = vmatpush.bf16.msra.mxu3 %v5022_v28  ;;  %2153 = vmatpush.bf16.msrb.mxu1 %v5028_v58 }
 0x424   :  { %v1971_v7 = vmul.f32 %v3676_v36, %v1965_v20  ;;  %v6431_v36 = vld [vmem:[#allocation16_spill] sm:$0xff] }
 0x425   :  { %2115 = vmatmul.bf16.vlgmr.msra.gmra.mxu2 %v5490_v1  ;;  %2141 = vmatmul.bf16.vlgmr.msra.gmra.mxu0 %v5490_v1  ;;  %v6420_v1 = vld [vmem:[#allocation14_spill] sm:$0xff]  ;;  %v6432_v20 = vld [vmem:[#allocation24_spill] sm:$0xff] }
 0x426   :  { %2185 = vmatpush.bf16.msrb.mxu2 %v4024_v40  ;;  %2211 = vmatpush.bf16.msrb.mxu0 %v4059_v52  ;;  %v2054_v21 = vpack.c.bf16 %v1971_v7, %v1971_v7  ;;  %v6433_v7 = vld [vmem:[#allocation17_spill] sm:$0xff] }
 0x428   :  { %2076 = vmatmul.bf16.vlgmr.msrb.gmra.mxu3 %v2054_v21  ;;  %2102 = vmatmul.bf16.vlgmr.msra.gmra.mxu1 %v2054_v21 }
 0x429   :  { %2198 = vmatpush.bf16.msrb.mxu3 %v6413_v13  ;;  %2224 = vmatpush.bf16.msra.mxu1 %v6414_v3 }
 0x42a   :  { %2186 = vmatpush.bf16.msrb.mxu2 %v6351_v56  ;;  %2212 = vmatpush.bf16.msrb.mxu0 %v6352_v61 }
 0x42d   :  { %2199 = vmatpush.bf16.msrb.mxu3 %v6417_v48  ;;  %2225 = vmatpush.bf16.msra.mxu1 %v6418_v53  ;;  %v6474_v53 = vld [vmem:[#allocation49_spill] sm:$0xff] }
 0x42e   :  { %2187 = vmatpush.bf16.msrb.mxu2 %v6415_v46  ;;  %2213 = vmatpush.bf16.msrb.mxu0 %v6416_v54 }
 0x431   :  { %2200 = vmatpush.bf16.msrb.mxu3 %v6421_v23  ;;  %2226 = vmatpush.bf16.msra.mxu1 %v6422_v60  ;;  %v6434_v60 = vld [vmem:[#allocation30_spill] sm:$0xff] }
 0x432   :  { %2188 = vmatpush.bf16.msrb.mxu2 %v6419_v14  ;;  %2214 = vmatpush.bf16.msrb.mxu0 %v6420_v1  ;;  %v6473_v23 = vld [vmem:[#allocation46_spill] sm:$0xff] }
 0x435   :  { %2201 = vmatpush.bf16.msrb.mxu3 %v6425_v6  ;;  %2227 = vmatpush.bf16.msra.mxu1 %v6426_v44  ;;  %v6435_v6 = vld [vmem:[#allocation19_spill] sm:$0xff] }
 0x436   :  { %2189 = vmatpush.bf16.msrb.mxu2 %v6423_v39  ;;  %2215 = vmatpush.bf16.msrb.mxu0 %v6424_v16  ;;  %v6436_v44 = vld [vmem:[#allocation27_spill] sm:$0xff] }
 0x438   :  { %2128 = vmatmul.bf16.vlgmr.msra.gmra.mxu3 %v2054_v21  ;;  %2154 = vmatmul.bf16.vlgmr.msrb.gmra.mxu1 %v2054_v21  ;;  %v6437_v21 = vld [vmem:[#allocation41_spill] sm:$0xff] }
 0x439   :  { %2202 = vmatpush.bf16.msrb.mxu3 %v6429_v2  ;;  %2228 = vmatpush.bf16.msra.mxu1 %v6430_v0  ;;  %v6440_v2 = vld [vmem:[#allocation31_spill] sm:$0xff]  ;;  %v6441_v0 = vld [vmem:[#allocation45_spill] sm:$0xff] }
 0x43a   :  { %2190 = vmatpush.bf16.msrb.mxu2 %v6427_v25  ;;  %2216 = vmatpush.bf16.msrb.mxu0 %v6428_v50  ;;  %v6438_v25 = vld [vmem:[#allocation43_spill] sm:$0xff]  ;;  %v6439_v50 = vld [vmem:[#allocation21_spill] sm:$0xff] }
 0x43d   :  { %2203 = vmatpush.bf16.msrb.mxu3 %v6433_v7  ;;  %2229 = vmatpush.bf16.msra.mxu1 %v6434_v60  ;;  %v6444_v7 = vld [vmem:[#allocation32_spill] sm:$0xff]  ;;  %v6445_v60 = vld [vmem:[#allocation42_spill] sm:$0xff] }
 0x43e   :  { %2191 = vmatpush.bf16.msrb.mxu2 %v6431_v36  ;;  %2217 = vmatpush.bf16.msrb.mxu0 %v6432_v20  ;;  %v6442_v36 = vld [vmem:[#allocation48_spill] sm:$0xff]  ;;  %v6443_v20 = vld [vmem:[#allocation25_spill] sm:$0xff] }
 0x441   :  { %2204 = vmatpush.bf16.msrb.mxu3 %v6439_v50  ;;  %2230 = vmatpush.bf16.msra.mxu1 %v6440_v2  ;;  %v6450_v50 = vld [vmem:[#allocation50_spill] sm:$0xff]  ;;  %v6451_v2 = vld [vmem:[#allocation55_spill] sm:$0xff] }
 0x442   :  { %2192 = vmatpush.bf16.msrb.mxu2 %v6435_v6  ;;  %2218 = vmatpush.bf16.msrb.mxu0 %v6436_v44  ;;  %v6446_v6 = vld [vmem:[#allocation44_spill] sm:$0xff]  ;;  %v6447_v44 = vld [vmem:[#allocation51_spill] sm:$0xff] }
 0x445   :  { %2205 = vmatpush.bf16.msrb.mxu3 %v6443_v20  ;;  %2231 = vmatpush.bf16.msra.mxu1 %v6444_v7  ;;  %v6454_v20 = vld [vmem:[#allocation54_spill] sm:$0xff]  ;;  %v6455_v7 = vld [vmem:[#allocation61_spill] sm:$0xff] }
 0x446   :  { %2260 = vmatpush.bf16.msra.mxu2 %v6437_v21  ;;  %2286 = vmatpush.bf16.msra.mxu0 %v6438_v25  ;;  %v6448_v21 = vld [vmem:[#allocation53_spill] sm:$0xff]  ;;  %v6449_v25 = vld [vmem:[#allocation47_spill] sm:$0xff] }
 0x449   :  { %2273 = vmatpush.bf16.msra.mxu3 %v6445_v60  ;;  %2299 = vmatpush.bf16.msrb.mxu1 %v6446_v6  ;;  %v6456_v60 = vld [vmem:[#allocation63_spill] sm:$0xff]  ;;  %v6457_v6 = vld [vmem:[#allocation57_spill] sm:$0xff] }
 0x44a   :  { %2261 = vmatpush.bf16.msra.mxu2 %v6441_v0  ;;  %2287 = vmatpush.bf16.msra.mxu0 %v6442_v36  ;;  %v6452_v0 = vld [vmem:[#allocation58_spill] sm:$0xff]  ;;  %v6453_v36 = vld [vmem:[#allocation52_spill] sm:$0xff] }
 0x44d   :  { %2274 = vmatpush.bf16.msra.mxu3 %v6449_v25  ;;  %2300 = vmatpush.bf16.msrb.mxu1 %v6450_v50  ;;  %v6460_v25 = vld [vmem:[#allocation68_spill] sm:$0xff]  ;;  %v6461_v50 = vld [vmem:[#allocation62_spill] sm:$0xff] }
 0x44e   :  { %2262 = vmatpush.bf16.msra.mxu2 %v6447_v44  ;;  %2288 = vmatpush.bf16.msra.mxu0 %v6448_v21  ;;  %v6458_v44 = vld [vmem:[#allocation60_spill] sm:$0xff]  ;;  %v6459_v21 = vld [vmem:[#allocation65_spill] sm:$0xff] }
 0x451   :  { %2275 = vmatpush.bf16.msra.mxu3 %v6453_v36  ;;  %2301 = vmatpush.bf16.msrb.mxu1 %v6454_v20  ;;  %v6464_v36 = vld [vmem:[#allocation73_spill] sm:$0xff]  ;;  %v6465_v20 = vld [vmem:[#allocation67_spill] sm:$0xff] }
 0x452   :  { %2263 = vmatpush.bf16.msra.mxu2 %v6451_v2  ;;  %2289 = vmatpush.bf16.msra.mxu0 %v6452_v0  ;;  %v6462_v2 = vld [vmem:[#allocation64_spill] sm:$0xff]  ;;  %v6463_v0 = vld [vmem:[#allocation71_spill] sm:$0xff] }
 0x455   :  { %2276 = vmatpush.bf16.msra.mxu3 %v6457_v6  ;;  %2302 = vmatpush.bf16.msrb.mxu1 %v6458_v44  ;;  %v6468_v6 = vld [vmem:[#allocation77_spill] sm:$0xff]  ;;  %v6469_v44 = vld [vmem:[#allocation72_spill] sm:$0xff] }
 0x456   :  { %2264 = vmatpush.bf16.msra.mxu2 %v6455_v7  ;;  %2290 = vmatpush.bf16.msra.mxu0 %v6456_v60  ;;  %v6466_v7 = vld [vmem:[#allocation70_spill] sm:$0xff]  ;;  %v6467_v60 = vld [vmem:[#allocation75_spill] sm:$0xff] }
 0x459   :  { %2277 = vmatpush.bf16.msra.mxu3 %v6461_v50  ;;  %2303 = vmatpush.bf16.msrb.mxu1 %v6462_v2  ;;  %v6472_v50 = vld [vmem:[#allocation78_spill] sm:$0xff] }
 0x45a   :  { %2265 = vmatpush.bf16.msra.mxu2 %v6459_v21  ;;  %2291 = vmatpush.bf16.msra.mxu0 %v6460_v25  ;;  %v6470_v21 = vld [vmem:[#allocation74_spill] sm:$0xff]  ;;  %v6471_v25 = vld [vmem:[#allocation76_spill] sm:$0xff] }
 0x45d   :  { %2278 = vmatpush.bf16.msra.mxu3 %v6465_v20  ;;  %2304 = vmatpush.bf16.msrb.mxu1 %v6466_v7  ;;  %v1976_v20 = vunpack.c.h.bf16 %v6473_v23 }
 0x45e   :  { %2266 = vmatpush.bf16.msra.mxu2 %v6463_v0  ;;  %2292 = vmatpush.bf16.msra.mxu0 %v6464_v36  ;;  %v1975_v36 = vunpack.c.l.bf16 %v6473_v23 }
 0x461   :  { %2279 = vmatpush.bf16.msra.mxu3 %v6469_v44  ;;  %2305 = vmatpush.bf16.msrb.mxu1 %v6470_v21  ;;  %v1978_v44 = vunpack.c.h.bf16 %v6474_v53 }
 0x462   :  { %2267 = vmatpush.bf16.msra.mxu2 %v6467_v60  ;;  %2293 = vmatpush.bf16.msra.mxu0 %v6468_v6  ;;  %v1977_v6 = vunpack.c.l.bf16 %v6474_v53 }
 0x465   :  { %2280 = vmatpush.bf16.msra.mxu3 %v6471_v25  ;;  %2306 = vmatpush.bf16.msrb.mxu1 %v6472_v50 }
 0x482   :  { %v2015_v2 = vpop.f32.mrf.mxu0  ;;  %v2028_v0 = vpop.f32.mrf.mxu1 }
 0x483   :  { %v2034_v14 = vadd.f32 %v2015_v2, %v1977_v6  ;;  %v2035_v50 = vadd.f32 %v2028_v0, %v1978_v44 }
 0x485   :  { %v2038_v54 = vmul.f32 0.5, %v2034_v14 }
 0x487   :  { %v1989_v16 = vpop.f32.mrf.mxu2  ;;  %v2002_v7 = vpop.f32.mrf.mxu3 }
 0x488   :  { %v2032_v39 = vadd.f32 %v1989_v16, %v1975_v36  ;;  %v2033_v60 = vadd.f32 %v2002_v7, %v1976_v20 }
 0x48a   :  { %v2036_v48 = vmul.f32 0.5, %v2032_v39  ;;  %v2037_v21 = vmul.f32 0.5, %v2033_v60  ;;  %v2017_v1 = vpop.f32.mrf.mxu0  ;;  %v2030_v25 = vpop.f32.mrf.mxu1 }
 0x48c   :  { %3677 = vtanh.f32 %v2036_v48 }
 0x48d   :  { %3679 = vtanh.f32 %v2037_v21 }
 0x48e   :  { %3681 = vtanh.f32 %v2035_v50 }
 0x48f   :  { %v1991_v3 = vpop.f32.mrf.mxu2  ;;  %v2004_v13 = vpop.f32.mrf.mxu3  ;;  %3683 = vtanh.f32 %v2038_v54 }
 0x492   :  { %v3678_v23 = vpop.eup %3677  ;;  %v2090_v46 = vpop.f32.mrf.mxu0 }
 0x493   :  { %v3680_v16 = vpop.eup %3679  ;;  %v2042_v36 = vmul.f32 0.5, %v3678_v23  ;;  %v2091_v0 = vadd.f32 %v2090_v46, %v6289_v27 }
 0x494   :  { %v2043_v20 = vmul.f32 0.5, %v3680_v16  ;;  %v3682_v53 = vpop.eup %3681 }
 0x495   :  { %v2045_v7 = vadd.f32 0.5, %v2042_v36  ;;  %v3684_v44 = vpop.eup %3683 }
 0x496   :  { %v2046_v39 = vadd.f32 0.5, %v2043_v20  ;;  %v2044_v13 = vmul.f32 0.5, %v3684_v44 }
 0x497   :  { %v2050_v60 = vmul.f32 %v3682_v53, %v2045_v7  ;;  %v2064_v1 = vpop.f32.mrf.mxu2 }
 0x498   :  { %v2049_v6 = vmul.f32 %v2046_v39, %v5486_v12  ;;  %v2047_v25 = vadd.f32 0.5, %v2044_v13  ;;  %v2065_v36 = vadd.f32 %v2064_v1, %v5112_v55 }
 0x49a   :  { %v5608_v48 = vadd.f32 %v2050_v60, %v2049_v6  ;;  %v2092_v3 = vpop.f32.mrf.mxu0 }
 0x49c   :  { %3685 = vtanh.f32 %v5608_v48 }
 0x49f   :  { %v2066_v14 = vpop.f32.mrf.mxu2 }
 0x4a2   :  { %v3686_v50 = vpop.eup %3685  ;;  %v2142_v2 = vpop.f32.mrf.mxu0 }
 0x4a3   :  { %v2053_v54 = vmul.f32 %v3686_v50, %v2047_v25  ;;  %v2143_v3 = vadd.f32 %v2142_v2, %v5119_v45 }
 0x4a5   :  { %v2103_v21 = vpop.f32.mrf.mxu1  ;;  %v5612_v23 = vpack.c.bf16 %v2053_v54, %v2053_v54 }
 0x4a6   :  { %v2104_v16 = vadd.f32 %v2103_v21, %v2091_v0 }
 0x4a7   :  { %2193 = vmatmul.bf16.vlgmr.msrb.gmra.mxu2 %v5612_v23  ;;  %2206 = vmatmul.bf16.vlgmr.msrb.gmra.mxu3 %v5612_v23 }
 0x4a8   :  { %2219 = vmatmul.bf16.vlgmr.msrb.gmra.mxu0 %v5612_v23  ;;  %2232 = vmatmul.bf16.vlgmr.msra.gmra.mxu1 %v5612_v23  ;;  %v2116_v12 = vpop.f32.mrf.mxu2  ;;  %v2160_v20 = vmul.f32 0.5, %v2104_v16 }
 0x4a9   :  { %2312 = vmatpush.bf16.msrb.mxu2 %v6232_v30  ;;  %2338 = vmatpush.bf16.msrb.mxu0 %v6233_v42  ;;  %v2117_v2 = vadd.f32 %v2116_v12, %v6292_v11 }
 0x4aa   :  { %v2144_v46 = vpop.f32.mrf.mxu0  ;;  %2325 = vmatpush.bf16.msrb.mxu3 %v6290_v18  ;;  %2351 = vmatpush.bf16.msra.mxu1 %v6291_v34  ;;  %3687 = vtanh.f32 %v2160_v20 }
 0x4ab   :  { %v2077_v7 = vpop.f32.mrf.mxu3 }
 0x4ac   :  { %v2078_v53 = vadd.f32 %v2077_v7, %v2065_v36 }
 0x4ad   :  { %v2105_v39 = vpop.f32.mrf.mxu1  ;;  %2313 = vmatpush.bf16.msrb.mxu2 %v6293_v32  ;;  %2339 = vmatpush.bf16.msrb.mxu0 %v6294_v31 }
 0x4ae   :  { %v2159_v60 = vmul.f32 0.5, %v2078_v53  ;;  %2326 = vmatpush.bf16.msrb.mxu3 %v6295_v24  ;;  %2352 = vmatpush.bf16.msra.mxu1 %v6239_v17 }
 0x4b0   :  { %3689 = vtanh.f32 %v2159_v60  ;;  %v2118_v1 = vpop.f32.mrf.mxu2  ;;  %v3688_v44 = vpop.eup %3687 }
 0x4b1   :  { %2314 = vmatpush.bf16.msrb.mxu2 %v6240_v26  ;;  %2340 = vmatpush.bf16.msrb.mxu0 %v6241_v63  ;;  %v2166_v50 = vmul.f32 0.5, %v3688_v44 }
 0x4b2   :  { %2327 = vmatpush.bf16.msrb.mxu3 %v6242_v22  ;;  %2353 = vmatpush.bf16.msra.mxu1 %v6296_v47 }
 0x4b3   :  { %v2079_v6 = vpop.f32.mrf.mxu3  ;;  %v2169_v0 = vadd.f32 0.5, %v2166_v50  ;;  %v6479_v50 = vld [vmem:[#allocation9_spill] sm:$0xff] }
 0x4b5   :  { %v2155_v13 = vpop.f32.mrf.mxu1  ;;  %2315 = vmatpush.bf16.msrb.mxu2 %v6297_v33  ;;  %2341 = vmatpush.bf16.msrb.mxu0 %v6298_v35  ;;  %v2172_v12 = vmul.f32 %v2169_v0, %v5522_v19  ;;  %v6485_v0 = vld [vmem:[#allocation7_spill] sm:$0xff] }
 0x4b6   :  { %v3690_v14 = vpop.eup %3689  ;;  %v2156_v25 = vadd.f32 %v2155_v13, %v2143_v3  ;;  %2328 = vmatpush.bf16.msrb.mxu3 %v6246_v15  ;;  %2354 = vmatpush.bf16.msra.mxu1 %v6299_v41 }
 0x4b7   :  { %2268 = vmatmul.bf16.vlgmr.msra.gmra.mxu2 %v5612_v23  ;;  %v2165_v54 = vmul.f32 0.5, %v3690_v14  ;;  %v6475_v14 = vld [vmem:[#allocation6_spill] sm:$0xff] }
 0x4b8   :  { %3691 = vtanh.f32 %v2156_v25  ;;  %2294 = vmatmul.bf16.vlgmr.msra.gmra.mxu0 %v5612_v23  ;;  %v6476_v25 = vld [vmem:[#allocation11_spill] sm:$0xff] }
 0x4b9   :  { %2316 = vmatpush.bf16.msrb.mxu2 %v6248_v5  ;;  %2342 = vmatpush.bf16.msrb.mxu0 %v6249_v51  ;;  %v2168_v36 = vadd.f32 0.5, %v2165_v54  ;;  %v6480_v54 = vld [vmem:[#allocation14_spill] sm:$0xff] }
 0x4ba   :  { %2329 = vmatpush.bf16.msrb.mxu3 %v6250_v10  ;;  %2355 = vmatpush.bf16.msra.mxu1 %v6251_v57 }
 0x4bb   :  { %v2129_v21 = vpop.f32.mrf.mxu3 }
 0x4bc   :  { %v2130_v16 = vadd.f32 %v2129_v21, %v2117_v2  ;;  %v6484_v2 = vld [vmem:[#allocation18_spill] sm:$0xff] }
 0x4bd   :  { %v2157_v20 = vpop.f32.mrf.mxu1  ;;  %2317 = vmatpush.bf16.msrb.mxu2 %v6252_v62  ;;  %2343 = vmatpush.bf16.msrb.mxu0 %v4960_v8  ;;  %v6486_v21 = vld [vmem:[#allocation26_spill] sm:$0xff] }
 0x4be   :  { %v3692_v46 = vpop.eup %3691  ;;  %v2161_v7 = vmul.f32 0.5, %v2130_v16  ;;  %2330 = vmatpush.bf16.msrb.mxu3 %v6253_v49  ;;  %2356 = vmatpush.bf16.msra.mxu1 %v6254_v59  ;;  %v6487_v16 = vld [vmem:[#allocation15_spill] sm:$0xff]  ;;  %v6489_v20 = vld [vmem:[#allocation10_spill] sm:$0xff] }
 0x4bf   :  { %v2173_v53 = vmul.f32 %v3692_v46, %v2168_v36  ;;  %v6488_v36 = vld [vmem:[#allocation22_spill] sm:$0xff]  ;;  %v6490_v46 = vld [vmem:[#allocation28_spill] sm:$0xff] }
 0x4c0   :  { %3693 = vtanh.f32 %v2161_v7  ;;  %v6491_v7 = vld [vmem:[#allocation16_spill] sm:$0xff] }
 0x4c1   :  { %v5648_v39 = vadd.f32 %v2173_v53, %v2172_v12  ;;  %2318 = vmatpush.bf16.msrb.mxu2 %v4984_v4  ;;  %2344 = vmatpush.bf16.msrb.mxu0 %v4996_v37  ;;  %v6492_v12 = vld [vmem:[#allocation24_spill] sm:$0xff]  ;;  %v6493_v53 = vld [vmem:[#allocation13_spill] sm:$0xff] }
 0x4c2   :  { %2331 = vmatpush.bf16.msrb.mxu3 %v4986_v43  ;;  %2357 = vmatpush.bf16.msra.mxu1 %v4998_v9 }
 0x4c3   :  { %3695 = vtanh.f32 %v5648_v39  ;;  %v2131_v60 = vpop.f32.mrf.mxu3 }
 0x4c4   :  { %v6494_v60 = vld [vmem:[#allocation29_spill] sm:$0xff] }
 0x4c5   :  { %2319 = vmatpush.bf16.msrb.mxu2 %v5020_v29  ;;  %2345 = vmatpush.bf16.msrb.mxu0 %v5026_v38 }
 0x4c6   :  { %v3694_v19 = vpop.eup %3693  ;;  %2332 = vmatpush.bf16.msrb.mxu3 %v5022_v28  ;;  %2358 = vmatpush.bf16.msra.mxu1 %v5028_v58 }
 0x4c7   :  { %v2167_v1 = vmul.f32 0.5, %v3694_v19  ;;  %v6495_v19 = vld [vmem:[#allocation19_spill] sm:$0xff] }
 0x4c8   :  { %2320 = vmatmul.bf16.vlgmr.msrb.gmra.mxu2 %v5612_v23  ;;  %2346 = vmatmul.bf16.vlgmr.msrb.gmra.mxu0 %v5612_v23  ;;  %v6481_v23 = vld [vmem:[#allocation5_spill] sm:$0xff] }
 0x4c9   :  { %2390 = vmatpush.bf16.msra.mxu2 %v4024_v40  ;;  %2416 = vmatpush.bf16.msra.mxu0 %v4059_v52  ;;  %v3696_v6 = vpop.eup %3695  ;;  %v2170_v44 = vadd.f32 0.5, %v2167_v1  ;;  %v6477_v40 = vld [vmem:[#allocation3_spill] sm:$0xff]  ;;  %v6478_v52 = vld [vmem:[#allocation20_spill] sm:$0xff] }
 0x4ca   :  { %v6496_v1 = vld [vmem:[#allocation27_spill] sm:$0xff] }
 0x4cb   :  { %v2176_v3 = vmul.f32 %v3696_v6, %v2170_v44  ;;  %v6497_v6 = vld [vmem:[#allocation41_spill] sm:$0xff]  ;;  %v6498_v44 = vld [vmem:[#allocation43_spill] sm:$0xff] }
 0x4cd   :  { %2391 = vmatpush.bf16.msra.mxu2 %v6351_v56  ;;  %2417 = vmatpush.bf16.msra.mxu0 %v6352_v61  ;;  %v2259_v13 = vpack.c.bf16 %v2176_v3, %v2176_v3  ;;  %v6482_v56 = vld [vmem:[#allocation23_spill] sm:$0xff]  ;;  %v6483_v61 = vld [vmem:[#allocation12_spill] sm:$0xff]  ;;  %v6499_v3 = vld [vmem:[#allocation17_spill] sm:$0xff] }
 0x4cf   :  { %2281 = vmatmul.bf16.vlgmr.msra.gmra.mxu3 %v2259_v13  ;;  %2307 = vmatmul.bf16.vlgmr.msrb.gmra.mxu1 %v2259_v13 }
 0x4d0   :  { %2403 = vmatpush.bf16.msra.mxu3 %v6477_v40  ;;  %2429 = vmatpush.bf16.msrb.mxu1 %v6478_v52  ;;  %v6503_v40 = vld [vmem:[#allocation21_spill] sm:$0xff]  ;;  %v6504_v52 = vld [vmem:[#allocation31_spill] sm:$0xff] }
 0x4d1   :  { %2392 = vmatpush.bf16.msra.mxu2 %v6475_v14  ;;  %2418 = vmatpush.bf16.msra.mxu0 %v6476_v25  ;;  %v6500_v14 = vld [vmem:[#allocation30_spill] sm:$0xff]  ;;  %v6502_v25 = vld [vmem:[#allocation48_spill] sm:$0xff] }
 0x4d4   :  { %2404 = vmatpush.bf16.msra.mxu3 %v6481_v23  ;;  %2430 = vmatpush.bf16.msrb.mxu1 %v6482_v56  ;;  %v6507_v23 = vld [vmem:[#allocation25_spill] sm:$0xff]  ;;  %v6508_v56 = vld [vmem:[#allocation32_spill] sm:$0xff] }
 0x4d5   :  { %2393 = vmatpush.bf16.msra.mxu2 %v6479_v50  ;;  %2419 = vmatpush.bf16.msra.mxu0 %v6480_v54  ;;  %v6505_v50 = vld [vmem:[#allocation51_spill] sm:$0xff]  ;;  %v6506_v54 = vld [vmem:[#allocation53_spill] sm:$0xff] }
 0x4d8   :  { %2405 = vmatpush.bf16.msra.mxu3 %v6485_v0  ;;  %2431 = vmatpush.bf16.msrb.mxu1 %v6486_v21  ;;  %v6511_v0 = vld [vmem:[#allocation55_spill] sm:$0xff]  ;;  %v6512_v21 = vld [vmem:[#allocation58_spill] sm:$0xff] }
 0x4d9   :  { %2394 = vmatpush.bf16.msra.mxu2 %v6483_v61  ;;  %2420 = vmatpush.bf16.msra.mxu0 %v6484_v2  ;;  %v6509_v61 = vld [vmem:[#allocation42_spill] sm:$0xff]  ;;  %v6510_v2 = vld [vmem:[#allocation44_spill] sm:$0xff] }
 0x4dc   :  { %2406 = vmatpush.bf16.msra.mxu3 %v6489_v20  ;;  %2432 = vmatpush.bf16.msrb.mxu1 %v6490_v46  ;;  %v6515_v20 = vld [vmem:[#allocation61_spill] sm:$0xff]  ;;  %v6516_v46 = vld [vmem:[#allocation63_spill] sm:$0xff] }
 0x4dd   :  { %2395 = vmatpush.bf16.msra.mxu2 %v6487_v16  ;;  %2421 = vmatpush.bf16.msra.mxu0 %v6488_v36  ;;  %v6513_v16 = vld [vmem:[#allocation47_spill] sm:$0xff]  ;;  %v6514_v36 = vld [vmem:[#allocation50_spill] sm:$0xff] }
 0x4df   :  { %2333 = vmatmul.bf16.vlgmr.msrb.gmra.mxu3 %v2259_v13  ;;  %2359 = vmatmul.bf16.vlgmr.msra.gmra.mxu1 %v2259_v13  ;;  %v6501_v13 = vld [vmem:[#allocation45_spill] sm:$0xff] }
 0x4e0   :  { %2407 = vmatpush.bf16.msra.mxu3 %v6493_v53  ;;  %2433 = vmatpush.bf16.msrb.mxu1 %v6494_v60  ;;  %v6519_v53 = vld [vmem:[#allocation65_spill] sm:$0xff]  ;;  %v6520_v60 = vld [vmem:[#allocation68_spill] sm:$0xff] }
 0x4e1   :  { %2396 = vmatpush.bf16.msra.mxu2 %v6491_v7  ;;  %2422 = vmatpush.bf16.msra.mxu0 %v6492_v12  ;;  %v6517_v7 = vld [vmem:[#allocation52_spill] sm:$0xff]  ;;  %v6518_v12 = vld [vmem:[#allocation54_spill] sm:$0xff] }
 0x4e4   :  { %2408 = vmatpush.bf16.msra.mxu3 %v6499_v3  ;;  %2434 = vmatpush.bf16.msrb.mxu1 %v6500_v14  ;;  %v6523_v3 = vld [vmem:[#allocation71_spill] sm:$0xff]  ;;  %v6524_v14 = vld [vmem:[#allocation73_spill] sm:$0xff] }
 0x4e5   :  { %2397 = vmatpush.bf16.msra.mxu2 %v6495_v19  ;;  %2423 = vmatpush.bf16.msra.mxu0 %v6496_v1  ;;  %v6521_v19 = vld [vmem:[#allocation57_spill] sm:$0xff]  ;;  %v6522_v1 = vld [vmem:[#allocation60_spill] sm:$0xff] }
 0x4e8   :  { %2409 = vmatpush.bf16.msra.mxu3 %v6503_v40  ;;  %2435 = vmatpush.bf16.msrb.mxu1 %v6504_v52  ;;  %v6525_v40 = vld [vmem:[#allocation62_spill] sm:$0xff]  ;;  %v6526_v52 = vld [vmem:[#allocation64_spill] sm:$0xff] }
 0x4e9   :  { %2465 = vmatpush.bf16.msrb.mxu2 %v6497_v6  ;;  %2491 = vmatpush.bf16.msrb.mxu0 %v6498_v44 }
 0x4ec   :  { %2410 = vmatpush.bf16.msra.mxu3 %v6507_v23  ;;  %2436 = vmatpush.bf16.msrb.mxu1 %v6508_v56  ;;  %v6527_v23 = vld [vmem:[#allocation75_spill] sm:$0xff]  ;;  %v6528_v56 = vld [vmem:[#allocation77_spill] sm:$0xff] }
 0x4ed   :  { %2466 = vmatpush.bf16.msrb.mxu2 %v6501_v13  ;;  %2492 = vmatpush.bf16.msrb.mxu0 %v6502_v25 }
 0x4f0   :  { %2478 = vmatpush.bf16.msrb.mxu3 %v6509_v61  ;;  %2504 = vmatpush.bf16.msra.mxu1 %v6510_v2 }
 0x4f1   :  { %2467 = vmatpush.bf16.msrb.mxu2 %v6505_v50  ;;  %2493 = vmatpush.bf16.msrb.mxu0 %v6506_v54 }
 0x4f4   :  { %2479 = vmatpush.bf16.msrb.mxu3 %v6513_v16  ;;  %2505 = vmatpush.bf16.msra.mxu1 %v6514_v36 }
 0x4f5   :  { %2468 = vmatpush.bf16.msrb.mxu2 %v6511_v0  ;;  %2494 = vmatpush.bf16.msrb.mxu0 %v6512_v21 }
 0x4f8   :  { %2480 = vmatpush.bf16.msrb.mxu3 %v6517_v7  ;;  %2506 = vmatpush.bf16.msra.mxu1 %v6518_v12  ;;  %v6529_v12 = vld [vmem:[#allocation67_spill] sm:$0xff]  ;;  %v6530_v7 = vld [vmem:[#allocation70_spill] sm:$0xff] }
 0x4f9   :  { %2469 = vmatpush.bf16.msrb.mxu2 %v6515_v20  ;;  %2495 = vmatpush.bf16.msrb.mxu0 %v6516_v46  ;;  %v6536_v46 = vld [vmem:[#allocation59_spill] sm:$0xff] }
 0x4fc   :  { %2481 = vmatpush.bf16.msrb.mxu3 %v6521_v19  ;;  %2507 = vmatpush.bf16.msra.mxu1 %v6522_v1  ;;  %v6532_v19 = vld [vmem:[#allocation74_spill] sm:$0xff]  ;;  %v6533_v1 = vld [vmem:[#allocation76_spill] sm:$0xff] }
 0x4fd   :  { %2470 = vmatpush.bf16.msrb.mxu2 %v6519_v53  ;;  %2496 = vmatpush.bf16.msrb.mxu0 %v6520_v60  ;;  %v6531_v60 = vld [vmem:[#allocation72_spill] sm:$0xff] }
 0x4fe   :  { %v6535_v53 = vld [vmem:[#allocation56_spill] sm:$0xff] }
 0x500   :  { %2482 = vmatpush.bf16.msrb.mxu3 %v6525_v40  ;;  %2508 = vmatpush.bf16.msra.mxu1 %v6526_v52  ;;  %v2180_v52 = vunpack.c.l.bf16 %v6535_v53 }
 0x501   :  { %2471 = vmatpush.bf16.msrb.mxu2 %v6523_v3  ;;  %2497 = vmatpush.bf16.msrb.mxu0 %v6524_v14  ;;  %v6534_v3 = vld [vmem:[#allocation78_spill] sm:$0xff] }
 0x504   :  { %2483 = vmatpush.bf16.msrb.mxu3 %v6529_v12  ;;  %2509 = vmatpush.bf16.msra.mxu1 %v6530_v7  ;;  %v2182_v7 = vunpack.c.l.bf16 %v6536_v46 }
 0x505   :  { %2472 = vmatpush.bf16.msrb.mxu2 %v6527_v23  ;;  %2498 = vmatpush.bf16.msrb.mxu0 %v6528_v56  ;;  %v2181_v23 = vunpack.c.h.bf16 %v6535_v53 }
 0x508   :  { %2484 = vmatpush.bf16.msrb.mxu3 %v6531_v60  ;;  %2510 = vmatpush.bf16.msra.mxu1 %v6532_v19  ;;  %v2183_v60 = vunpack.c.h.bf16 %v6536_v46 }
 0x50c   :  { %2485 = vmatpush.bf16.msrb.mxu3 %v6533_v1  ;;  %2511 = vmatpush.bf16.msra.mxu1 %v6534_v3 }
 0x525   :  { %v2220_v14 = vpop.f32.mrf.mxu0  ;;  %v2233_v40 = vpop.f32.mrf.mxu1 }
 0x526   :  { %v2239_v61 = vadd.f32 %v2220_v14, %v2182_v7  ;;  %v2240_v3 = vadd.f32 %v2233_v40, %v2183_v60 }
 0x528   :  { %v2243_v54 = vmul.f32 0.5, %v2239_v61 }
 0x52a   :  { %v2194_v36 = vpop.f32.mrf.mxu2  ;;  %v2207_v56 = vpop.f32.mrf.mxu3 }
 0x52b   :  { %v2237_v16 = vadd.f32 %v2194_v36, %v2180_v52  ;;  %v2238_v12 = vadd.f32 %v2207_v56, %v2181_v23 }
 0x52d   :  { %v2241_v20 = vmul.f32 0.5, %v2237_v16  ;;  %v2242_v19 = vmul.f32 0.5, %v2238_v12  ;;  %v2222_v2 = vpop.f32.mrf.mxu0  ;;  %v2235_v1 = vpop.f32.mrf.mxu1 }
 0x52f   :  { %3697 = vtanh.f32 %v2241_v20 }
 0x530   :  { %3699 = vtanh.f32 %v2242_v19 }
 0x531   :  { %3701 = vtanh.f32 %v2240_v3 }
 0x532   :  { %v2196_v21 = vpop.f32.mrf.mxu2  ;;  %v2209_v0 = vpop.f32.mrf.mxu3  ;;  %3703 = vtanh.f32 %v2243_v54 }
 0x535   :  { %v3698_v53 = vpop.eup %3697  ;;  %v2295_v50 = vpop.f32.mrf.mxu0 }
 0x536   :  { %v3700_v36 = vpop.eup %3699  ;;  %v2247_v52 = vmul.f32 0.5, %v3698_v53  ;;  %v2296_v40 = vadd.f32 %v2295_v50, %v6289_v27 }
 0x537   :  { %v2248_v23 = vmul.f32 0.5, %v3700_v36  ;;  %v3702_v46 = vpop.eup %3701 }
 0x538   :  { %v2250_v56 = vadd.f32 0.5, %v2247_v52  ;;  %v3704_v60 = vpop.eup %3703 }
 0x539   :  { %v2251_v16 = vadd.f32 0.5, %v2248_v23  ;;  %v2249_v61 = vmul.f32 0.5, %v3704_v60 }
 0x53a   :  { %v2255_v12 = vmul.f32 %v3702_v46, %v2250_v56  ;;  %v2269_v2 = vpop.f32.mrf.mxu2 }
 0x53b   :  { %v2254_v7 = vmul.f32 %v2251_v16, %v5608_v48  ;;  %v2252_v19 = vadd.f32 0.5, %v2249_v61  ;;  %v2270_v50 = vadd.f32 %v2269_v2, %v5112_v55 }
 0x53d   :  { %v5730_v20 = vadd.f32 %v2255_v12, %v2254_v7  ;;  %v2297_v21 = vpop.f32.mrf.mxu0 }
 0x53f   :  { %3705 = vtanh.f32 %v5730_v20 }
 0x542   :  { %v2271_v0 = vpop.f32.mrf.mxu2 }
 0x545   :  { %v3706_v1 = vpop.eup %3705  ;;  %v2347_v3 = vpop.f32.mrf.mxu0 }
 0x546   :  { %v2258_v54 = vmul.f32 %v3706_v1, %v2252_v19  ;;  %v2348_v21 = vadd.f32 %v2347_v3, %v5119_v45 }
 0x548   :  { %v5733_v14 = vpack.c.bf16 %v2258_v54, %v2258_v54 }
 0x54a   :  { %2398 = vmatmul.bf16.vlgmr.msra.gmra.mxu2 %v5733_v14  ;;  %2411 = vmatmul.bf16.vlgmr.msra.gmra.mxu3 %v5733_v14 }
 0x54b   :  { %2424 = vmatmul.bf16.vlgmr.msra.gmra.mxu0 %v5733_v14  ;;  %2437 = vmatmul.bf16.vlgmr.msrb.gmra.mxu1 %v5733_v14  ;;  %v2321_v48 = vpop.f32.mrf.mxu2 }
 0x54c   :  { %v2308_v53 = vpop.f32.mrf.mxu1  ;;  %2517 = vmatpush.bf16.msra.mxu2 %v6232_v30  ;;  %2543 = vmatpush.bf16.msra.mxu0 %v6233_v42  ;;  %v2322_v3 = vadd.f32 %v2321_v48, %v6292_v11 }
 0x54d   :  { %v2309_v36 = vadd.f32 %v2308_v53, %v2296_v40  ;;  %v2349_v52 = vpop.f32.mrf.mxu0  ;;  %2530 = vmatpush.bf16.msra.mxu3 %v6290_v18  ;;  %2556 = vmatpush.bf16.msrb.mxu1 %v6291_v34 }
 0x54f   :  { %v2365_v23 = vmul.f32 0.5, %v2309_v36 }
 0x550   :  { %2518 = vmatpush.bf16.msra.mxu2 %v6293_v32  ;;  %2544 = vmatpush.bf16.msra.mxu0 %v6294_v31 }
 0x551   :  { %2531 = vmatpush.bf16.msra.mxu3 %v6295_v24  ;;  %2557 = vmatpush.bf16.msrb.mxu1 %v6239_v17  ;;  %3707 = vtanh.f32 %v2365_v23 }
 0x552   :  { %v2282_v56 = vpop.f32.mrf.mxu3 }
 0x553   :  { %v2283_v46 = vadd.f32 %v2282_v56, %v2270_v50  ;;  %v2323_v16 = vpop.f32.mrf.mxu2 }
 0x554   :  { %v2310_v12 = vpop.f32.mrf.mxu1  ;;  %2519 = vmatpush.bf16.msra.mxu2 %v6240_v26  ;;  %2545 = vmatpush.bf16.msra.mxu0 %v6241_v63 }
 0x555   :  { %v2364_v7 = vmul.f32 0.5, %v2283_v46  ;;  %2532 = vmatpush.bf16.msra.mxu3 %v6242_v22  ;;  %2558 = vmatpush.bf16.msrb.mxu1 %v6296_v47 }
 0x557   :  { %3709 = vtanh.f32 %v2364_v7  ;;  %v3708_v60 = vpop.eup %3707 }
 0x558   :  { %2520 = vmatpush.bf16.msra.mxu2 %v6297_v33  ;;  %2546 = vmatpush.bf16.msra.mxu0 %v6298_v35  ;;  %v2371_v1 = vmul.f32 0.5, %v3708_v60 }
 0x559   :  { %2533 = vmatpush.bf16.msra.mxu3 %v6246_v15  ;;  %2559 = vmatpush.bf16.msrb.mxu1 %v6299_v41 }
 0x55a   :  { %v2284_v2 = vpop.f32.mrf.mxu3  ;;  %2473 = vmatmul.bf16.vlgmr.msrb.gmra.mxu2 %v5733_v14  ;;  %v2374_v40 = vadd.f32 0.5, %v2371_v1  ;;  %v6542_v1 = vld [vmem:[#allocation44_spill] sm:$0xff] }
 0x55b   :  { %2499 = vmatmul.bf16.vlgmr.msrb.gmra.mxu0 %v5733_v14 }
 0x55c   :  { %v2360_v61 = vpop.f32.mrf.mxu1  ;;  %2521 = vmatpush.bf16.msra.mxu2 %v6248_v5  ;;  %2547 = vmatpush.bf16.msra.mxu0 %v6249_v51  ;;  %v2377_v48 = vmul.f32 %v2374_v40, %v5648_v39  ;;  %v6547_v40 = vld [vmem:[#allocation65_spill] sm:$0xff] }
 0x55d   :  { %v3710_v0 = vpop.eup %3709  ;;  %v2361_v19 = vadd.f32 %v2360_v61, %v2348_v21  ;;  %2534 = vmatpush.bf16.msra.mxu3 %v6250_v10  ;;  %2560 = vmatpush.bf16.msrb.mxu1 %v6251_v57  ;;  %v6537_v61 = vld [vmem:[#allocation51_spill] sm:$0xff] }
 0x55e   :  { %v2370_v54 = vmul.f32 0.5, %v3710_v0  ;;  %v6538_v0 = vld [vmem:[#allocation53_spill] sm:$0xff] }
 0x55f   :  { %3711 = vtanh.f32 %v2361_v19  ;;  %v6540_v19 = vld [vmem:[#allocation58_spill] sm:$0xff] }
 0x560   :  { %2522 = vmatpush.bf16.msra.mxu2 %v6252_v62  ;;  %2548 = vmatpush.bf16.msra.mxu0 %v4960_v8  ;;  %v2373_v52 = vadd.f32 0.5, %v2370_v54  ;;  %v6545_v54 = vld [vmem:[#allocation47_spill] sm:$0xff] }
 0x561   :  { %2535 = vmatpush.bf16.msra.mxu3 %v6253_v49  ;;  %2561 = vmatpush.bf16.msrb.mxu1 %v6254_v59 }
 0x562   :  { %v2334_v53 = vpop.f32.mrf.mxu3 }
 0x563   :  { %v2335_v36 = vadd.f32 %v2334_v53, %v2322_v3  ;;  %v6546_v3 = vld [vmem:[#allocation50_spill] sm:$0xff]  ;;  %v6548_v53 = vld [vmem:[#allocation68_spill] sm:$0xff] }
 0x564   :  { %v2362_v50 = vpop.f32.mrf.mxu1  ;;  %2523 = vmatpush.bf16.msra.mxu2 %v4984_v4  ;;  %2549 = vmatpush.bf16.msra.mxu0 %v4996_v37 }
 0x565   :  { %v3712_v23 = vpop.eup %3711  ;;  %v2366_v56 = vmul.f32 0.5, %v2335_v36  ;;  %2536 = vmatpush.bf16.msra.mxu3 %v4986_v43  ;;  %2562 = vmatpush.bf16.msrb.mxu1 %v4998_v9  ;;  %v6549_v36 = vld [vmem:[#allocation52_spill] sm:$0xff]  ;;  %v6551_v50 = vld [vmem:[#allocation71_spill] sm:$0xff] }
 0x566   :  { %v2378_v46 = vmul.f32 %v3712_v23, %v2373_v52  ;;  %v6550_v52 = vld [vmem:[#allocation54_spill] sm:$0xff]  ;;  %v6552_v23 = vld [vmem:[#allocation73_spill] sm:$0xff] }
 0x567   :  { %3713 = vtanh.f32 %v2366_v56  ;;  %v6553_v56 = vld [vmem:[#allocation57_spill] sm:$0xff] }
 0x568   :  { %v5774_v16 = vadd.f32 %v2378_v46, %v2377_v48  ;;  %2524 = vmatpush.bf16.msra.mxu2 %v5020_v29  ;;  %2550 = vmatpush.bf16.msra.mxu0 %v5026_v38  ;;  %v6554_v48 = vld [vmem:[#allocation60_spill] sm:$0xff]  ;;  %v6555_v46 = vld [vmem:[#allocation75_spill] sm:$0xff] }
 0x569   :  { %2537 = vmatpush.bf16.msra.mxu3 %v5022_v28  ;;  %2563 = vmatpush.bf16.msrb.mxu1 %v5028_v58 }
 0x56a   :  { %3715 = vtanh.f32 %v5774_v16  ;;  %v2336_v12 = vpop.f32.mrf.mxu3 }
 0x56b   :  { %2525 = vmatmul.bf16.vlgmr.msra.gmra.mxu2 %v5733_v14  ;;  %2551 = vmatmul.bf16.vlgmr.msra.gmra.mxu0 %v5733_v14  ;;  %v6541_v14 = vld [vmem:[#allocation42_spill] sm:$0xff]  ;;  %v6556_v12 = vld [vmem:[#allocation77_spill] sm:$0xff] }
 0x56c   :  { %2589 = vmatpush.bf16.msrb.mxu2 %v6497_v6  ;;  %2615 = vmatpush.bf16.msrb.mxu0 %v6498_v44  ;;  %v6539_v44 = vld [vmem:[#allocation55_spill] sm:$0xff] }
 0x56d   :  { %v3714_v39 = vpop.eup %3713 }
 0x56e   :  { %v2372_v7 = vmul.f32 0.5, %v3714_v39  ;;  %v6557_v39 = vld [vmem:[#allocation62_spill] sm:$0xff] }
 0x570   :  { %2590 = vmatpush.bf16.msrb.mxu2 %v6501_v13  ;;  %2616 = vmatpush.bf16.msrb.mxu0 %v6502_v25  ;;  %v3716_v2 = vpop.eup %3715  ;;  %v2375_v60 = vadd.f32 0.5, %v2372_v7  ;;  %v6543_v13 = vld [vmem:[#allocation61_spill] sm:$0xff]  ;;  %v6544_v25 = vld [vmem:[#allocation63_spill] sm:$0xff]  ;;  %v6558_v7 = vld [vmem:[#allocation64_spill] sm:$0xff] }
 0x572   :  { %v2381_v21 = vmul.f32 %v3716_v2, %v2375_v60  ;;  %v6559_v2 = vld [vmem:[#allocation67_spill] sm:$0xff]  ;;  %v6560_v60 = vld [vmem:[#allocation70_spill] sm:$0xff] }
 0x574   :  { %2591 = vmatpush.bf16.msrb.mxu2 %v6537_v61  ;;  %2617 = vmatpush.bf16.msrb.mxu0 %v6538_v0  ;;  %v2464_v6 = vpack.c.bf16 %v2381_v21, %v2381_v21  ;;  %v6561_v21 = vld [vmem:[#allocation72_spill] sm:$0xff] }
 0x576   :  { %2486 = vmatmul.bf16.vlgmr.msrb.gmra.mxu3 %v2464_v6  ;;  %2512 = vmatmul.bf16.vlgmr.msra.gmra.mxu1 %v2464_v6 }
 0x577   :  { %2602 = vmatpush.bf16.msrb.mxu3 %v6541_v14  ;;  %2628 = vmatpush.bf16.msra.mxu1 %v6542_v1 }
 0x578   :  { %2592 = vmatpush.bf16.msrb.mxu2 %v6539_v44  ;;  %2618 = vmatpush.bf16.msrb.mxu0 %v6540_v19 }
 0x57b   :  { %2603 = vmatpush.bf16.msrb.mxu3 %v6545_v54  ;;  %2629 = vmatpush.bf16.msra.mxu1 %v6546_v3 }
 0x57c   :  { %2593 = vmatpush.bf16.msrb.mxu2 %v6543_v13  ;;  %2619 = vmatpush.bf16.msrb.mxu0 %v6544_v25 }
 0x57f   :  { %2604 = vmatpush.bf16.msrb.mxu3 %v6549_v36  ;;  %2630 = vmatpush.bf16.msra.mxu1 %v6550_v52 }
 0x580   :  { %2594 = vmatpush.bf16.msrb.mxu2 %v6547_v40  ;;  %2620 = vmatpush.bf16.msrb.mxu0 %v6548_v53 }
 0x583   :  { %2605 = vmatpush.bf16.msrb.mxu3 %v6553_v56  ;;  %2631 = vmatpush.bf16.msra.mxu1 %v6554_v48 }
 0x584   :  { %2595 = vmatpush.bf16.msrb.mxu2 %v6551_v50  ;;  %2621 = vmatpush.bf16.msrb.mxu0 %v6552_v23 }
 0x586   :  { %2538 = vmatmul.bf16.vlgmr.msra.gmra.mxu3 %v2464_v6  ;;  %2564 = vmatmul.bf16.vlgmr.msrb.gmra.mxu1 %v2464_v6 }
 0x587   :  { %2606 = vmatpush.bf16.msrb.mxu3 %v6557_v39  ;;  %2632 = vmatpush.bf16.msra.mxu1 %v6558_v7 }
 0x588   :  { %2596 = vmatpush.bf16.msrb.mxu2 %v6555_v46  ;;  %2622 = vmatpush.bf16.msrb.mxu0 %v6556_v12 }
 0x58b   :  { %2607 = vmatpush.bf16.msrb.mxu3 %v6559_v2  ;;  %2633 = vmatpush.bf16.msra.mxu1 %v6560_v60 }
 0x58c   :  { %2641 = vmatpush.bf16.msra.mxu2 %v6232_v30  ;;  %2667 = vmatpush.bf16.msra.mxu0 %v6233_v42  ;;  %v6562_v30 = vld [vmem:[#allocation74_spill] sm:$0xff]  ;;  %v6563_v42 = vld [vmem:[#allocation76_spill] sm:$0xff] }
 0x58f   :  { %2608 = vmatpush.bf16.msrb.mxu3 %v6561_v21  ;;  %2634 = vmatpush.bf16.msra.mxu1 %v6562_v30 }
 0x590   :  { %2642 = vmatpush.bf16.msra.mxu2 %v6293_v32  ;;  %2668 = vmatpush.bf16.msra.mxu0 %v6294_v31  ;;  %v6564_v32 = vld [vmem:[#allocation78_spill] sm:$0xff] }
 0x593   :  { %2609 = vmatpush.bf16.msrb.mxu3 %v6563_v42  ;;  %2635 = vmatpush.bf16.msra.mxu1 %v6564_v32 }
 0x594   :  { %2643 = vmatpush.bf16.msra.mxu2 %v6240_v26  ;;  %2669 = vmatpush.bf16.msra.mxu0 %v6241_v63  ;;  %v6566_v63 = vld [vmem:[#allocation69_spill] sm:$0xff] }
 0x597   :  { %2654 = vmatpush.bf16.msra.mxu3 %v6290_v18  ;;  %2680 = vmatpush.bf16.msrb.mxu1 %v6291_v34 }
 0x598   :  { %2644 = vmatpush.bf16.msra.mxu2 %v6297_v33  ;;  %2670 = vmatpush.bf16.msra.mxu0 %v6298_v35 }
 0x59b   :  { %2655 = vmatpush.bf16.msra.mxu3 %v6295_v24  ;;  %2681 = vmatpush.bf16.msrb.mxu1 %v6239_v17 }
 0x59c   :  { %2645 = vmatpush.bf16.msra.mxu2 %v6248_v5  ;;  %2671 = vmatpush.bf16.msra.mxu0 %v6249_v51 }
 0x59f   :  { %2656 = vmatpush.bf16.msra.mxu3 %v6242_v22  ;;  %2682 = vmatpush.bf16.msrb.mxu1 %v6296_v47  ;;  %v2387_v22 = vunpack.c.l.bf16 %v6566_v63 }
 0x5a0   :  { %2646 = vmatpush.bf16.msra.mxu2 %v6252_v62  ;;  %2672 = vmatpush.bf16.msra.mxu0 %v4960_v8 }
 0x5a3   :  { %2657 = vmatpush.bf16.msra.mxu3 %v6246_v15  ;;  %2683 = vmatpush.bf16.msrb.mxu1 %v6299_v41 }
 0x5a4   :  { %2647 = vmatpush.bf16.msra.mxu2 %v4984_v4  ;;  %2673 = vmatpush.bf16.msra.mxu0 %v4996_v37  ;;  %v6565_v4 = vld [vmem:[#allocation66_spill] sm:$0xff] }
 0x5a7   :  { %2658 = vmatpush.bf16.msra.mxu3 %v6250_v10  ;;  %2684 = vmatpush.bf16.msrb.mxu1 %v6251_v57 }
 0x5a8   :  { %2648 = vmatpush.bf16.msra.mxu2 %v5020_v29  ;;  %2674 = vmatpush.bf16.msra.mxu0 %v5026_v38  ;;  %v2385_v38 = vunpack.c.l.bf16 %v6565_v4  ;;  %v2386_v29 = vunpack.c.h.bf16 %v6565_v4 }
 0x5ab   :  { %2659 = vmatpush.bf16.msra.mxu3 %v6253_v49  ;;  %2685 = vmatpush.bf16.msrb.mxu1 %v6254_v59 }
 0x5af   :  { %2660 = vmatpush.bf16.msra.mxu3 %v4986_v43  ;;  %2686 = vmatpush.bf16.msrb.mxu1 %v4998_v9  ;;  %v2388_v43 = vunpack.c.h.bf16 %v6566_v63 }
 0x5b3   :  { %2661 = vmatpush.bf16.msra.mxu3 %v5022_v28  ;;  %2687 = vmatpush.bf16.msrb.mxu1 %v5028_v58 }
 0x5c8   :  { %v2425_v8 = vpop.f32.mrf.mxu0  ;;  %v2438_v37 = vpop.f32.mrf.mxu1 }
 0x5c9   :  { %v2444_v59 = vadd.f32 %v2425_v8, %v2387_v22  ;;  %v2445_v58 = vadd.f32 %v2438_v37, %v2388_v43 }
 0x5cb   :  { %v2448_v49 = vmul.f32 0.5, %v2444_v59 }
 0x5cd   :  { %v2399_v17 = vpop.f32.mrf.mxu2  ;;  %v2412_v10 = vpop.f32.mrf.mxu3 }
 0x5ce   :  { %v2442_v57 = vadd.f32 %v2399_v17, %v2385_v38  ;;  %v2443_v26 = vadd.f32 %v2412_v10, %v2386_v29 }
 0x5d0   :  { %v2446_v62 = vmul.f32 0.5, %v2442_v57  ;;  %v2447_v9 = vmul.f32 0.5, %v2443_v26  ;;  %v2427_v15 = vpop.f32.mrf.mxu0  ;;  %v2440_v28 = vpop.f32.mrf.mxu1 }
 0x5d2   :  { %3717 = vtanh.f32 %v2446_v62 }
 0x5d3   :  { %3719 = vtanh.f32 %v2447_v9 }
 0x5d4   :  { %3721 = vtanh.f32 %v2445_v58 }
 0x5d5   :  { %v2401_v5 = vpop.f32.mrf.mxu2  ;;  %v2414_v51 = vpop.f32.mrf.mxu3  ;;  %3723 = vtanh.f32 %v2448_v49 }
 0x5d8   :  { %v3718_v18 = vpop.eup %3717  ;;  %v2500_v34 = vpop.f32.mrf.mxu0 }
 0x5d9   :  { %v3720_v31 = vpop.eup %3719  ;;  %v2452_v24 = vmul.f32 0.5, %v3718_v18  ;;  %v2501_v52 = vadd.f32 %v2500_v34, %v6289_v27 }
 0x5da   :  { %v2453_v47 = vmul.f32 0.5, %v3720_v31  ;;  %v3722_v35 = vpop.eup %3721 }
 0x5db   :  { %v2455_v33 = vadd.f32 0.5, %v2452_v24  ;;  %v3724_v44 = vpop.eup %3723 }
 0x5dc   :  { %v2456_v41 = vadd.f32 0.5, %v2453_v47  ;;  %v2454_v1 = vmul.f32 0.5, %v3724_v44 }
 0x5dd   :  { %v2460_v61 = vmul.f32 %v3722_v35, %v2455_v33  ;;  %v2474_v0 = vpop.f32.mrf.mxu2 }
 0x5de   :  { %v2459_v6 = vmul.f32 %v2456_v41, %v5730_v20  ;;  %v2457_v25 = vadd.f32 0.5, %v2454_v1  ;;  %v2475_v48 = vadd.f32 %v2474_v0, %v5112_v55  ;;  %v3584_v41 = vld [vmem:[%s5917_s7 + $0x38] sm:$0xff]  ;;  %v3582_v0 = vld [vmem:[%s5917_s7 + $0x28] sm:$0xff] }
 0x5e0   :  { %v2461_v19 = vadd.f32 %v2460_v61, %v2459_v6  ;;  %v2502_v14 = vpop.f32.mrf.mxu0  ;;  %v3583_v61 = vld [vmem:[%s5917_s7 + $0x30] sm:$0xff]  ;;  %v3581_v6 = vld [vmem:[%s5917_s7 + $0x20] sm:$0xff] }
 0x5e2   :  { %3725 = vtanh.f32 %v2461_v19  ;;  %2712 = vst [vmem:[%s5914_s11] sm:$0xff] %v2461_v19  ;;  %v3580_v19 = vld [vmem:[%s5917_s7 + $0x18] sm:$0xff] }
 0x5e5   :  { %v2476_v13 = vpop.f32.mrf.mxu2 }
 0x5e6   :  { %v3579_v13 = vld [vmem:[%s5917_s7 + $0x10] sm:$0xff] }
 0x5e8   :  { %v3726_v54 = vpop.eup %3725  ;;  %v2552_v3 = vpop.f32.mrf.mxu0 }
 0x5e9   :  { %v2463_v40 = vmul.f32 %v3726_v54, %v2457_v25  ;;  %v2553_v30 = vadd.f32 %v2552_v3, %v5119_v45 }
 0x5eb   :  { %v2587_v53 = vpack.c.bf16 %v2463_v40, %v2463_v40  ;;  %2711 = vst [vmem:[%s5915_s10] sm:$0xff] %v2463_v40 }
 0x5ed   :  { %2597 = vmatmul.bf16.vlgmr.msrb.gmra.mxu2 %v2587_v53  ;;  %2623 = vmatmul.bf16.vlgmr.msrb.gmra.mxu0 %v2587_v53 }
 0x5ee   :  { %v2526_v20 = vpop.f32.mrf.mxu2  ;;  %2786 = vmatpush.bf16.msrb.mxu2 %v3584_v41 }
 0x5ef   :  { %v2527_v38 = vadd.f32 %v2526_v20, %v6292_v11 }
 0x5f0   :  { %v2554_v36 = vpop.f32.mrf.mxu0 }
 0x5f1   :  { %v3577_v36 = vld [vmem:[%s5917_s7] sm:$0xff] }
 0x5f2   :  { %2787 = vmatpush.bf16.msrb.mxu2 %v3583_v61 }
 0x5f3   :  { %v2513_v50 = vpop.f32.mrf.mxu1 }
 0x5f4   :  { %v2514_v23 = vadd.f32 %v2513_v50, %v2501_v52 }
 0x5f6   :  { %v2528_v56 = vpop.f32.mrf.mxu2  ;;  %v2570_v46 = vmul.f32 0.5, %v2514_v23  ;;  %2788 = vmatpush.bf16.msrb.mxu2 %v3582_v0 }
 0x5f8   :  { %3727 = vtanh.f32 %v2570_v46 }
 0x5f9   :  { %v2487_v12 = vpop.f32.mrf.mxu3 }
 0x5fa   :  { %v2488_v39 = vadd.f32 %v2487_v12, %v2475_v48  ;;  %2789 = vmatpush.bf16.msrb.mxu2 %v3581_v6 }
 0x5fb   :  { %v2515_v7 = vpop.f32.mrf.mxu1 }
 0x5fc   :  { %v2569_v2 = vmul.f32 0.5, %v2488_v39 }
 0x5fd   :  { %2649 = vmatmul.bf16.vlgmr.msra.gmra.mxu2 %v2587_v53  ;;  %2675 = vmatmul.bf16.vlgmr.msra.gmra.mxu0 %v2587_v53 }
 0x5fe   :  { %3729 = vtanh.f32 %v2569_v2  ;;  %v3728_v21 = vpop.eup %3727  ;;  %2790 = vmatpush.bf16.msrb.mxu2 %v3580_v19 }
 0x5ff   :  { %v2576_v37 = vmul.f32 0.5, %v3728_v21 }
 0x601   :  { %v2489_v60 = vpop.f32.mrf.mxu3  ;;  %v2579_v29 = vadd.f32 0.5, %v2576_v37 }
 0x602   :  { %2791 = vmatpush.bf16.msrb.mxu2 %v3579_v13 }
 0x603   :  { %v2565_v42 = vpop.f32.mrf.mxu1  ;;  %v2582_v43 = vmul.f32 %v2579_v29, %v5774_v16 }
 0x604   :  { %v3730_v32 = vpop.eup %3729  ;;  %v2566_v8 = vadd.f32 %v2565_v42, %v2553_v30 }
 0x605   :  { %v2575_v4 = vmul.f32 0.5, %v3730_v32 }
 0x606   :  { %3731 = vtanh.f32 %v2566_v8 }
 0x607   :  { %v2578_v57 = vadd.f32 0.5, %v2575_v4 }
 0x609   :  { %v2539_v17 = vpop.f32.mrf.mxu3 }
 0x60a   :  { %v2540_v10 = vadd.f32 %v2539_v17, %v2527_v38 }
 0x60b   :  { %v2567_v26 = vpop.f32.mrf.mxu1 }
 0x60c   :  { %v3732_v63 = vpop.eup %3731  ;;  %v2571_v22 = vmul.f32 0.5, %v2540_v10  ;;  %v3586_v26 = vld [vmem:[%s5916_s8] ss:$0 sm:$0xff] }
 0x60d   :  { %v2583_v62 = vmul.f32 %v3732_v63, %v2578_v57 }
 0x60e   :  { %3733 = vtanh.f32 %v2571_v22 }
 0x60f   :  { %v5863_v9 = vadd.f32 %v2583_v62, %v2582_v43 }
 0x611   :  { %3735 = vtanh.f32 %v5863_v9  ;;  %v2541_v15 = vpop.f32.mrf.mxu3 }
 0x614   :  { %v3734_v28 = vpop.eup %3733 }
 0x615   :  { %v2577_v59 = vmul.f32 0.5, %v3734_v28 }
 0x617   :  { %v3736_v58 = vpop.eup %3735  ;;  %v2580_v5 = vadd.f32 0.5, %v2577_v59 }
 0x619   :  { %v2586_v51 = vmul.f32 %v3736_v58, %v2580_v5 }
 0x61b   :  { %v2588_v49 = vpack.c.bf16 %v2586_v51, %v2586_v51 }
 0x61d   :  { %2610 = vmatmul.bf16.vlgmr.msrb.gmra.mxu3 %v2588_v49  ;;  %2636 = vmatmul.bf16.vlgmr.msra.gmra.mxu1 %v2588_v49 }
 0x62d   :  { %2662 = vmatmul.bf16.vlgmr.msra.gmra.mxu3 %v2588_v49  ;;  %2688 = vmatmul.bf16.vlgmr.msrb.gmra.mxu1 %v2588_v49 }
 0x66a   :  { %v2624_v18 = vpop.f32.mrf.mxu0 }
 0x66b   :  { %v2625_v44 = vadd.f32 %v2624_v18, %v6289_v27  ;;  %v3578_v27 = vld [vmem:[%s5917_s7 + $0x8] sm:$0xff] }
 0x66c   :  { %2792 = vmatpush.bf16.msrb.mxu2 %v3578_v27 }
 0x670   :  { %v2598_v34 = vpop.f32.mrf.mxu2  ;;  %2793 = vmatpush.bf16.msrb.mxu2 %v3577_v36 }
 0x671   :  { %v2599_v25 = vadd.f32 %v2598_v34, %v5112_v55 }
 0x672   :  { %v2626_v16 = vpop.f32.mrf.mxu0 }
 0x678   :  { %v2600_v31 = vpop.f32.mrf.mxu2 }
 0x67a   :  { %v2676_v24 = vpop.f32.mrf.mxu0 }
 0x67b   :  { %v2677_v50 = vadd.f32 %v2676_v24, %v5119_v45 }
 0x680   :  { %v2650_v47 = vpop.f32.mrf.mxu2 }
 0x681   :  { %v2651_v39 = vadd.f32 %v2650_v47, %v6292_v11 }
 0x682   :  { %v2678_v33 = vpop.f32.mrf.mxu0 }
 0x688   :  { %v2652_v35 = vpop.f32.mrf.mxu2 }
 0x69a   :  { %v2637_v14 = vpop.f32.mrf.mxu1 }
 0x69b   :  { %v2638_v1 = vadd.f32 %v2637_v14, %v2625_v44 }
 0x69d   :  { %v2694_v54 = vmul.f32 0.5, %v2638_v1 }
 0x69f   :  { %3737 = vtanh.f32 %v2694_v54 }
 0x6a0   :  { %v2611_v3 = vpop.f32.mrf.mxu3 }
 0x6a1   :  { %v2612_v40 = vadd.f32 %v2611_v3, %v2599_v25 }
 0x6a2   :  { %v2639_v53 = vpop.f32.mrf.mxu1 }
 0x6a3   :  { %v2693_v20 = vmul.f32 0.5, %v2612_v40 }
 0x6a5   :  { %3739 = vtanh.f32 %v2693_v20  ;;  %v3738_v55 = vpop.eup %3737 }
 0x6a6   :  { %v2700_v46 = vmul.f32 0.5, %v3738_v55 }
 0x6a8   :  { %v2613_v52 = vpop.f32.mrf.mxu3  ;;  %v2703_v7 = vadd.f32 0.5, %v2700_v46 }
 0x6aa   :  { %v2689_v23 = vpop.f32.mrf.mxu1  ;;  %v2706_v8 = vmul.f32 %v2703_v7, %v5863_v9 }
 0x6ab   :  { %v3740_v56 = vpop.eup %3739  ;;  %v2690_v48 = vadd.f32 %v2689_v23, %v2677_v50 }
 0x6ac   :  { %v2699_v12 = vmul.f32 0.5, %v3740_v56 }
 0x6ad   :  { %3741 = vtanh.f32 %v2690_v48 }
 0x6ae   :  { %v2702_v21 = vadd.f32 0.5, %v2699_v12 }
 0x6b0   :  { %v2663_v2 = vpop.f32.mrf.mxu3 }
 0x6b1   :  { %v2664_v60 = vadd.f32 %v2663_v2, %v2651_v39 }
 0x6b2   :  { %v2691_v30 = vpop.f32.mrf.mxu1 }
 0x6b3   :  { %v3742_v42 = vpop.eup %3741  ;;  %v2695_v32 = vmul.f32 0.5, %v2664_v60 }
 0x6b4   :  { %v2707_v37 = vmul.f32 %v3742_v42, %v2702_v21 }
 0x6b5   :  { %3743 = vtanh.f32 %v2695_v32 }
 0x6b6   :  { %v2708_v45 = vadd.f32 %v2707_v37, %v2706_v8 }
 0x6b8   :  { %3745 = vtanh.f32 %v2708_v45  ;;  %3412 = vst [vmem:[%s5914_s11 + $0x8] sm:$0xff] %v2708_v45  ;;  %v2665_v4 = vpop.f32.mrf.mxu3 }
 0x6bb   :  { %v3744_v38 = vpop.eup %3743 }
 0x6bc   :  { %v2701_v11 = vmul.f32 0.5, %v3744_v38 }
 0x6be   :  { %v3746_v29 = vpop.eup %3745  ;;  %v2704_v17 = vadd.f32 0.5, %v2701_v11 }
 0x6c0   :  { %v2710_v10 = vmul.f32 %v3746_v29, %v2704_v17 }
 0x6c2   :  { %3411 = vst [vmem:[%s5915_s10 + $0x8] sm:$0xff] %v2710_v10  ;;  %v2717_v57 = vpack.c.bf16 %v2710_v10, %v2710_v10 }
 0x6c4   :  { %2794 = vmatmul.bf16.vlgmr.msrb.gmra.mxu2 %v2717_v57 }
 0x747   :  { %v2795_v63 = vpop.f32.mrf.mxu2 }
 0x748   :  { %v2796_v22 = vadd.f32 %v3586_v26, %v2795_v63 }
 0x74a   :  { %2799 = vst [vmem:[%s5918_s9] sm:$0xff] %v2796_v22 }
 0x74f   :  { %v2797_v43 = vpop.f32.mrf.mxu2 }

</bundles_post_ra>
